<compile_context>
chip_gen: v7x
topology: tpu7x:2x2x1
jax: 0.10.0
libtpu: 0.0.40
codegen_flags: <defaults>
</compile_context>

<pallas_src>
import functools

import numpy as np

import jax
import jax.numpy as jnp
from jax.experimental import pallas as pl
from jax.experimental.pallas import tpu as pltpu


def _round_up(x, m):
    return (x + m - 1) // m * m


def _pick_tm(m, tm_max=512, min_tiles=2):
    """Row-tile size: aim for >= min_tiles balanced tiles (v7x has 2 TCs and
    the grid axis is marked "parallel"), cap block rows at tm_max to bound
    VMEM, and keep multiples of 16 for bf16 sublane tiling."""
    tm = _round_up(pl.cdiv(m, min_tiles), 16)
    return max(16, min(tm, _round_up(tm_max, 16)))


# ----------------------------------------------------------------------------
# Kernel 1: tiled fused matmul + bias + optional ReLU (conv layers via im2col)
# ----------------------------------------------------------------------------
def _matmul_bias_kernel(x_ref, w_ref, b_ref, o_ref, *, relu):
    acc = jnp.dot(x_ref[...], w_ref[...], preferred_element_type=jnp.float32)
    acc = acc + b_ref[...]                  # (1, N) bias broadcast, once/tile
    if relu:
        acc = jnp.maximum(acc, 0.0)
    o_ref[...] = acc.astype(o_ref.dtype)


def matmul_bias(x, w, b, *, relu, out_dtype=jnp.float32, tm_max=512):
    """y = [relu](x @ w + b) as a Pallas TPU kernel.

    x: (M, K), w: (K, N), b: (N,).  Rows (M) are tiled; K and N stay whole
    (they are small in this network) so w/b are VMEM-resident and only the
    x/out tiles stream -> BlockSpec's double-buffered pipeline overlaps HBM
    DMA with MXU work.  bf16 operands, f32 accumulation, f32/bf16 store.
    """
    M, K = x.shape
    K2, N = w.shape
    assert K == K2
    xb = x.astype(jnp.bfloat16)
    wb = w.astype(jnp.bfloat16)
    bb = b.reshape(1, N).astype(jnp.float32)

    tm = _pick_tm(M, tm_max)
    grid = (pl.cdiv(M, tm),)
    out_itemsize = np.dtype(out_dtype).itemsize
    cost = pl.CostEstimate(
        flops=2 * M * K * N,
        transcendentals=0,
        bytes_accessed=M * K * 2 + K * N * 2 + N * 4 + M * N * out_itemsize,
    )
    kernel = functools.partial(_matmul_bias_kernel, relu=relu)
    return pl.pallas_call(
        kernel,
        out_shape=jax.ShapeDtypeStruct((M, N), out_dtype),
        grid=grid,
        in_specs=[
            pl.BlockSpec((tm, K), lambda i: (i, 0)),
            pl.BlockSpec((K, N), lambda i: (0, 0)),
            pl.BlockSpec((1, N), lambda i: (0, 0)),
        ],
        out_specs=pl.BlockSpec((tm, N), lambda i: (i, 0)),
        compiler_params=pltpu.CompilerParams(
            dimension_semantics=("parallel",)),
        cost_estimate=cost,
    )(xb, wb, bb)


# ----------------------------------------------------------------------------
# Kernel 2: fused FC stack (all Linear layers in one pallas_call)
# ----------------------------------------------------------------------------
def _mlp_kernel(*refs, n_layers):
    x_ref, o_ref = refs[0], refs[-1]
    h = x_ref[...]                              # bf16 features
    for l in range(n_layers):
        w_ref = refs[1 + 2 * l]
        b_ref = refs[2 + 2 * l]
        h = jnp.dot(h.astype(jnp.bfloat16), w_ref[...],
                    preferred_element_type=jnp.float32)
        h = h + b_ref[...]
        if l < n_layers - 1:                    # no ReLU on the output layer
            h = jnp.maximum(h, 0.0)
    o_ref[...] = h.astype(o_ref.dtype)


def mlp_forward(x, weights, biases, *, tm_max=256):
    """Fused MLP: x (M, K0) -> (M, N_last), one pallas_call for all layers.

    All weight matrices (<1 MiB total here) are VMEM-resident; intermediate
    activations never leave VMEM.  Tiled over batch rows; "parallel" grid
    axis so the v7x cores can split the row tiles.
    """
    M, K0 = x.shape
    n_layers = len(weights)
    n_out = weights[-1].shape[1]
    tm = _pick_tm(M, tm_max)
    grid = (pl.cdiv(M, tm),)

    args = [x.astype(jnp.bfloat16)]
    in_specs = [pl.BlockSpec((tm, K0), lambda i: (i, 0))]
    flops = 0
    bytes_accessed = M * K0 * 2 + M * n_out * 4
    for w, b in zip(weights, biases):
        K, N = w.shape
        args.append(w.astype(jnp.bfloat16))
        args.append(b.reshape(1, N).astype(jnp.float32))
        in_specs.append(pl.BlockSpec((K, N), lambda i: (0, 0)))
        in_specs.append(pl.BlockSpec((1, N), lambda i: (0, 0)))
        flops += 2 * M * K * N
        bytes_accessed += K * N * 2 + N * 4

    kernel = functools.partial(_mlp_kernel, n_layers=n_layers)
    return pl.pallas_call(
        kernel,
        out_shape=jax.ShapeDtypeStruct((M, n_out), jnp.float32),
        grid=grid,
        in_specs=in_specs,
        out_specs=pl.BlockSpec((tm, n_out), lambda i: (i, 0)),
        compiler_params=pltpu.CompilerParams(
            dimension_semantics=("parallel",)),
        cost_estimate=pl.CostEstimate(flops=flops, transcendentals=0,
                                      bytes_accessed=bytes_accessed),
    )(*args)


# ----------------------------------------------------------------------------
# Glue: im2col patch extraction (static slicing only, runs in bf16)
# ----------------------------------------------------------------------------
def im2col(x, kh, kw, stride):
    """x: (N, H, W, C) -> patches (N, oh, ow, kh*kw*C), ordered (kh, kw, C)."""
    n, h, w, c = x.shape
    oh = (h - kh) // stride + 1
    ow = (w - kw) // stride + 1
    cols = [x[:, i:i + stride * oh:stride, j:j + stride * ow:stride, :]
            for i in range(kh) for j in range(kw)]
    patches = jnp.concatenate(cols, axis=-1)
    return patches, oh, ow


def conv2d_relu(x, w, b, stride):
    """Conv2d (valid padding) + ReLU via im2col + tiled Pallas matmul."""
    n = x.shape[0]
    kh, kw, cin, cout = w.shape
    patches, oh, ow = im2col(x, kh, kw, stride)
    pm = patches.reshape(n * oh * ow, kh * kw * cin)
    wm = w.reshape(kh * kw * cin, cout)
    y = matmul_bias(pm, wm, b, relu=True, out_dtype=jnp.bfloat16)
    return y.reshape(n, oh, ow, cout)


# ----------------------------------------------------------------------------
# Parameter init (deterministic, synthetic)
# ----------------------------------------------------------------------------
def init_params(key, in_channels=3, action_size=4, fc_units=(64, 64)):
    def uniform(k, shape, fan_in):
        bound = 1.0 / jnp.sqrt(jnp.float32(fan_in))
        return jax.random.uniform(k, shape, jnp.float32, -bound, bound)

    keys = jax.random.split(key, 6 + 2 * (len(fc_units) + 1))
    params = {}
    params["w1"] = uniform(keys[0], (8, 8, in_channels, 32), 8 * 8 * in_channels)
    params["b1"] = uniform(keys[1], (32,), 8 * 8 * in_channels)
    params["w2"] = uniform(keys[2], (4, 4, 32, 64), 4 * 4 * 32)
    params["b2"] = uniform(keys[3], (64,), 4 * 4 * 32)
    params["w3"] = uniform(keys[4], (3, 3, 64, 64), 3 * 3 * 64)
    params["b3"] = uniform(keys[5], (64,), 3 * 3 * 64)

    c3, h3, w3 = 64, 7, 7                       # conv3 output (C, H, W)
    in_features = c3 * h3 * w3                  # 3136
    prev = in_features
    params["fc_w"], params["fc_b"] = [], []
    ki = 6
    for li, n_units in enumerate(fc_units):
        w_fc = uniform(keys[ki], (prev, n_units), prev); ki += 1
        if li == 0:
            # One-time host-side permutation: PyTorch flattens NCHW (C,H,W
            # row ordering); our NHWC flatten is (H,W,C).  Reordering the fc1
            # weight rows CHW -> HWC lets us drop the per-call transpose of
            # the (N, 3136) feature map entirely.
            w_fc = (w_fc.reshape(c3, h3, w3, n_units)
                        .transpose(1, 2, 0, 3)
                        .reshape(in_features, n_units))
        params["fc_w"].append(w_fc)
        params["fc_b"].append(uniform(keys[ki], (n_units,), prev)); ki += 1
        prev = n_units
    params["fc_w"].append(uniform(keys[ki], (prev, action_size), prev)); ki += 1
    params["fc_b"].append(uniform(keys[ki], (action_size,), prev))
    return params


# ----------------------------------------------------------------------------
# Forward pass
# ----------------------------------------------------------------------------
def conv_q_network_forward(params, state):
    """state: (N, 84, 84, in_channels) -> action values (N, action_size)."""
    x = state.astype(jnp.bfloat16)                              # bf16 activations
    x = conv2d_relu(x, params["w1"], params["b1"], stride=4)    # (N, 20, 20, 32)
    x = conv2d_relu(x, params["w2"], params["b2"], stride=2)    # (N,  9,  9, 64)
    x = conv2d_relu(x, params["w3"], params["b3"], stride=1)    # (N,  7,  7, 64)
    n = x.shape[0]
    feats = x.reshape(n, -1)    # free HWC flatten; matches permuted fc1 weight
    return mlp_forward(feats, params["fc_w"], params["fc_b"])   # (N, action)


if __name__ == "__main__":
    key = jax.random.PRNGKey(0)
    pkey, xkey = jax.random.split(key)

    # Model forces 84x84 spatial input (7*7*64 flatten); keep batch small.
    batch, in_channels, action_size = 2, 3, 4
    params = init_params(pkey, in_channels=in_channels,
                         action_size=action_size, fc_units=(64, 64))
    state = jax.random.uniform(xkey, (batch, 84, 84, in_channels), jnp.float32)

    fwd = jax.jit(conv_q_network_forward)
    q_values = jax.block_until_ready(fwd(params, state))
    assert q_values.shape == (batch, action_size)
    assert bool(jnp.all(jnp.isfinite(q_values)))
    print("KERNEL_OK")
</pallas_src>

<mosaic_0001>
module attributes {stable_mosaic.version = 11 : i64} {
  func.func @_matmul_bias_kernel(%arg0: i32, %arg1: memref<400x192xbf16, #tpu.memory_space<vmem>>, %arg2: memref<192x32xbf16, #tpu.memory_space<vmem>>, %arg3: memref<1x32xf32, #tpu.memory_space<vmem>>, %arg4: memref<400x32xbf16, #tpu.memory_space<vmem>>) attributes {dimension_semantics = [#tpu.dimension_semantics<parallel>], iteration_bounds = array<i64: 2>, scalar_prefetch = 0 : i64, scratch_operands = 0 : i64, tpu.core_type = #tpu.core_type<tc>, window_params = [{transform_indices = @transform_0, window_bounds = array<i64: 400, 192>}, {pipeline_mode = #tpu.pipeline_mode<synchronous>, transform_indices = @transform_1, window_bounds = array<i64: 192, 32>}, {pipeline_mode = #tpu.pipeline_mode<synchronous>, transform_indices = @transform_2, window_bounds = array<i64: 1, 32>}, {transform_indices = @transform_3, window_bounds = array<i64: 400, 32>}]} {
    %c0 = arith.constant 0 : index
    %c0_0 = arith.constant 0 : index
    %0 = vector.load %arg1[%c0, %c0_0] : memref<400x192xbf16, #tpu.memory_space<vmem>>, vector<400x192xbf16>
    %c0_1 = arith.constant 0 : index
    %c0_2 = arith.constant 0 : index
    %1 = vector.load %arg2[%c0_1, %c0_2] : memref<192x32xbf16, #tpu.memory_space<vmem>>, vector<192x32xbf16>
    %cst = arith.constant dense<0.000000e+00> : vector<400x32xf32>
    %2 = tpu.matmul %0, %1, %cst {dimension_numbers = #tpu.dot_dimension_numbers<[1], [0], [0], [1], [0, 0, 1, 1], [], []>} : vector<400x192xbf16>, vector<192x32xbf16>, vector<400x32xf32> -> vector<400x32xf32>
    %c0_3 = arith.constant 0 : index
    %c0_4 = arith.constant 0 : index
    %3 = vector.load %arg3[%c0_3, %c0_4] : memref<1x32xf32, #tpu.memory_space<vmem>>, vector<1x32xf32>
    %4 = vector.broadcast %3 : vector<1x32xf32> to vector<400x32xf32>
    %5 = arith.addf %2, %4 : vector<400x32xf32>
    %cst_5 = arith.constant 0.000000e+00 : f32
    %6 = vector.broadcast %cst_5 : f32 to vector<400x32xf32>
    %7 = arith.maximumf %5, %6 : vector<400x32xf32>
    %8 = arith.truncf %7 : vector<400x32xf32> to vector<400x32xbf16>
    %c0_6 = arith.constant 0 : index
    %c0_7 = arith.constant 0 : index
    %9 = vector.load %arg4[%c0_6, %c0_7] : memref<400x32xbf16, #tpu.memory_space<vmem>>, vector<400x32xbf16>
    tpu.vector_store %arg4[%c0_6, %c0_7], %8 {strides = array<i32>} : memref<400x32xbf16, #tpu.memory_space<vmem>>, vector<400x32xbf16>,
    return
  }
  func.func @transform_0(%arg0: i32) -> (i32, i32) {
    %c0_i32 = arith.constant 0 : i32
    %c0_i32_0 = arith.constant 0 : i32
    return %arg0, %c0_i32 : i32, i32
  }
  func.func @transform_1(%arg0: i32) -> (i32, i32) {
    %c0_i32 = arith.constant 0 : i32
    %c0_i32_0 = arith.constant 0 : i32
    %c0_i32_1 = arith.constant 0 : i32
    return %c0_i32, %c0_i32_0 : i32, i32
  }
  func.func @transform_2(%arg0: i32) -> (i32, i32) {
    %c0_i32 = arith.constant 0 : i32
    %c0_i32_0 = arith.constant 0 : i32
    %c0_i32_1 = arith.constant 0 : i32
    return %c0_i32, %c0_i32_0 : i32, i32
  }
  func.func @transform_3(%arg0: i32) -> (i32, i32) {
    %c0_i32 = arith.constant 0 : i32
    %c0_i32_0 = arith.constant 0 : i32
    return %arg0, %c0_i32 : i32, i32
  }
}

module attributes {stable_mosaic.version = 11 : i64} {
  func.func @_matmul_bias_kernel(%arg0: i32, %arg1: memref<96x512xbf16, #tpu.memory_space<vmem>>, %arg2: memref<512x64xbf16, #tpu.memory_space<vmem>>, %arg3: memref<1x64xf32, #tpu.memory_space<vmem>>, %arg4: memref<96x64xbf16, #tpu.memory_space<vmem>>) attributes {dimension_semantics = [#tpu.dimension_semantics<parallel>], iteration_bounds = array<i64: 2>, scalar_prefetch = 0 : i64, scratch_operands = 0 : i64, tpu.core_type = #tpu.core_type<tc>, window_params = [{transform_indices = @transform_0, window_bounds = array<i64: 96, 512>}, {pipeline_mode = #tpu.pipeline_mode<synchronous>, transform_indices = @transform_1, window_bounds = array<i64: 512, 64>}, {pipeline_mode = #tpu.pipeline_mode<synchronous>, transform_indices = @transform_2, window_bounds = array<i64: 1, 64>}, {transform_indices = @transform_3, window_bounds = array<i64: 96, 64>}]} {
    %c0 = arith.constant 0 : index
    %c0_0 = arith.constant 0 : index
    %0 = vector.load %arg1[%c0, %c0_0] : memref<96x512xbf16, #tpu.memory_space<vmem>>, vector<96x512xbf16>
    %c0_1 = arith.constant 0 : index
    %c0_2 = arith.constant 0 : index
    %1 = vector.load %arg2[%c0_1, %c0_2] : memref<512x64xbf16, #tpu.memory_space<vmem>>, vector<512x64xbf16>
    %cst = arith.constant dense<0.000000e+00> : vector<96x64xf32>
    %2 = tpu.matmul %0, %1, %cst {dimension_numbers = #tpu.dot_dimension_numbers<[1], [0], [0], [1], [0, 0, 1, 1], [], []>} : vector<96x512xbf16>, vector<512x64xbf16>, vector<96x64xf32> -> vector<96x64xf32>
    %c0_3 = arith.constant 0 : index
    %c0_4 = arith.constant 0 : index
    %3 = vector.load %arg3[%c0_3, %c0_4] : memref<1x64xf32, #tpu.memory_space<vmem>>, vector<1x64xf32>
    %4 = vector.broadcast %3 : vector<1x64xf32> to vector<96x64xf32>
    %5 = arith.addf %2, %4 : vector<96x64xf32>
    %cst_5 = arith.constant 0.000000e+00 : f32
    %6 = vector.broadcast %cst_5 : f32 to vector<96x64xf32>
    %7 = arith.maximumf %5, %6 : vector<96x64xf32>
    %8 = arith.truncf %7 : vector<96x64xf32> to vector<96x64xbf16>
    %c0_6 = arith.constant 0 : index
    %c0_7 = arith.constant 0 : index
    %9 = vector.load %arg4[%c0_6, %c0_7] : memref<96x64xbf16, #tpu.memory_space<vmem>>, vector<96x64xbf16>
    tpu.vector_store %arg4[%c0_6, %c0_7], %8 {strides = array<i32>} : memref<96x64xbf16, #tpu.memory_space<vmem>>, vector<96x64xbf16>,
    return
  }
  func.func @transform_0(%arg0: i32) -> (i32, i32) {
    %c0_i32 = arith.constant 0 : i32
    %c0_i32_0 = arith.constant 0 : i32
    return %arg0, %c0_i32 : i32, i32
  }
  func.func @transform_1(%arg0: i32) -> (i32, i32) {
    %c0_i32 = arith.constant 0 : i32
    %c0_i32_0 = arith.constant 0 : i32
    %c0_i32_1 = arith.constant 0 : i32
    return %c0_i32, %c0_i32_0 : i32, i32
  }
  func.func @transform_2(%arg0: i32) -> (i32, i32) {
    %c0_i32 = arith.constant 0 : i32
    %c0_i32_0 = arith.constant 0 : i32
    %c0_i32_1 = arith.constant 0 : i32
    return %c0_i32, %c0_i32_0 : i32, i32
  }
  func.func @transform_3(%arg0: i32) -> (i32, i32) {
    %c0_i32 = arith.constant 0 : i32
    %c0_i32_0 = arith.constant 0 : i32
    return %arg0, %c0_i32 : i32, i32
  }
}

module attributes {stable_mosaic.version = 11 : i64} {
  func.func @_matmul_bias_kernel(%arg0: i32, %arg1: memref<64x576xbf16, #tpu.memory_space<vmem>>, %arg2: memref<576x64xbf16, #tpu.memory_space<vmem>>, %arg3: memref<1x64xf32, #tpu.memory_space<vmem>>, %arg4: memref<64x64xbf16, #tpu.memory_space<vmem>>) attributes {dimension_semantics = [#tpu.dimension_semantics<parallel>], iteration_bounds = array<i64: 2>, scalar_prefetch = 0 : i64, scratch_operands = 0 : i64, tpu.core_type = #tpu.core_type<tc>, window_params = [{transform_indices = @transform_0, window_bounds = array<i64: 64, 576>}, {pipeline_mode = #tpu.pipeline_mode<synchronous>, transform_indices = @transform_1, window_bounds = array<i64: 576, 64>}, {pipeline_mode = #tpu.pipeline_mode<synchronous>, transform_indices = @transform_2, window_bounds = array<i64: 1, 64>}, {transform_indices = @transform_3, window_bounds = array<i64: 64, 64>}]} {
    %c0 = arith.constant 0 : index
    %c0_0 = arith.constant 0 : index
    %0 = vector.load %arg1[%c0, %c0_0] : memref<64x576xbf16, #tpu.memory_space<vmem>>, vector<64x576xbf16>
    %c0_1 = arith.constant 0 : index
    %c0_2 = arith.constant 0 : index
    %1 = vector.load %arg2[%c0_1, %c0_2] : memref<576x64xbf16, #tpu.memory_space<vmem>>, vector<576x64xbf16>
    %cst = arith.constant dense<0.000000e+00> : vector<64x64xf32>
    %2 = tpu.matmul %0, %1, %cst {dimension_numbers = #tpu.dot_dimension_numbers<[1], [0], [0], [1], [0, 0, 1, 1], [], []>} : vector<64x576xbf16>, vector<576x64xbf16>, vector<64x64xf32> -> vector<64x64xf32>
    %c0_3 = arith.constant 0 : index
    %c0_4 = arith.constant 0 : index
    %3 = vector.load %arg3[%c0_3, %c0_4] : memref<1x64xf32, #tpu.memory_space<vmem>>, vector<1x64xf32>
    %4 = vector.broadcast %3 : vector<1x64xf32> to vector<64x64xf32>
    %5 = arith.addf %2, %4 : vector<64x64xf32>
    %cst_5 = arith.constant 0.000000e+00 : f32
    %6 = vector.broadcast %cst_5 : f32 to vector<64x64xf32>
    %7 = arith.maximumf %5, %6 : vector<64x64xf32>
    %8 = arith.truncf %7 : vector<64x64xf32> to vector<64x64xbf16>
    %c0_6 = arith.constant 0 : index
    %c0_7 = arith.constant 0 : index
    %9 = vector.load %arg4[%c0_6, %c0_7] : memref<64x64xbf16, #tpu.memory_space<vmem>>, vector<64x64xbf16>
    tpu.vector_store %arg4[%c0_6, %c0_7], %8 {strides = array<i32>} : memref<64x64xbf16, #tpu.memory_space<vmem>>, vector<64x64xbf16>,
    return
  }
  func.func @transform_0(%arg0: i32) -> (i32, i32) {
    %c0_i32 = arith.constant 0 : i32
    %c0_i32_0 = arith.constant 0 : i32
    return %arg0, %c0_i32 : i32, i32
  }
  func.func @transform_1(%arg0: i32) -> (i32, i32) {
    %c0_i32 = arith.constant 0 : i32
    %c0_i32_0 = arith.constant 0 : i32
    %c0_i32_1 = arith.constant 0 : i32
    return %c0_i32, %c0_i32_0 : i32, i32
  }
  func.func @transform_2(%arg0: i32) -> (i32, i32) {
    %c0_i32 = arith.constant 0 : i32
    %c0_i32_0 = arith.constant 0 : i32
    %c0_i32_1 = arith.constant 0 : i32
    return %c0_i32, %c0_i32_0 : i32, i32
  }
  func.func @transform_3(%arg0: i32) -> (i32, i32) {
    %c0_i32 = arith.constant 0 : i32
    %c0_i32_0 = arith.constant 0 : i32
    return %arg0, %c0_i32 : i32, i32
  }
}

module attributes {stable_mosaic.version = 11 : i64} {
  func.func @_mlp_kernel(%arg0: i32, %arg1: memref<16x3136xbf16, #tpu.memory_space<vmem>>, %arg2: memref<3136x64xbf16, #tpu.memory_space<vmem>>, %arg3: memref<1x64xf32, #tpu.memory_space<vmem>>, %arg4: memref<64x64xbf16, #tpu.memory_space<vmem>>, %arg5: memref<1x64xf32, #tpu.memory_space<vmem>>, %arg6: memref<64x4xbf16, #tpu.memory_space<vmem>>, %arg7: memref<1x4xf32, #tpu.memory_space<vmem>>, %arg8: memref<16x4xf32, #tpu.memory_space<vmem>>) attributes {dimension_semantics = [#tpu.dimension_semantics<parallel>], iteration_bounds = array<i64: 1>, scalar_prefetch = 0 : i64, scratch_operands = 0 : i64, tpu.core_type = #tpu.core_type<tc>, window_params = [{transform_indices = @transform_0, window_bounds = array<i64: 16, 3136>}, {pipeline_mode = #tpu.pipeline_mode<synchronous>, transform_indices = @transform_1, window_bounds = array<i64: 3136, 64>}, {pipeline_mode = #tpu.pipeline_mode<synchronous>, transform_indices = @transform_2, window_bounds = array<i64: 1, 64>}, {pipeline_mode = #tpu.pipeline_mode<synchronous>, transform_indices = @transform_3, window_bounds = array<i64: 64, 64>}, {pipeline_mode = #tpu.pipeline_mode<synchronous>, transform_indices = @transform_4, window_bounds = array<i64: 1, 64>}, {pipeline_mode = #tpu.pipeline_mode<synchronous>, transform_indices = @transform_5, window_bounds = array<i64: 64, 4>}, {pipeline_mode = #tpu.pipeline_mode<synchronous>, transform_indices = @transform_6, window_bounds = array<i64: 1, 4>}, {transform_indices = @transform_7, window_bounds = array<i64: 16, 4>}]} {
    %c0 = arith.constant 0 : index
    %c0_0 = arith.constant 0 : index
    %0 = vector.load %arg1[%c0, %c0_0] : memref<16x3136xbf16, #tpu.memory_space<vmem>>, vector<16x3136xbf16>
    %c0_1 = arith.constant 0 : index
    %c0_2 = arith.constant 0 : index
    %1 = vector.load %arg2[%c0_1, %c0_2] : memref<3136x64xbf16, #tpu.memory_space<vmem>>, vector<3136x64xbf16>
    %cst = arith.constant dense<0.000000e+00> : vector<16x64xf32>
    %2 = tpu.matmul %0, %1, %cst {dimension_numbers = #tpu.dot_dimension_numbers<[1], [0], [0], [1], [0, 0, 1, 1], [], []>} : vector<16x3136xbf16>, vector<3136x64xbf16>, vector<16x64xf32> -> vector<16x64xf32>
    %c0_3 = arith.constant 0 : index
    %c0_4 = arith.constant 0 : index
    %3 = vector.load %arg3[%c0_3, %c0_4] : memref<1x64xf32, #tpu.memory_space<vmem>>, vector<1x64xf32>
    %4 = vector.broadcast %3 : vector<1x64xf32> to vector<16x64xf32>
    %5 = arith.addf %2, %4 : vector<16x64xf32>
    %cst_5 = arith.constant 0.000000e+00 : f32
    %6 = vector.broadcast %cst_5 : f32 to vector<16x64xf32>
    %7 = arith.maximumf %5, %6 : vector<16x64xf32>
    %8 = arith.truncf %7 : vector<16x64xf32> to vector<16x64xbf16>
    %c0_6 = arith.constant 0 : index
    %c0_7 = arith.constant 0 : index
    %9 = vector.load %arg4[%c0_6, %c0_7] : memref<64x64xbf16, #tpu.memory_space<vmem>>, vector<64x64xbf16>
    %cst_8 = arith.constant dense<0.000000e+00> : vector<16x64xf32>
    %10 = tpu.matmul %8, %9, %cst_8 {dimension_numbers = #tpu.dot_dimension_numbers<[1], [0], [0], [1], [0, 0, 1, 1], [], []>} : vector<16x64xbf16>, vector<64x64xbf16>, vector<16x64xf32> -> vector<16x64xf32>
    %c0_9 = arith.constant 0 : index
    %c0_10 = arith.constant 0 : index
    %11 = vector.load %arg5[%c0_9, %c0_10] : memref<1x64xf32, #tpu.memory_space<vmem>>, vector<1x64xf32>
    %12 = vector.broadcast %11 : vector<1x64xf32> to vector<16x64xf32>
    %13 = arith.addf %10, %12 : vector<16x64xf32>
    %cst_11 = arith.constant 0.000000e+00 : f32
    %14 = vector.broadcast %cst_11 : f32 to vector<16x64xf32>
    %15 = arith.maximumf %13, %14 : vector<16x64xf32>
    %16 = arith.truncf %15 : vector<16x64xf32> to vector<16x64xbf16>
    %c0_12 = arith.constant 0 : index
    %c0_13 = arith.constant 0 : index
    %17 = vector.load %arg6[%c0_12, %c0_13] : memref<64x4xbf16, #tpu.memory_space<vmem>>, vector<64x4xbf16>
    %cst_14 = arith.constant dense<0.000000e+00> : vector<16x4xf32>
    %18 = tpu.matmul %16, %17, %cst_14 {dimension_numbers = #tpu.dot_dimension_numbers<[1], [0], [0], [1], [0, 0, 1, 1], [], []>} : vector<16x64xbf16>, vector<64x4xbf16>, vector<16x4xf32> -> vector<16x4xf32>
    %c0_15 = arith.constant 0 : index
    %c0_16 = arith.constant 0 : index
    %19 = vector.load %arg7[%c0_15, %c0_16] : memref<1x4xf32, #tpu.memory_space<vmem>>, vector<1x4xf32>
    %20 = vector.broadcast %19 : vector<1x4xf32> to vector<16x4xf32>
    %21 = arith.addf %18, %20 : vector<16x4xf32>
    %c0_17 = arith.constant 0 : index
    %c0_18 = arith.constant 0 : index
    %22 = vector.load %arg8[%c0_17, %c0_18] : memref<16x4xf32, #tpu.memory_space<vmem>>, vector<16x4xf32>
    tpu.vector_store %arg8[%c0_17, %c0_18], %21 {strides = array<i32>} : memref<16x4xf32, #tpu.memory_space<vmem>>, vector<16x4xf32>,
    return
  }
  func.func @transform_0(%arg0: i32) -> (i32, i32) {
    %c0_i32 = arith.constant 0 : i32
    %c0_i32_0 = arith.constant 0 : i32
    return %arg0, %c0_i32 : i32, i32
  }
  func.func @transform_1(%arg0: i32) -> (i32, i32) {
    %c0_i32 = arith.constant 0 : i32
    %c0_i32_0 = arith.constant 0 : i32
    %c0_i32_1 = arith.constant 0 : i32
    return %c0_i32, %c0_i32_0 : i32, i32
  }
  func.func @transform_2(%arg0: i32) -> (i32, i32) {
    %c0_i32 = arith.constant 0 : i32
    %c0_i32_0 = arith.constant 0 : i32
    %c0_i32_1 = arith.constant 0 : i32
    return %c0_i32, %c0_i32_0 : i32, i32
  }
  func.func @transform_3(%arg0: i32) -> (i32, i32) {
    %c0_i32 = arith.constant 0 : i32
    %c0_i32_0 = arith.constant 0 : i32
    %c0_i32_1 = arith.constant 0 : i32
    return %c0_i32, %c0_i32_0 : i32, i32
  }
  func.func @transform_4(%arg0: i32) -> (i32, i32) {
    %c0_i32 = arith.constant 0 : i32
    %c0_i32_0 = arith.constant 0 : i32
    %c0_i32_1 = arith.constant 0 : i32
    return %c0_i32, %c0_i32_0 : i32, i32
  }
  func.func @transform_5(%arg0: i32) -> (i32, i32) {
    %c0_i32 = arith.constant 0 : i32
    %c0_i32_0 = arith.constant 0 : i32
    %c0_i32_1 = arith.constant 0 : i32
    return %c0_i32, %c0_i32_0 : i32, i32
  }
  func.func @transform_6(%arg0: i32) -> (i32, i32) {
    %c0_i32 = arith.constant 0 : i32
    %c0_i32_0 = arith.constant 0 : i32
    %c0_i32_1 = arith.constant 0 : i32
    return %c0_i32, %c0_i32_0 : i32, i32
  }
  func.func @transform_7(%arg0: i32) -> (i32, i32) {
    %c0_i32 = arith.constant 0 : i32
    %c0_i32_0 = arith.constant 0 : i32
    return %arg0, %c0_i32 : i32, i32
  }
}

</mosaic_0001>

<bundles_post_ra>
// kernel: conv_q_network_forward.4
= control target key start
LH: loop header
LB: loop body
LE: loop exit
PB: predicated region body
PF: predicated region fallthrough
CT: control target
= control target key end

     0   :  { %s1570_s12 = smov 0   ;;  %s1885_s0 = inlined_call_operand.vmem [shape: bf16[800,192], index: 0, kind: input, shape index: {}]   ;;  %s1886_s1 = inlined_call_operand.vmem [shape: bf16[192,32], index: 1, kind: input, shape index: {}]   ;;  %s1887_s2 = inlined_call_operand.vmem [shape: f32[1,32], index: 2, kind: input, shape index: {}]   ;;  %s1888_s3 = inlined_call_operand.vmem [shape: bf16[800,32], index: 3, kind: output, shape index: {}]  }
   0x1 LB: > { %s1222_s13 = sadd.s32 4294967295, %s1547_s12   ;;  %p1226_p0 = scmp.ge.s32.totalorder %s1547_s12, 1  ;;  %s1547_s12 = sphi %s1570_s12, %s13_s12  }
   0x2   : > { %p139_p1 = scmp.lt.s32.totalorder %s1547_s12, 3 }
   0x4   : > { %p140_p2 = pnand %p1226_p0, %p139_p1 }
   0x5   : > { %v1454_v0 = vld [vmem:[%s1886_s1] sm:$0xff] (!%p140_p2)   ;;  %v1549_v1 = vmov (!%p140_p2), 0   ;;  %s164_s16 = smul.u32 (!%p140_p2), 50, %s1222_s13  ;;  %v1455_v2 = vld [vmem:[%s1886_s1 + $0x8] sm:$0xff] (!%p140_p2)   ;;  %v1456_v3 = vld [vmem:[%s1886_s1 + $0x10] sm:$0xff] (!%p140_p2)   ;;  %vm556_vm0 = vcmask (!%p140_p2), 523264  }
   0x6   : > { %143 = sbr.rel (%p140_p2) target bundleno = 371 (0x173), region = 32  ;;  %632 = vmatprep.subr.bf16.mxu0 (!%p140_p2), %v1549_v1  ;;  %1421 = vmatprep.subr.bf16.mxu1 (!%p140_p2), %v1549_v1  ;;  %v1457_v4 = vld [vmem:[%s1886_s1 + $0x18] sm:$0xff] (!%p140_p2)   ;;  %v1458_v6 = vld [vmem:[%s1886_s1 + $0x20] sm:$0xff] (!%p140_p2)   ;;  %v1459_v8 = vld [vmem:[%s1886_s1 + $0x28] sm:$0xff] (!%p140_p2)   ;;  %vm1115_vm1 = vcmask (!%p140_p2), 257024  }
   0x7   : > { %633 = vmatpush1.bf16.msra.mxu0 (!%p140_p2), %v1454_v0  ;;  %1433 = vmatpush1.bf16.msra.mxu1 (!%p140_p2), %v1454_v0  ;;  %p165_p3 = scmp.lt.s32.totalorder (!%p140_p2), %s164_s16, 99  ;;  %v1460_v9 = vld [vmem:[%s1886_s1 + $0x30] sm:$0xff] (!%p140_p2)   ;;  %v1461_v10 = vld [vmem:[%s1886_s1 + $0x38] sm:$0xff] (!%p140_p2)   ;;  %v1462_v11 = vld [vmem:[%s1886_s1 + $0x40] sm:$0xff] (!%p140_p2)  }
   0x8   : > { %634 = vmatprep.subr.bf16.mxu0 (!%p140_p2), %v1549_v1  ;;  %1422 = vmatprep.subr.bf16.mxu1 (!%p140_p2), %v1549_v1  ;;  %v1463_v12 = vld [vmem:[%s1886_s1 + $0x48] sm:$0xff] (!%p140_p2)   ;;  %v1464_v13 = vld [vmem:[%s1886_s1 + $0x50] sm:$0xff] (!%p140_p2)   ;;  %v1465_v14 = vld [vmem:[%s1886_s1 + $0x58] sm:$0xff] (!%p140_p2)  }
   0x9   : > { %v1724_v63 = vld [vmem:[%s1887_s2] ss:$0 sm:$0xff] (!%p140_p2) }
   0xb   : > { %635 = vmatpush1.bf16.msra.mxu0 (!%p140_p2), %v1455_v2  ;;  %1434 = vmatpush1.bf16.msra.mxu1 (!%p140_p2), %v1455_v2 }
   0xc   : > { %636 = vmatprep.subr.bf16.mxu0 (!%p140_p2), %v1549_v1  ;;  %1423 = vmatprep.subr.bf16.mxu1 (!%p140_p2), %v1549_v1 }
   0xd   : > { %s1890_s16 = smov (!%p165_p3, %s164_s16), 99 }
   0xe   : > { %s1370_s21 = sshll.u32 %s1890_s16, 3  ;;  %s1229_s20 = sshll.u32 %s1890_s16, 2 }
   0xf   : > { %637 = vmatpush1.bf16.msra.mxu0 %v1456_v3  ;;  %1435 = vmatpush1.bf16.msra.mxu1 %v1456_v3  ;;  %s1602_s26 = scalar_lea.vmem %s1885_s0, %s1370_s21  ;;  %s1734_s16 = scalar_lea.vmem %s1888_s3, %s1229_s20 }
  0x10   : > { %638 = vmatprep.subr.bf16.mxu0 %v1549_v1  ;;  %1424 = vmatprep.subr.bf16.mxu1 %v1549_v1  ;;  %v1468_v5 = vld [vmem:[%s1602_s26 + $0x4] ss:$8 sps:$4 sm:$0xff]   ;;  %v1471_v7 = vld [vmem:[%s1602_s26 + $0xd4] ss:$8 sps:$4 sm:$0xff]   ;;  %v1466_v15 = vld [vmem:[%s1602_s26] ss:$8 sps:$4 sm:$0xff]  }
  0x11   : > { %1293 = vmatprep.mubr.msk.bf16.mxu0 %vm556_vm0, %v1468_v5  ;;  %1306 = vmatprep.mubr.msk.bf16.mxu1 %vm556_vm0, %v1471_v7  ;;  %v1469_v16 = vld [vmem:[%s1602_s26 + $0xd0] ss:$8 sps:$4 sm:$0xff]   ;;  %v1472_v17 = vld [vmem:[%s1602_s26 + $0x14] ss:$8 sps:$4 sm:$0xff]   ;;  %v1475_v18 = vld [vmem:[%s1602_s26 + $0xe4] ss:$8 sps:$4 sm:$0xff]  }
  0x12   : > { %v1474_v19 = vld [vmem:[%s1602_s26 + $0x10] ss:$8 sps:$4 sm:$0xff]   ;;  %v1477_v20 = vld [vmem:[%s1602_s26 + $0xe0] ss:$8 sps:$4 sm:$0xff]   ;;  %v1478_v21 = vld [vmem:[%s1602_s26 + $0x24] ss:$8 sps:$4 sm:$0xff]  }
  0x13   : > { %639 = vmatpush1.bf16.msra.mxu0 %v1457_v4  ;;  %1436 = vmatpush1.bf16.msra.mxu1 %v1457_v4  ;;  %v1481_v22 = vld [vmem:[%s1602_s26 + $0xf4] ss:$8 sps:$4 sm:$0xff]   ;;  %v1480_v23 = vld [vmem:[%s1602_s26 + $0x20] ss:$8 sps:$4 sm:$0xff]   ;;  %v1483_v24 = vld [vmem:[%s1602_s26 + $0xf0] ss:$8 sps:$4 sm:$0xff]  }
  0x14   : > { %640 = vmatprep.subr.bf16.mxu0 %v1549_v1  ;;  %1425 = vmatprep.subr.bf16.mxu1 %v1549_v1  ;;  %v1484_v25 = vld [vmem:[%s1602_s26 + $0x34] ss:$8 sps:$4 sm:$0xff]   ;;  %v1487_v26 = vld [vmem:[%s1602_s26 + $0x104] ss:$8 sps:$4 sm:$0xff]   ;;  %v1486_v27 = vld [vmem:[%s1602_s26 + $0x30] ss:$8 sps:$4 sm:$0xff]  }
  0x15   : > { %v1489_v28 = vld [vmem:[%s1602_s26 + $0x100] ss:$8 sps:$4 sm:$0xff]   ;;  %v1490_v29 = vld [vmem:[%s1602_s26 + $0x44] ss:$8 sps:$4 sm:$0xff]   ;;  %v1493_v30 = vld [vmem:[%s1602_s26 + $0x114] ss:$8 sps:$4 sm:$0xff]  }
  0x16   : > { %v1492_v31 = vld [vmem:[%s1602_s26 + $0x40] ss:$8 sps:$4 sm:$0xff]   ;;  %v1495_v32 = vld [vmem:[%s1602_s26 + $0x110] ss:$8 sps:$4 sm:$0xff]   ;;  %v1496_v33 = vld [vmem:[%s1602_s26 + $0x54] ss:$8 sps:$4 sm:$0xff]  }
  0x17   : > { %641 = vmatpush1.bf16.msra.mxu0 %v1458_v6  ;;  %1437 = vmatpush1.bf16.msra.mxu1 %v1458_v6  ;;  %v1499_v34 = vld [vmem:[%s1602_s26 + $0x124] ss:$8 sps:$4 sm:$0xff]   ;;  %v1498_v35 = vld [vmem:[%s1602_s26 + $0x50] ss:$8 sps:$4 sm:$0xff]   ;;  %v1501_v36 = vld [vmem:[%s1602_s26 + $0x120] ss:$8 sps:$4 sm:$0xff]  }
  0x18   : > { %642 = vmatprep.subr.bf16.mxu0 %v1549_v1  ;;  %1426 = vmatprep.subr.bf16.mxu1 %v1549_v1  ;;  %v1502_v37 = vld [vmem:[%s1602_s26 + $0x64] ss:$8 sps:$4 sm:$0xff]   ;;  %v1505_v38 = vld [vmem:[%s1602_s26 + $0x134] ss:$8 sps:$4 sm:$0xff]   ;;  %v1504_v39 = vld [vmem:[%s1602_s26 + $0x60] ss:$8 sps:$4 sm:$0xff]  }
  0x19   : > { %v1507_v40 = vld [vmem:[%s1602_s26 + $0x130] ss:$8 sps:$4 sm:$0xff]   ;;  %v1508_v41 = vld [vmem:[%s1602_s26 + $0x74] ss:$8 sps:$4 sm:$0xff]   ;;  %v1511_v42 = vld [vmem:[%s1602_s26 + $0x144] ss:$8 sps:$4 sm:$0xff]  }
  0x1a   : > { %v1510_v43 = vld [vmem:[%s1602_s26 + $0x70] ss:$8 sps:$4 sm:$0xff]   ;;  %v1513_v44 = vld [vmem:[%s1602_s26 + $0x140] ss:$8 sps:$4 sm:$0xff]   ;;  %v1514_v45 = vld [vmem:[%s1602_s26 + $0x84] ss:$8 sps:$4 sm:$0xff]  }
  0x1b   : > { %643 = vmatpush1.bf16.msra.mxu0 %v1459_v8  ;;  %1438 = vmatpush1.bf16.msra.mxu1 %v1459_v8  ;;  %v1517_v46 = vld [vmem:[%s1602_s26 + $0x154] ss:$8 sps:$4 sm:$0xff]   ;;  %v1516_v47 = vld [vmem:[%s1602_s26 + $0x80] ss:$8 sps:$4 sm:$0xff]   ;;  %v1519_v48 = vld [vmem:[%s1602_s26 + $0x150] ss:$8 sps:$4 sm:$0xff]  }
  0x1c   : > { %644 = vmatprep.subr.bf16.mxu0 %v1549_v1  ;;  %1427 = vmatprep.subr.bf16.mxu1 %v1549_v1  ;;  %v1520_v49 = vld [vmem:[%s1602_s26 + $0x94] ss:$8 sps:$4 sm:$0xff]   ;;  %v1523_v50 = vld [vmem:[%s1602_s26 + $0x164] ss:$8 sps:$4 sm:$0xff]   ;;  %v1522_v51 = vld [vmem:[%s1602_s26 + $0x90] ss:$8 sps:$4 sm:$0xff]  }
  0x1d   : > { %v1525_v52 = vld [vmem:[%s1602_s26 + $0x160] ss:$8 sps:$4 sm:$0xff]   ;;  %v1526_v53 = vld [vmem:[%s1602_s26 + $0xa4] ss:$8 sps:$4 sm:$0xff]   ;;  %v1529_v54 = vld [vmem:[%s1602_s26 + $0x174] ss:$8 sps:$4 sm:$0xff]  }
  0x1e   : > { %v1528_v55 = vld [vmem:[%s1602_s26 + $0xa0] ss:$8 sps:$4 sm:$0xff]   ;;  %v1531_v56 = vld [vmem:[%s1602_s26 + $0x170] ss:$8 sps:$4 sm:$0xff]   ;;  %v1532_v57 = vld [vmem:[%s1602_s26 + $0xb4] ss:$8 sps:$4 sm:$0xff]  }
  0x1f   : > { %645 = vmatpush1.bf16.msra.mxu0 %v1460_v9  ;;  %1439 = vmatpush1.bf16.msra.mxu1 %v1460_v9  ;;  %v1535_v58 = vld [vmem:[%s1602_s26 + $0x184] ss:$8 sps:$4 sm:$0xff]   ;;  %v1534_v59 = vld [vmem:[%s1602_s26 + $0xb0] ss:$8 sps:$4 sm:$0xff]   ;;  %v1537_v60 = vld [vmem:[%s1602_s26 + $0x180] ss:$8 sps:$4 sm:$0xff]  }
  0x20   : > { %646 = vmatprep.subr.bf16.mxu0 %v1549_v1  ;;  %1428 = vmatprep.subr.bf16.mxu1 %v1549_v1  ;;  %v1538_v61 = vld [vmem:[%s1602_s26 + $0xc4] ss:$8 sps:$4 sm:$0xff]   ;;  %v1540_v62 = vld [vmem:[%s1602_s26 + $0xc0] ss:$8 sps:$4 sm:$0xff]  }
  0x23   : > { %647 = vmatpush1.bf16.msra.mxu0 %v1461_v10  ;;  %1440 = vmatpush1.bf16.msra.mxu1 %v1461_v10 }
  0x24   : > { %648 = vmatprep.subr.bf16.mxu0 %v1549_v1  ;;  %1429 = vmatprep.subr.bf16.mxu1 %v1549_v1 }
  0x27   : > { %649 = vmatpush1.bf16.msra.mxu0 %v1462_v11  ;;  %1441 = vmatpush1.bf16.msra.mxu1 %v1462_v11 }
  0x28   : > { %650 = vmatprep.subr.bf16.mxu0 %v1549_v1  ;;  %1430 = vmatprep.subr.bf16.mxu1 %v1549_v1 }
  0x2b   : > { %651 = vmatpush1.bf16.msra.mxu0 %v1463_v12  ;;  %1442 = vmatpush1.bf16.msra.mxu1 %v1463_v12 }
  0x2c   : > { %652 = vmatprep.subr.bf16.mxu0 %v1549_v1  ;;  %1431 = vmatprep.subr.bf16.mxu1 %v1549_v1 }
  0x2f   : > { %653 = vmatpush1.bf16.msra.mxu0 %v1464_v13  ;;  %1443 = vmatpush1.bf16.msra.mxu1 %v1464_v13 }
  0x30   : > { %654 = vmatprep.subr.bf16.mxu0 %v1549_v1  ;;  %1432 = vmatprep.subr.bf16.mxu1 %v1549_v1 }
  0x33   : > { %655 = vmatpush1.bf16.msra.mxu0 %v1465_v14  ;;  %1444 = vmatpush1.bf16.msra.mxu1 %v1465_v14 }
  0x36   : > { %665 = vmatmul.mubr.bf16.vlgmr.msra.gmra.mrb[0].mxu0 %v1466_v15  ;;  %769 = vmatmul.mubr.bf16.vlgmr.msra.gmra.mrb[0].mxu1 %v1469_v16 }
  0x37   : > { %1294 = vmatprep.mubr.msk.bf16.mxu0 %vm556_vm0, %v1472_v17  ;;  %1307 = vmatprep.mubr.msk.bf16.mxu1 %vm556_vm0, %v1475_v18 }
  0x3e   : > { %673 = vmatmul.mubr.bf16.gmra.mrb[4].mxu0 %v1474_v19  ;;  %777 = vmatmul.mubr.bf16.gmra.mrb[4].mxu1 %v1477_v20 }
  0x3f   : > { %1295 = vmatprep.mubr.msk.bf16.mxu0 %vm556_vm0, %v1478_v21  ;;  %1308 = vmatprep.mubr.msk.bf16.mxu1 %vm556_vm0, %v1481_v22 }
  0x46   : > { %681 = vmatmul.mubr.bf16.gmra.mrb[8].mxu0 %v1480_v23  ;;  %785 = vmatmul.mubr.bf16.gmra.mrb[8].mxu1 %v1483_v24 }
  0x47   : > { %1296 = vmatprep.mubr.msk.bf16.mxu0 %vm556_vm0, %v1484_v25  ;;  %1309 = vmatprep.mubr.msk.bf16.mxu1 %vm556_vm0, %v1487_v26 }
  0x4e   : > { %689 = vmatmul.mubr.bf16.gmra.mrb[12].mxu0 %v1486_v27  ;;  %793 = vmatmul.mubr.bf16.gmra.mrb[12].mxu1 %v1489_v28 }
  0x4f   : > { %1297 = vmatprep.mubr.msk.bf16.mxu0 %vm556_vm0, %v1490_v29  ;;  %1310 = vmatprep.mubr.msk.bf16.mxu1 %vm556_vm0, %v1493_v30 }
  0x56   : > { %697 = vmatmul.mubr.bf16.gmra.mrb[16].mxu0 %v1492_v31  ;;  %801 = vmatmul.mubr.bf16.gmra.mrb[16].mxu1 %v1495_v32 }
  0x57   : > { %1298 = vmatprep.mubr.msk.bf16.mxu0 %vm556_vm0, %v1496_v33  ;;  %1311 = vmatprep.mubr.msk.bf16.mxu1 %vm556_vm0, %v1499_v34 }
  0x5e   : > { %705 = vmatmul.mubr.bf16.gmra.mrb[20].mxu0 %v1498_v35  ;;  %809 = vmatmul.mubr.bf16.gmra.mrb[20].mxu1 %v1501_v36 }
  0x5f   : > { %1299 = vmatprep.mubr.msk.bf16.mxu0 %vm556_vm0, %v1502_v37  ;;  %1312 = vmatprep.mubr.msk.bf16.mxu1 %vm556_vm0, %v1505_v38 }
  0x66   : > { %713 = vmatmul.mubr.bf16.gmra.mrb[24].mxu0 %v1504_v39  ;;  %817 = vmatmul.mubr.bf16.gmra.mrb[24].mxu1 %v1507_v40 }
  0x67   : > { %1300 = vmatprep.mubr.msk.bf16.mxu0 %vm556_vm0, %v1508_v41  ;;  %1313 = vmatprep.mubr.msk.bf16.mxu1 %vm556_vm0, %v1511_v42 }
  0x6e   : > { %721 = vmatmul.mubr.bf16.gmra.mrb[28].mxu0 %v1510_v43  ;;  %825 = vmatmul.mubr.bf16.gmra.mrb[28].mxu1 %v1513_v44 }
  0x6f   : > { %1301 = vmatprep.mubr.msk.bf16.mxu0 %vm556_vm0, %v1514_v45  ;;  %1314 = vmatprep.mubr.msk.bf16.mxu1 %vm556_vm0, %v1517_v46 }
  0x76   : > { %729 = vmatmul.mubr.bf16.gmra.mrb[32].mxu0 %v1516_v47  ;;  %833 = vmatmul.mubr.bf16.gmra.mrb[32].mxu1 %v1519_v48 }
  0x77   : > { %1302 = vmatprep.mubr.msk.bf16.mxu0 %vm556_vm0, %v1520_v49  ;;  %1315 = vmatprep.mubr.msk.bf16.mxu1 %vm556_vm0, %v1523_v50 }
  0x7e   : > { %737 = vmatmul.mubr.bf16.gmra.mrb[36].mxu0 %v1522_v51  ;;  %841 = vmatmul.mubr.bf16.gmra.mrb[36].mxu1 %v1525_v52 }
  0x7f   : > { %1303 = vmatprep.mubr.msk.bf16.mxu0 %vm556_vm0, %v1526_v53  ;;  %1316 = vmatprep.mubr.msk.bf16.mxu1 %vm556_vm0, %v1529_v54 }
  0x86   : > { %745 = vmatmul.mubr.bf16.gmra.mrb[40].mxu0 %v1528_v55  ;;  %849 = vmatmul.mubr.bf16.gmra.mrb[40].mxu1 %v1531_v56 }
  0x87   : > { %1304 = vmatprep.mubr.msk.bf16.mxu0 %vm556_vm0, %v1532_v57  ;;  %1317 = vmatprep.mubr.msk.bf16.mxu1 %vm556_vm0, %v1535_v58 }
  0x8e   : > { %753 = vmatmul.mubr.bf16.gmra.mrb[44].mxu0 %v1534_v59  ;;  %857 = vmatmul.mubr.bf16.gmra.mrb[44].mxu1 %v1537_v60 }
  0x8f   : > { %1305 = vmatprep.mubr.msk.bf16.mxu0 %vm556_vm0, %v1538_v61 }
  0x96   : > { %761 = vmatmul.mubr.bf16.gmra.mrb[48].mxu0 %v1540_v62 }
 0x109   : > { %v666_v0 = vpop.f32.mrb[0].mxu0  ;;  %v770_v1 = vpop.f32.mrb[0].mxu1 }
 0x10a   : > { %v667_v2 = vadd.f32 %v1724_v63, %v666_v0  ;;  %v668_v3 = vpop.f32.mrb[1].mxu0  ;;  %v771_v4 = vadd.f32 %v1724_v63, %v770_v1  ;;  %v772_v5 = vpop.f32.mrb[1].mxu1 }
 0x10b   : > { %v669_v6 = vpop.f32.mrb[2].mxu0  ;;  %v773_v7 = vpop.f32.mrb[2].mxu1 }
 0x10c   : > { %v865_v8 = vmax.f32 %v667_v2, 0.0  ;;  %v670_v9 = vadd.f32 %v1724_v63, %v669_v6  ;;  %v671_v10 = vpop.f32.mrb[3].mxu0  ;;  %v891_v11 = vmax.f32 %v771_v4, 0.0  ;;  %v774_v12 = vadd.f32 %v1724_v63, %v773_v7  ;;  %v775_v13 = vpop.f32.mrb[3].mxu1 }
 0x10e   : > { %v1371_v14 = vpack.c.bf16 %v865_v8, %v865_v8  ;;  %v866_v15 = vmax.f32 %v670_v9, 0.0  ;;  %v1397_v16 = vpack.c.bf16 %v891_v11, %v891_v11  ;;  %v892_v17 = vmax.f32 %v774_v12, 0.0 }
 0x110   : > { %1116 = vst.msk [vmem:[%s1734_s16] sm:$0xf] %vm1115_vm1, %v1371_v14  ;;  %v1372_v18 = vpack.c.bf16 %v866_v15, %v866_v15  ;;  %1142 = vst.msk [vmem:[%s1734_s16 + $0x68] sm:$0xf] %vm1115_vm1, %v1397_v16  ;;  %v1398_v19 = vpack.c.bf16 %v892_v17, %v892_v17 }
 0x111   : > { %v674_v20 = vpop.f32.mrb[4].mxu0  ;;  %v778_v21 = vpop.f32.mrb[4].mxu1 }
 0x112   : > { %1117 = vst.msk [vmem:[%s1734_s16 + $0x4] sm:$0xf] %vm1115_vm1, %v1372_v18  ;;  %1143 = vst.msk [vmem:[%s1734_s16 + $0x6c] sm:$0xf] %vm1115_vm1, %v1398_v19  ;;  %v675_v22 = vadd.f32 %v1724_v63, %v674_v20  ;;  %v676_v23 = vpop.f32.mrb[5].mxu0  ;;  %v779_v24 = vadd.f32 %v1724_v63, %v778_v21  ;;  %v780_v25 = vpop.f32.mrb[5].mxu1 }
 0x113   : > { %v677_v26 = vpop.f32.mrb[6].mxu0  ;;  %v781_v27 = vpop.f32.mrb[6].mxu1 }
 0x114   : > { %v867_v28 = vmax.f32 %v675_v22, 0.0  ;;  %v678_v29 = vadd.f32 %v1724_v63, %v677_v26  ;;  %v679_v30 = vpop.f32.mrb[7].mxu0  ;;  %v893_v31 = vmax.f32 %v779_v24, 0.0  ;;  %v782_v32 = vadd.f32 %v1724_v63, %v781_v27  ;;  %v783_v33 = vpop.f32.mrb[7].mxu1 }
 0x116   : > { %v1373_v34 = vpack.c.bf16 %v867_v28, %v867_v28  ;;  %v868_v35 = vmax.f32 %v678_v29, 0.0  ;;  %v1399_v36 = vpack.c.bf16 %v893_v31, %v893_v31  ;;  %v894_v37 = vmax.f32 %v782_v32, 0.0 }
 0x118   : > { %1118 = vst.msk [vmem:[%s1734_s16 + $0x8] sm:$0xf] %vm1115_vm1, %v1373_v34  ;;  %v1374_v38 = vpack.c.bf16 %v868_v35, %v868_v35  ;;  %1144 = vst.msk [vmem:[%s1734_s16 + $0x70] sm:$0xf] %vm1115_vm1, %v1399_v36  ;;  %v1400_v39 = vpack.c.bf16 %v894_v37, %v894_v37 }
 0x119   : > { %v682_v40 = vpop.f32.mrb[8].mxu0  ;;  %v786_v41 = vpop.f32.mrb[8].mxu1 }
 0x11a   : > { %1119 = vst.msk [vmem:[%s1734_s16 + $0xc] sm:$0xf] %vm1115_vm1, %v1374_v38  ;;  %1145 = vst.msk [vmem:[%s1734_s16 + $0x74] sm:$0xf] %vm1115_vm1, %v1400_v39  ;;  %v683_v42 = vadd.f32 %v1724_v63, %v682_v40  ;;  %v684_v43 = vpop.f32.mrb[9].mxu0  ;;  %v787_v44 = vadd.f32 %v1724_v63, %v786_v41  ;;  %v788_v45 = vpop.f32.mrb[9].mxu1 }
 0x11b   : > { %v685_v46 = vpop.f32.mrb[10].mxu0  ;;  %v789_v47 = vpop.f32.mrb[10].mxu1 }
 0x11c   : > { %v869_v48 = vmax.f32 %v683_v42, 0.0  ;;  %v686_v49 = vadd.f32 %v1724_v63, %v685_v46  ;;  %v687_v50 = vpop.f32.mrb[11].mxu0  ;;  %v895_v51 = vmax.f32 %v787_v44, 0.0  ;;  %v790_v52 = vadd.f32 %v1724_v63, %v789_v47  ;;  %v791_v53 = vpop.f32.mrb[11].mxu1 }
 0x11e   : > { %v1375_v54 = vpack.c.bf16 %v869_v48, %v869_v48  ;;  %v870_v55 = vmax.f32 %v686_v49, 0.0  ;;  %v1401_v56 = vpack.c.bf16 %v895_v51, %v895_v51  ;;  %v896_v57 = vmax.f32 %v790_v52, 0.0 }
 0x120   : > { %1120 = vst.msk [vmem:[%s1734_s16 + $0x10] sm:$0xf] %vm1115_vm1, %v1375_v54  ;;  %v1376_v58 = vpack.c.bf16 %v870_v55, %v870_v55  ;;  %1146 = vst.msk [vmem:[%s1734_s16 + $0x78] sm:$0xf] %vm1115_vm1, %v1401_v56  ;;  %v1402_v59 = vpack.c.bf16 %v896_v57, %v896_v57 }
 0x121   : > { %v690_v60 = vpop.f32.mrb[12].mxu0  ;;  %v794_v61 = vpop.f32.mrb[12].mxu1 }
 0x122   : > { %1121 = vst.msk [vmem:[%s1734_s16 + $0x14] sm:$0xf] %vm1115_vm1, %v1376_v58  ;;  %1147 = vst.msk [vmem:[%s1734_s16 + $0x7c] sm:$0xf] %vm1115_vm1, %v1402_v59  ;;  %v691_v62 = vadd.f32 %v1724_v63, %v690_v60  ;;  %v692_v0 = vpop.f32.mrb[13].mxu0  ;;  %v795_v1 = vadd.f32 %v1724_v63, %v794_v61  ;;  %v796_v2 = vpop.f32.mrb[13].mxu1 }
 0x123   : > { %v693_v3 = vpop.f32.mrb[14].mxu0  ;;  %v797_v4 = vpop.f32.mrb[14].mxu1 }
 0x124   : > { %v871_v5 = vmax.f32 %v691_v62, 0.0  ;;  %v694_v6 = vadd.f32 %v1724_v63, %v693_v3  ;;  %v695_v7 = vpop.f32.mrb[15].mxu0  ;;  %v897_v8 = vmax.f32 %v795_v1, 0.0  ;;  %v798_v9 = vadd.f32 %v1724_v63, %v797_v4  ;;  %v799_v10 = vpop.f32.mrb[15].mxu1 }
 0x126   : > { %v1377_v11 = vpack.c.bf16 %v871_v5, %v871_v5  ;;  %v872_v12 = vmax.f32 %v694_v6, 0.0  ;;  %v1403_v13 = vpack.c.bf16 %v897_v8, %v897_v8  ;;  %v898_v14 = vmax.f32 %v798_v9, 0.0 }
 0x128   : > { %1122 = vst.msk [vmem:[%s1734_s16 + $0x18] sm:$0xf] %vm1115_vm1, %v1377_v11  ;;  %v1378_v15 = vpack.c.bf16 %v872_v12, %v872_v12  ;;  %1148 = vst.msk [vmem:[%s1734_s16 + $0x80] sm:$0xf] %vm1115_vm1, %v1403_v13  ;;  %v1404_v16 = vpack.c.bf16 %v898_v14, %v898_v14 }
 0x129   : > { %v698_v17 = vpop.f32.mrb[16].mxu0  ;;  %v802_v18 = vpop.f32.mrb[16].mxu1 }
 0x12a   : > { %1123 = vst.msk [vmem:[%s1734_s16 + $0x1c] sm:$0xf] %vm1115_vm1, %v1378_v15  ;;  %1149 = vst.msk [vmem:[%s1734_s16 + $0x84] sm:$0xf] %vm1115_vm1, %v1404_v16  ;;  %v699_v19 = vadd.f32 %v1724_v63, %v698_v17  ;;  %v700_v20 = vpop.f32.mrb[17].mxu0  ;;  %v803_v21 = vadd.f32 %v1724_v63, %v802_v18  ;;  %v804_v22 = vpop.f32.mrb[17].mxu1 }
 0x12b   : > { %v701_v23 = vpop.f32.mrb[18].mxu0  ;;  %v805_v24 = vpop.f32.mrb[18].mxu1 }
 0x12c   : > { %v873_v25 = vmax.f32 %v699_v19, 0.0  ;;  %v702_v26 = vadd.f32 %v1724_v63, %v701_v23  ;;  %v703_v27 = vpop.f32.mrb[19].mxu0  ;;  %v899_v28 = vmax.f32 %v803_v21, 0.0  ;;  %v806_v29 = vadd.f32 %v1724_v63, %v805_v24  ;;  %v807_v30 = vpop.f32.mrb[19].mxu1 }
 0x12e   : > { %v1379_v31 = vpack.c.bf16 %v873_v25, %v873_v25  ;;  %v874_v32 = vmax.f32 %v702_v26, 0.0  ;;  %v1405_v33 = vpack.c.bf16 %v899_v28, %v899_v28  ;;  %v900_v34 = vmax.f32 %v806_v29, 0.0 }
 0x130   : > { %1124 = vst.msk [vmem:[%s1734_s16 + $0x20] sm:$0xf] %vm1115_vm1, %v1379_v31  ;;  %v1380_v35 = vpack.c.bf16 %v874_v32, %v874_v32  ;;  %1150 = vst.msk [vmem:[%s1734_s16 + $0x88] sm:$0xf] %vm1115_vm1, %v1405_v33  ;;  %v1406_v36 = vpack.c.bf16 %v900_v34, %v900_v34 }
 0x131   : > { %v706_v37 = vpop.f32.mrb[20].mxu0  ;;  %v810_v38 = vpop.f32.mrb[20].mxu1 }
 0x132   : > { %1125 = vst.msk [vmem:[%s1734_s16 + $0x24] sm:$0xf] %vm1115_vm1, %v1380_v35  ;;  %1151 = vst.msk [vmem:[%s1734_s16 + $0x8c] sm:$0xf] %vm1115_vm1, %v1406_v36  ;;  %v707_v39 = vadd.f32 %v1724_v63, %v706_v37  ;;  %v708_v40 = vpop.f32.mrb[21].mxu0  ;;  %v811_v41 = vadd.f32 %v1724_v63, %v810_v38  ;;  %v812_v42 = vpop.f32.mrb[21].mxu1 }
 0x133   : > { %v709_v43 = vpop.f32.mrb[22].mxu0  ;;  %v813_v44 = vpop.f32.mrb[22].mxu1 }
 0x134   : > { %v875_v45 = vmax.f32 %v707_v39, 0.0  ;;  %v710_v46 = vadd.f32 %v1724_v63, %v709_v43  ;;  %v711_v47 = vpop.f32.mrb[23].mxu0  ;;  %v901_v48 = vmax.f32 %v811_v41, 0.0  ;;  %v814_v49 = vadd.f32 %v1724_v63, %v813_v44  ;;  %v815_v50 = vpop.f32.mrb[23].mxu1 }
 0x136   : > { %v1381_v51 = vpack.c.bf16 %v875_v45, %v875_v45  ;;  %v876_v52 = vmax.f32 %v710_v46, 0.0  ;;  %v1407_v53 = vpack.c.bf16 %v901_v48, %v901_v48  ;;  %v902_v54 = vmax.f32 %v814_v49, 0.0 }
 0x138   : > { %1126 = vst.msk [vmem:[%s1734_s16 + $0x28] sm:$0xf] %vm1115_vm1, %v1381_v51  ;;  %v1382_v55 = vpack.c.bf16 %v876_v52, %v876_v52  ;;  %1152 = vst.msk [vmem:[%s1734_s16 + $0x90] sm:$0xf] %vm1115_vm1, %v1407_v53  ;;  %v1408_v56 = vpack.c.bf16 %v902_v54, %v902_v54 }
 0x139   : > { %v714_v57 = vpop.f32.mrb[24].mxu0  ;;  %v818_v58 = vpop.f32.mrb[24].mxu1 }
 0x13a   : > { %1127 = vst.msk [vmem:[%s1734_s16 + $0x2c] sm:$0xf] %vm1115_vm1, %v1382_v55  ;;  %1153 = vst.msk [vmem:[%s1734_s16 + $0x94] sm:$0xf] %vm1115_vm1, %v1408_v56  ;;  %v715_v59 = vadd.f32 %v1724_v63, %v714_v57  ;;  %v716_v60 = vpop.f32.mrb[25].mxu0  ;;  %v819_v61 = vadd.f32 %v1724_v63, %v818_v58  ;;  %v820_v62 = vpop.f32.mrb[25].mxu1 }
 0x13b   : > { %v717_v0 = vpop.f32.mrb[26].mxu0  ;;  %v821_v1 = vpop.f32.mrb[26].mxu1 }
 0x13c   : > { %v877_v2 = vmax.f32 %v715_v59, 0.0  ;;  %v718_v3 = vadd.f32 %v1724_v63, %v717_v0  ;;  %v719_v4 = vpop.f32.mrb[27].mxu0  ;;  %v903_v5 = vmax.f32 %v819_v61, 0.0  ;;  %v822_v6 = vadd.f32 %v1724_v63, %v821_v1  ;;  %v823_v7 = vpop.f32.mrb[27].mxu1 }
 0x13e   : > { %v1383_v8 = vpack.c.bf16 %v877_v2, %v877_v2  ;;  %v878_v9 = vmax.f32 %v718_v3, 0.0  ;;  %v1409_v10 = vpack.c.bf16 %v903_v5, %v903_v5  ;;  %v904_v11 = vmax.f32 %v822_v6, 0.0 }
 0x140   : > { %1128 = vst.msk [vmem:[%s1734_s16 + $0x30] sm:$0xf] %vm1115_vm1, %v1383_v8  ;;  %v1384_v12 = vpack.c.bf16 %v878_v9, %v878_v9  ;;  %1154 = vst.msk [vmem:[%s1734_s16 + $0x98] sm:$0xf] %vm1115_vm1, %v1409_v10  ;;  %v1410_v13 = vpack.c.bf16 %v904_v11, %v904_v11 }
 0x141   : > { %v722_v14 = vpop.f32.mrb[28].mxu0  ;;  %v826_v15 = vpop.f32.mrb[28].mxu1 }
 0x142   : > { %1129 = vst.msk [vmem:[%s1734_s16 + $0x34] sm:$0xf] %vm1115_vm1, %v1384_v12  ;;  %1155 = vst.msk [vmem:[%s1734_s16 + $0x9c] sm:$0xf] %vm1115_vm1, %v1410_v13  ;;  %v723_v16 = vadd.f32 %v1724_v63, %v722_v14  ;;  %v724_v17 = vpop.f32.mrb[29].mxu0  ;;  %v827_v18 = vadd.f32 %v1724_v63, %v826_v15  ;;  %v828_v19 = vpop.f32.mrb[29].mxu1 }
 0x143   : > { %v725_v20 = vpop.f32.mrb[30].mxu0  ;;  %v829_v21 = vpop.f32.mrb[30].mxu1 }
 0x144   : > { %v879_v22 = vmax.f32 %v723_v16, 0.0  ;;  %v726_v23 = vadd.f32 %v1724_v63, %v725_v20  ;;  %v727_v24 = vpop.f32.mrb[31].mxu0  ;;  %v905_v25 = vmax.f32 %v827_v18, 0.0  ;;  %v830_v26 = vadd.f32 %v1724_v63, %v829_v21  ;;  %v831_v27 = vpop.f32.mrb[31].mxu1 }
 0x146   : > { %v1385_v28 = vpack.c.bf16 %v879_v22, %v879_v22  ;;  %v880_v29 = vmax.f32 %v726_v23, 0.0  ;;  %v1411_v30 = vpack.c.bf16 %v905_v25, %v905_v25  ;;  %v906_v31 = vmax.f32 %v830_v26, 0.0 }
 0x148   : > { %1130 = vst.msk [vmem:[%s1734_s16 + $0x38] sm:$0xf] %vm1115_vm1, %v1385_v28  ;;  %v1386_v32 = vpack.c.bf16 %v880_v29, %v880_v29  ;;  %1156 = vst.msk [vmem:[%s1734_s16 + $0xa0] sm:$0xf] %vm1115_vm1, %v1411_v30  ;;  %v1412_v33 = vpack.c.bf16 %v906_v31, %v906_v31 }
 0x149   : > { %v730_v34 = vpop.f32.mrb[32].mxu0  ;;  %v834_v35 = vpop.f32.mrb[32].mxu1 }
 0x14a   : > { %1131 = vst.msk [vmem:[%s1734_s16 + $0x3c] sm:$0xf] %vm1115_vm1, %v1386_v32  ;;  %1157 = vst.msk [vmem:[%s1734_s16 + $0xa4] sm:$0xf] %vm1115_vm1, %v1412_v33  ;;  %v731_v36 = vadd.f32 %v1724_v63, %v730_v34  ;;  %v732_v37 = vpop.f32.mrb[33].mxu0  ;;  %v835_v38 = vadd.f32 %v1724_v63, %v834_v35  ;;  %v836_v39 = vpop.f32.mrb[33].mxu1 }
 0x14b   : > { %v733_v40 = vpop.f32.mrb[34].mxu0  ;;  %v837_v41 = vpop.f32.mrb[34].mxu1 }
 0x14c   : > { %v881_v42 = vmax.f32 %v731_v36, 0.0  ;;  %v734_v43 = vadd.f32 %v1724_v63, %v733_v40  ;;  %v735_v44 = vpop.f32.mrb[35].mxu0  ;;  %v907_v45 = vmax.f32 %v835_v38, 0.0  ;;  %v838_v46 = vadd.f32 %v1724_v63, %v837_v41  ;;  %v839_v47 = vpop.f32.mrb[35].mxu1 }
 0x14e   : > { %v1387_v48 = vpack.c.bf16 %v881_v42, %v881_v42  ;;  %v882_v49 = vmax.f32 %v734_v43, 0.0  ;;  %v1413_v50 = vpack.c.bf16 %v907_v45, %v907_v45  ;;  %v908_v51 = vmax.f32 %v838_v46, 0.0 }
 0x150   : > { %1132 = vst.msk [vmem:[%s1734_s16 + $0x40] sm:$0xf] %vm1115_vm1, %v1387_v48  ;;  %v1388_v52 = vpack.c.bf16 %v882_v49, %v882_v49  ;;  %1158 = vst.msk [vmem:[%s1734_s16 + $0xa8] sm:$0xf] %vm1115_vm1, %v1413_v50  ;;  %v1414_v53 = vpack.c.bf16 %v908_v51, %v908_v51 }
 0x151   : > { %v738_v54 = vpop.f32.mrb[36].mxu0  ;;  %v842_v55 = vpop.f32.mrb[36].mxu1 }
 0x152   : > { %1133 = vst.msk [vmem:[%s1734_s16 + $0x44] sm:$0xf] %vm1115_vm1, %v1388_v52  ;;  %1159 = vst.msk [vmem:[%s1734_s16 + $0xac] sm:$0xf] %vm1115_vm1, %v1414_v53  ;;  %v739_v56 = vadd.f32 %v1724_v63, %v738_v54  ;;  %v740_v57 = vpop.f32.mrb[37].mxu0  ;;  %v843_v58 = vadd.f32 %v1724_v63, %v842_v55  ;;  %v844_v59 = vpop.f32.mrb[37].mxu1 }
 0x153   : > { %v741_v60 = vpop.f32.mrb[38].mxu0  ;;  %v845_v61 = vpop.f32.mrb[38].mxu1 }
 0x154   : > { %v883_v62 = vmax.f32 %v739_v56, 0.0  ;;  %v742_v0 = vadd.f32 %v1724_v63, %v741_v60  ;;  %v743_v1 = vpop.f32.mrb[39].mxu0  ;;  %v909_v2 = vmax.f32 %v843_v58, 0.0  ;;  %v846_v3 = vadd.f32 %v1724_v63, %v845_v61  ;;  %v847_v4 = vpop.f32.mrb[39].mxu1 }
 0x156   : > { %v1389_v5 = vpack.c.bf16 %v883_v62, %v883_v62  ;;  %v884_v6 = vmax.f32 %v742_v0, 0.0  ;;  %v1415_v7 = vpack.c.bf16 %v909_v2, %v909_v2  ;;  %v910_v8 = vmax.f32 %v846_v3, 0.0 }
 0x158   : > { %1134 = vst.msk [vmem:[%s1734_s16 + $0x48] sm:$0xf] %vm1115_vm1, %v1389_v5  ;;  %v1390_v9 = vpack.c.bf16 %v884_v6, %v884_v6  ;;  %1160 = vst.msk [vmem:[%s1734_s16 + $0xb0] sm:$0xf] %vm1115_vm1, %v1415_v7  ;;  %v1416_v10 = vpack.c.bf16 %v910_v8, %v910_v8 }
 0x159   : > { %v746_v11 = vpop.f32.mrb[40].mxu0  ;;  %v850_v12 = vpop.f32.mrb[40].mxu1 }
 0x15a   : > { %1135 = vst.msk [vmem:[%s1734_s16 + $0x4c] sm:$0xf] %vm1115_vm1, %v1390_v9  ;;  %1161 = vst.msk [vmem:[%s1734_s16 + $0xb4] sm:$0xf] %vm1115_vm1, %v1416_v10  ;;  %v747_v13 = vadd.f32 %v1724_v63, %v746_v11  ;;  %v748_v14 = vpop.f32.mrb[41].mxu0  ;;  %v851_v15 = vadd.f32 %v1724_v63, %v850_v12  ;;  %v852_v16 = vpop.f32.mrb[41].mxu1 }
 0x15b   : > { %v749_v17 = vpop.f32.mrb[42].mxu0  ;;  %v853_v18 = vpop.f32.mrb[42].mxu1 }
 0x15c   : > { %v885_v19 = vmax.f32 %v747_v13, 0.0  ;;  %v750_v20 = vadd.f32 %v1724_v63, %v749_v17  ;;  %v751_v21 = vpop.f32.mrb[43].mxu0  ;;  %v911_v22 = vmax.f32 %v851_v15, 0.0  ;;  %v854_v23 = vadd.f32 %v1724_v63, %v853_v18  ;;  %v855_v24 = vpop.f32.mrb[43].mxu1 }
 0x15e   : > { %v1391_v25 = vpack.c.bf16 %v885_v19, %v885_v19  ;;  %v886_v26 = vmax.f32 %v750_v20, 0.0  ;;  %v1417_v27 = vpack.c.bf16 %v911_v22, %v911_v22  ;;  %v912_v28 = vmax.f32 %v854_v23, 0.0 }
 0x160   : > { %1136 = vst.msk [vmem:[%s1734_s16 + $0x50] sm:$0xf] %vm1115_vm1, %v1391_v25  ;;  %v1392_v29 = vpack.c.bf16 %v886_v26, %v886_v26  ;;  %1162 = vst.msk [vmem:[%s1734_s16 + $0xb8] sm:$0xf] %vm1115_vm1, %v1417_v27  ;;  %v1418_v30 = vpack.c.bf16 %v912_v28, %v912_v28 }
 0x161   : > { %v754_v31 = vpop.f32.mrb[44].mxu0  ;;  %v858_v32 = vpop.f32.mrb[44].mxu1 }
 0x162   : > { %1137 = vst.msk [vmem:[%s1734_s16 + $0x54] sm:$0xf] %vm1115_vm1, %v1392_v29  ;;  %1163 = vst.msk [vmem:[%s1734_s16 + $0xbc] sm:$0xf] %vm1115_vm1, %v1418_v30  ;;  %v755_v33 = vadd.f32 %v1724_v63, %v754_v31  ;;  %v756_v34 = vpop.f32.mrb[45].mxu0  ;;  %v859_v35 = vadd.f32 %v1724_v63, %v858_v32  ;;  %v860_v36 = vpop.f32.mrb[45].mxu1 }
 0x163   : > { %v757_v37 = vpop.f32.mrb[46].mxu0  ;;  %v861_v38 = vpop.f32.mrb[46].mxu1 }
 0x164   : > { %v887_v39 = vmax.f32 %v755_v33, 0.0  ;;  %v758_v40 = vadd.f32 %v1724_v63, %v757_v37  ;;  %v759_v41 = vpop.f32.mrb[47].mxu0  ;;  %v913_v42 = vmax.f32 %v859_v35, 0.0  ;;  %v862_v43 = vadd.f32 %v1724_v63, %v861_v38  ;;  %v863_v44 = vpop.f32.mrb[47].mxu1 }
 0x166   : > { %v1393_v45 = vpack.c.bf16 %v887_v39, %v887_v39  ;;  %v888_v46 = vmax.f32 %v758_v40, 0.0  ;;  %v1419_v47 = vpack.c.bf16 %v913_v42, %v913_v42  ;;  %v914_v48 = vmax.f32 %v862_v43, 0.0 }
 0x168   : > { %1138 = vst.msk [vmem:[%s1734_s16 + $0x58] sm:$0xf] %vm1115_vm1, %v1393_v45  ;;  %v1394_v49 = vpack.c.bf16 %v888_v46, %v888_v46  ;;  %1164 = vst.msk [vmem:[%s1734_s16 + $0xc0] sm:$0xf] %vm1115_vm1, %v1419_v47  ;;  %v1420_v50 = vpack.c.bf16 %v914_v48, %v914_v48 }
 0x169   : > { %v762_v51 = vpop.f32.mrb[48].mxu0 }
 0x16a   : > { %1139 = vst.msk [vmem:[%s1734_s16 + $0x5c] sm:$0xf] %vm1115_vm1, %v1394_v49  ;;  %1165 = vst.msk [vmem:[%s1734_s16 + $0xc4] sm:$0xf] %vm1115_vm1, %v1420_v50  ;;  %v763_v52 = vadd.f32 %v1724_v63, %v762_v51  ;;  %v764_v53 = vpop.f32.mrb[49].mxu0 }
 0x16b   : > { %v765_v54 = vpop.f32.mrb[50].mxu0 }
 0x16c   : > { %v889_v55 = vmax.f32 %v763_v52, 0.0  ;;  %v766_v56 = vadd.f32 %v1724_v63, %v765_v54  ;;  %v767_v57 = vpop.f32.mrb[51].mxu0 }
 0x16e   : > { %v1395_v58 = vpack.c.bf16 %v889_v55, %v889_v55  ;;  %v890_v59 = vmax.f32 %v766_v56, 0.0 }
 0x170   : > { %1140 = vst.msk [vmem:[%s1734_s16 + $0x60] sm:$0xf] %vm1115_vm1, %v1395_v58  ;;  %v1396_v60 = vpack.c.bf16 %v890_v59, %v890_v59 }
 0x172   : > { %1141 = vst.msk [vmem:[%s1734_s16 + $0x64] sm:$0xf] %vm1115_vm1, %v1396_v60 }
 0x173 PF: > { %s13_s12 = sadd.s32 1, %s1547_s12  }
 0x174   : > { %p10_p4 = scmp.ge.s32.totalorder %s13_s12, 4  }
 0x176   :  { %12 = sbr.rel (!%p10_p4) target bundleno = 1 (0x1), region = 62 }

// kernel: conv_q_network_forward.5
= control target key start
LH: loop header
LB: loop body
LE: loop exit
PB: predicated region body
PF: predicated region fallthrough
CT: control target
= control target key end

     0   :  { %s1578_s12 = smov 0   ;;  %s1580_s13 = smov 0   ;;  %s1840_s0 = inlined_call_operand.vmem [shape: bf16[162,512], index: 0, kind: input, shape index: {}]   ;;  %s1841_s1 = inlined_call_operand.vmem [shape: bf16[512,64], index: 1, kind: input, shape index: {}]   ;;  %s1842_s2 = inlined_call_operand.vmem [shape: f32[1,64], index: 2, kind: input, shape index: {}]   ;;  %s1843_s3 = inlined_call_operand.vmem [shape: bf16[162,64], index: 3, kind: output, shape index: {}]  }
   0x1   :  { %s1582_s14 = smov 0  }
   0x2 LB: > { %s1591_s15 = sadd.s32 4294967295, %s1524_s14   ;;  %s1593_s16 = sadd.s32 1, %s1524_s14   ;;  %s1524_s14 = sphi %s1582_s14, %s1850_s14   ;;  %s1520_s13 = sphi %s1580_s13, %s1849_s13   ;;  %s1516_s12 = sphi %s1578_s12, %s1848_s12  }
   0x3   : > { %s85_s17 = ssub.s32 %s1524_s14, %s1593_s16  ;;  %s88_s18 = sadd.s32 1, %s1520_s13 }
   0x4   : > { %p86_p0 = scmp.eq.s32.totalorder %s85_s17, 0  ;;  %p98_p1 = scmp.ne.s32.totalorder %s1520_s13, %s1516_s12 }
   0x5   : > { %p99_p2 = scmp.eq.s32.totalorder %s1591_s15, 1  ;;  %p1106_p3 = scmp.ge.s32.totalorder %s1524_s14, 1 }
   0x6   : > { %s1601_s19 = scalar_select %p86_p0, %s1520_s13, %s88_s18  }
   0x7   : > { %p1603_p4 = por %p99_p2, %p98_p1  ;;  %p149_p5 = scmp.lt.s32.totalorder %s1524_s14, 3 }
   0x9   : > { %p150_p6 = pnand %p1106_p3, %p149_p5 }
   0xa   : > { %v1398_v0 = vld [vmem:[%s1841_s1 + $0x40] sm:$0xff] (!%p150_p6)   ;;  %v1402_v4 = vld [vmem:[%s1841_s1 + $0x48] sm:$0xff] (!%p150_p6)   ;;  %v1406_v8 = vld [vmem:[%s1841_s1 + $0x50] sm:$0xff] (!%p150_p6)   ;;  %s1653_s30 = smul.u32 (!%p150_p6), 12, %s1591_s15  ;;  %s175_s5 = sand.u32 (!%p150_p6), 1, %s1516_s12   ;;  %vm830_vm0 = vcmask (!%p150_p6), 519168  }
   0xb   : > { %153 = sbr.rel (%p150_p6) target bundleno = 379 (0x17b), region = 32  ;;  %v1399_v1 = vld [vmem:[%s1841_s1 + $0xc0] sm:$0xff] (!%p150_p6)   ;;  %1204 = vmatprep.subr.bf16.mxu0 (!%p150_p6), %v1398_v0  ;;  %v1403_v5 = vld [vmem:[%s1841_s1 + $0xc8] sm:$0xff] (!%p150_p6)   ;;  %v1407_v9 = vld [vmem:[%s1841_s1 + $0xd0] sm:$0xff] (!%p150_p6)  }
   0xc   : > { %v1400_v2 = vld [vmem:[%s1841_s1] sm:$0xff] (!%p150_p6)   ;;  %1256 = vmatprep.subr.bf16.mxu1 (!%p150_p6), %v1399_v1  ;;  %v1404_v6 = vld [vmem:[%s1841_s1 + $0x8] sm:$0xff] (!%p150_p6)   ;;  %v1408_v10 = vld [vmem:[%s1841_s1 + $0x10] sm:$0xff] (!%p150_p6)   ;;  %p184_p7 = scmp.lt.s32.totalorder (!%p150_p6), %s1653_s30, 20  ;;  %s1308_s6 = smul.u32 (!%p150_p6), 48, %s175_s5 }
   0xd   : > { %v1401_v3 = vld [vmem:[%s1841_s1 + $0x80] sm:$0xff] (!%p150_p6)   ;;  %1205 = vmatpush3.bf16.msra.mxu0 (!%p150_p6), %v1400_v2  ;;  %v1405_v7 = vld [vmem:[%s1841_s1 + $0x88] sm:$0xff] (!%p150_p6)   ;;  %v1409_v11 = vld [vmem:[%s1841_s1 + $0x90] sm:$0xff] (!%p150_p6)  }
   0xe   : > { %1257 = vmatpush3.bf16.msra.mxu1 (!%p150_p6), %v1401_v3  ;;  %1206 = vmatprep.subr.bf16.mxu0 (!%p150_p6), %v1402_v4  ;;  %v1410_v12 = vld [vmem:[%s1841_s1 + $0x58] sm:$0xff] (!%p150_p6)   ;;  %v1414_v16 = vld [vmem:[%s1841_s1 + $0x60] sm:$0xff] (!%p150_p6)   ;;  %v1418_v20 = vld [vmem:[%s1841_s1 + $0x68] sm:$0xff] (!%p150_p6)   ;;  %s1745_s12 = scalar_lea.vmem (!%p150_p6), [#allocation2], %s1308_s6  }
   0xf   : > { %1258 = vmatprep.subr.bf16.mxu1 (!%p150_p6), %v1403_v5  ;;  %v1411_v13 = vld [vmem:[%s1841_s1 + $0xd8] sm:$0xff] (!%p150_p6)   ;;  %v1415_v17 = vld [vmem:[%s1841_s1 + $0xe0] sm:$0xff] (!%p150_p6)   ;;  %v1419_v21 = vld [vmem:[%s1841_s1 + $0xe8] sm:$0xff] (!%p150_p6)  }
  0x10   : > { %v1412_v14 = vld [vmem:[%s1841_s1 + $0x18] sm:$0xff] (!%p150_p6)   ;;  %v1416_v18 = vld [vmem:[%s1841_s1 + $0x20] sm:$0xff] (!%p150_p6)   ;;  %v1420_v22 = vld [vmem:[%s1841_s1 + $0x28] sm:$0xff] (!%p150_p6)  }
  0x11   : > { %1207 = vmatpush3.bf16.msra.mxu0 (!%p150_p6), %v1404_v6  ;;  %v1413_v15 = vld [vmem:[%s1841_s1 + $0x98] sm:$0xff] (!%p150_p6)   ;;  %v1417_v19 = vld [vmem:[%s1841_s1 + $0xa0] sm:$0xff] (!%p150_p6)   ;;  %v1421_v23 = vld [vmem:[%s1841_s1 + $0xa8] sm:$0xff] (!%p150_p6)  }
  0x12   : > { %1259 = vmatpush3.bf16.msra.mxu1 %v1405_v7  ;;  %1208 = vmatprep.subr.bf16.mxu0 %v1406_v8  ;;  %s185_s26 = scalar_select %p184_p7, %s1653_s30, 20  ;;  %v1422_v24 = vld [vmem:[%s1841_s1 + $0x70] sm:$0xff]   ;;  %v1426_v28 = vld [vmem:[%s1841_s1 + $0x78] sm:$0xff]   ;;  %v1740_v58 = vld [vmem:[%s1842_s2] ss:$0 sm:$0xff] }
  0x13   : > { %1260 = vmatprep.subr.bf16.mxu1 %v1407_v9  ;;  %v1423_v25 = vld [vmem:[%s1841_s1 + $0xf0] sm:$0xff]   ;;  %v1427_v29 = vld [vmem:[%s1841_s1 + $0xf8] sm:$0xff]   ;;  %s851_s7 = ssub.s32 (%p1603_p4), 21, %s1653_s30  ;;  %s1203_s8 = smul.u32 (%p1603_p4), 48, %s1591_s15 }
  0x14   : > { %v1424_v26 = vld [vmem:[%s1841_s1 + $0x30] sm:$0xff]   ;;  %s1190_s9 = sshll.u32 %s185_s26, 4  ;;  %v1428_v30 = vld [vmem:[%s1841_s1 + $0x38] sm:$0xff]   ;;  %p852_p8 = scmp.lt.s32.totalorder (%p1603_p4), %s851_s7, 12 }
  0x15   : > { %1209 = vmatpush3.bf16.msra.mxu0 %v1408_v10  ;;  %v1425_v27 = vld [vmem:[%s1841_s1 + $0xb0] sm:$0xff]   ;;  %s1705_s24 = scalar_lea.vmem %s1840_s0, %s1190_s9  ;;  %v1429_v31 = vld [vmem:[%s1841_s1 + $0xb8] sm:$0xff]   ;;  %s1788_s11 = scalar_lea.vmem (%p1603_p4), %s1843_s3, %s1203_s8  }
  0x16   : > { %1261 = vmatpush3.bf16.msra.mxu1 %v1409_v11  ;;  %1210 = vmatprep.subr.bf16.mxu0 %v1410_v12  ;;  %v1430_v32 = vld [vmem:[%s1705_s24] ss:$16 sps:$4 sm:$0xff]   ;;  %v1432_v33 = vld [vmem:[%s1705_s24 + $0x4] ss:$16 sps:$4 sm:$0xff]   ;;  %v1433_v34 = vld [vmem:[%s1705_s24 + $0x8] ss:$16 sps:$4 sm:$0xff]  }
  0x17   : > { %1262 = vmatprep.subr.bf16.mxu1 %v1411_v13  ;;  %v1435_v35 = vld [vmem:[%s1705_s24 + $0xc] ss:$16 sps:$4 sm:$0xff]   ;;  %640 = vmatprep.mubr.bf16.mxu0 %v1432_v33  ;;  %v1436_v36 = vld [vmem:[%s1705_s24 + $0x24] ss:$16 sps:$4 sm:$0xff]   ;;  %v1440_v38 = vld [vmem:[%s1705_s24 + $0x20] ss:$16 sps:$4 sm:$0xff]  }
  0x18   : > { %721 = vmatprep.mubr.bf16.mxu1 %v1435_v35  ;;  %v1438_v37 = vld [vmem:[%s1705_s24 + $0x2c] ss:$16 sps:$4 sm:$0xff]   ;;  %v1441_v39 = vld [vmem:[%s1705_s24 + $0x28] ss:$16 sps:$4 sm:$0xff]   ;;  %v1442_v40 = vld [vmem:[%s1705_s24 + $0x44] ss:$16 sps:$4 sm:$0xff]  }
  0x19   : > { %1211 = vmatpush3.bf16.msra.mxu0 %v1412_v14  ;;  %v1444_v41 = vld [vmem:[%s1705_s24 + $0x4c] ss:$16 sps:$4 sm:$0xff]   ;;  %v1446_v42 = vld [vmem:[%s1705_s24 + $0x40] ss:$16 sps:$4 sm:$0xff]   ;;  %v1447_v43 = vld [vmem:[%s1705_s24 + $0x48] ss:$16 sps:$4 sm:$0xff]  }
  0x1a   : > { %1263 = vmatpush3.bf16.msra.mxu1 %v1413_v15  ;;  %1212 = vmatprep.subr.bf16.mxu0 %v1414_v16  ;;  %v1448_v44 = vld [vmem:[%s1705_s24 + $0x64] ss:$16 sps:$4 sm:$0xff]   ;;  %v1450_v45 = vld [vmem:[%s1705_s24 + $0x6c] ss:$16 sps:$4 sm:$0xff]   ;;  %v1452_v46 = vld [vmem:[%s1705_s24 + $0x60] ss:$16 sps:$4 sm:$0xff]  }
  0x1b   : > { %1264 = vmatprep.subr.bf16.mxu1 %v1415_v17  ;;  %v1453_v47 = vld [vmem:[%s1705_s24 + $0x68] ss:$16 sps:$4 sm:$0xff]   ;;  %v1454_v48 = vld [vmem:[%s1705_s24 + $0x84] ss:$16 sps:$4 sm:$0xff]   ;;  %v1456_v49 = vld [vmem:[%s1705_s24 + $0x8c] ss:$16 sps:$4 sm:$0xff]  }
  0x1c   : > { %v1458_v50 = vld [vmem:[%s1705_s24 + $0x80] ss:$16 sps:$4 sm:$0xff]   ;;  %v1459_v51 = vld [vmem:[%s1705_s24 + $0x88] ss:$16 sps:$4 sm:$0xff]   ;;  %v1460_v52 = vld [vmem:[%s1705_s24 + $0xa4] ss:$16 sps:$4 sm:$0xff]  }
  0x1d   : > { %1213 = vmatpush3.bf16.msra.mxu0 %v1416_v18  ;;  %v1462_v53 = vld [vmem:[%s1705_s24 + $0xac] ss:$16 sps:$4 sm:$0xff]   ;;  %v1464_v54 = vld [vmem:[%s1705_s24 + $0xa0] ss:$16 sps:$4 sm:$0xff]   ;;  %v1465_v55 = vld [vmem:[%s1705_s24 + $0xa8] ss:$16 sps:$4 sm:$0xff]  }
  0x1e   : > { %1265 = vmatpush3.bf16.msra.mxu1 %v1417_v19  ;;  %1214 = vmatprep.subr.bf16.mxu0 %v1418_v20 }
  0x1f   : > { %1266 = vmatprep.subr.bf16.mxu1 %v1419_v21 }
  0x21   : > { %1215 = vmatpush3.bf16.msra.mxu0 %v1420_v22 }
  0x22   : > { %1267 = vmatpush3.bf16.msra.mxu1 %v1421_v23  ;;  %1216 = vmatprep.subr.bf16.mxu0 %v1422_v24 }
  0x23   : > { %1268 = vmatprep.subr.bf16.mxu1 %v1423_v25 }
  0x25   : > { %1217 = vmatpush3.bf16.msra.mxu0 %v1424_v26 }
  0x26   : > { %1269 = vmatpush3.bf16.msra.mxu1 %v1425_v27  ;;  %1218 = vmatprep.subr.bf16.mxu0 %v1426_v28 }
  0x27   : > { %1270 = vmatprep.subr.bf16.mxu1 %v1427_v29 }
  0x29   : > { %1219 = vmatpush3.bf16.msra.mxu0 %v1428_v30 }
  0x2a   : > { %1271 = vmatpush3.bf16.msra.mxu1 %v1429_v31 }
  0x2c   : > { %641 = vmatmul.mubr.bf16.vlgmr.msra.gmra.mrb[0].mxu0 %v1430_v32 }
  0x2d   : > { %722 = vmatmul.mubr.bf16.vlgmr.msra.gmra.mrb[0].mxu1 %v1433_v34  ;;  %648 = vmatprep.mubr.bf16.mxu0 %v1436_v36 }
  0x2e   : > { %729 = vmatprep.mubr.bf16.mxu1 %v1438_v37 }
  0x34   : > { %649 = vmatmul.mubr.bf16.gmra.mrb[4].mxu0 %v1440_v38 }
  0x35   : > { %730 = vmatmul.mubr.bf16.gmra.mrb[4].mxu1 %v1441_v39  ;;  %656 = vmatprep.mubr.bf16.mxu0 %v1442_v40 }
  0x36   : > { %737 = vmatprep.mubr.bf16.mxu1 %v1444_v41 }
  0x3c   : > { %657 = vmatmul.mubr.bf16.gmra.mrb[8].mxu0 %v1446_v42 }
  0x3d   : > { %738 = vmatmul.mubr.bf16.gmra.mrb[8].mxu1 %v1447_v43  ;;  %664 = vmatprep.mubr.bf16.mxu0 %v1448_v44 }
  0x3e   : > { %745 = vmatprep.mubr.bf16.mxu1 %v1450_v45 }
  0x44   : > { %665 = vmatmul.mubr.bf16.gmra.mrb[12].mxu0 %v1452_v46 }
  0x45   : > { %746 = vmatmul.mubr.bf16.gmra.mrb[12].mxu1 %v1453_v47  ;;  %672 = vmatprep.mubr.bf16.mxu0 %v1454_v48 }
  0x46   : > { %753 = vmatprep.mubr.bf16.mxu1 %v1456_v49 }
  0x4c   : > { %673 = vmatmul.mubr.bf16.gmra.mrb[16].mxu0 %v1458_v50 }
  0x4d   : > { %754 = vmatmul.mubr.bf16.gmra.mrb[16].mxu1 %v1459_v51  ;;  %680 = vmatprep.mubr.bf16.mxu0 %v1460_v52 }
  0x4e   : > { %761 = vmatprep.mubr.bf16.mxu1 %v1462_v53 }
  0x54   : > { %681 = vmatmul.mubr.bf16.gmra.mrb[20].mxu0 %v1464_v54 }
  0x55   : > { %762 = vmatmul.mubr.bf16.gmra.mrb[20].mxu1 %v1465_v55 }
  0xff   : > { %v1220_v56 = vpop.f32.mrb[0].mxu0 }
 0x100   : > { %v1272_v57 = vpop.f32.mrb[0].mxu1  ;;  %v1221_v59 = vpop.f32.mrb[1].mxu0 }
 0x101   : > { %v1222_v60 = vadd.f32 %v1221_v59, %v1220_v56  ;;  %v1273_v61 = vpop.f32.mrb[1].mxu1  ;;  %v1223_v62 = vpop.f32.mrb[2].mxu0 }
 0x102   : > { %v1274_v63 = vadd.f32 %v1273_v61, %v1272_v57  ;;  %v1275_v0 = vpop.f32.mrb[2].mxu1  ;;  %v1224_v1 = vpop.f32.mrb[3].mxu0 }
 0x103   : > { %v643_v2 = vadd.f32 %v1222_v60, %v1740_v58  ;;  %v1225_v3 = vadd.f32 %v1224_v1, %v1223_v62  ;;  %v1276_v4 = vpop.f32.mrb[3].mxu1 }
 0x104   : > { %v1277_v5 = vadd.f32 %v1276_v4, %v1275_v0 }
 0x105   : > { %v724_v6 = vadd.f32 %v1274_v63, %v643_v2  ;;  %v646_v7 = vadd.f32 %v1225_v3, %v1740_v58 }
 0x107   : > { %v770_v8 = vmax.f32 %v724_v6, 0.0  ;;  %v727_v9 = vadd.f32 %v1277_v5, %v646_v7  ;;  %v1226_v10 = vpop.f32.mrb[4].mxu0 }
 0x108   : > { %v1278_v11 = vpop.f32.mrb[4].mxu1  ;;  %v1227_v12 = vpop.f32.mrb[5].mxu0 }
 0x109   : > { %v1191_v13 = vpack.c.bf16 %v770_v8, %v770_v8  ;;  %v771_v14 = vmax.f32 %v727_v9, 0.0  ;;  %v1228_v15 = vadd.f32 %v1227_v12, %v1226_v10  ;;  %v1279_v16 = vpop.f32.mrb[5].mxu1  ;;  %v1229_v17 = vpop.f32.mrb[6].mxu0 }
 0x10a   : > { %v1280_v18 = vadd.f32 %v1279_v16, %v1278_v11  ;;  %v1281_v19 = vpop.f32.mrb[6].mxu1  ;;  %v1230_v20 = vpop.f32.mrb[7].mxu0 }
 0x10b   : > { %831 = vst.msk [vmem:[%s1745_s12] sm:$0xf] %vm830_vm0, %v1191_v13  ;;  %v1192_v21 = vpack.c.bf16 %v771_v14, %v771_v14  ;;  %v651_v22 = vadd.f32 %v1228_v15, %v1740_v58  ;;  %v1231_v23 = vadd.f32 %v1230_v20, %v1229_v17  ;;  %v1282_v24 = vpop.f32.mrb[7].mxu1 }
 0x10c   : > { %v1283_v25 = vadd.f32 %v1282_v24, %v1281_v19 }
 0x10d   : > { %832 = vst.msk [vmem:[%s1745_s12 + $0x4] sm:$0xf] %vm830_vm0, %v1192_v21  ;;  %v732_v26 = vadd.f32 %v1280_v18, %v651_v22  ;;  %v654_v27 = vadd.f32 %v1231_v23, %v1740_v58 }
 0x10f   : > { %v772_v28 = vmax.f32 %v732_v26, 0.0  ;;  %v735_v29 = vadd.f32 %v1283_v25, %v654_v27  ;;  %v1232_v30 = vpop.f32.mrb[8].mxu0 }
 0x110   : > { %v1284_v31 = vpop.f32.mrb[8].mxu1  ;;  %v1233_v32 = vpop.f32.mrb[9].mxu0 }
 0x111   : > { %v1193_v33 = vpack.c.bf16 %v772_v28, %v772_v28  ;;  %v773_v34 = vmax.f32 %v735_v29, 0.0  ;;  %v1234_v35 = vadd.f32 %v1233_v32, %v1232_v30  ;;  %v1285_v36 = vpop.f32.mrb[9].mxu1  ;;  %v1235_v37 = vpop.f32.mrb[10].mxu0 }
 0x112   : > { %v1286_v38 = vadd.f32 %v1285_v36, %v1284_v31  ;;  %v1287_v39 = vpop.f32.mrb[10].mxu1  ;;  %v1236_v40 = vpop.f32.mrb[11].mxu0 }
 0x113   : > { %833 = vst.msk [vmem:[%s1745_s12 + $0x8] sm:$0xf] %vm830_vm0, %v1193_v33  ;;  %v1194_v41 = vpack.c.bf16 %v773_v34, %v773_v34  ;;  %v659_v42 = vadd.f32 %v1234_v35, %v1740_v58  ;;  %v1237_v43 = vadd.f32 %v1236_v40, %v1235_v37  ;;  %v1288_v44 = vpop.f32.mrb[11].mxu1 }
 0x114   : > { %v1289_v45 = vadd.f32 %v1288_v44, %v1287_v39 }
 0x115   : > { %834 = vst.msk [vmem:[%s1745_s12 + $0xc] sm:$0xf] %vm830_vm0, %v1194_v41  ;;  %v740_v46 = vadd.f32 %v1286_v38, %v659_v42  ;;  %v662_v47 = vadd.f32 %v1237_v43, %v1740_v58 }
 0x117   : > { %v774_v48 = vmax.f32 %v740_v46, 0.0  ;;  %v743_v49 = vadd.f32 %v1289_v45, %v662_v47  ;;  %v1238_v50 = vpop.f32.mrb[12].mxu0 }
 0x118   : > { %v1290_v51 = vpop.f32.mrb[12].mxu1  ;;  %v1239_v52 = vpop.f32.mrb[13].mxu0 }
 0x119   : > { %v1195_v53 = vpack.c.bf16 %v774_v48, %v774_v48  ;;  %v775_v54 = vmax.f32 %v743_v49, 0.0  ;;  %v1240_v55 = vadd.f32 %v1239_v52, %v1238_v50  ;;  %v1291_v56 = vpop.f32.mrb[13].mxu1  ;;  %v1241_v57 = vpop.f32.mrb[14].mxu0 }
 0x11a   : > { %v1292_v59 = vadd.f32 %v1291_v56, %v1290_v51  ;;  %v1293_v60 = vpop.f32.mrb[14].mxu1  ;;  %v1242_v61 = vpop.f32.mrb[15].mxu0 }
 0x11b   : > { %835 = vst.msk [vmem:[%s1745_s12 + $0x10] sm:$0xf] %vm830_vm0, %v1195_v53  ;;  %v1196_v62 = vpack.c.bf16 %v775_v54, %v775_v54  ;;  %v667_v63 = vadd.f32 %v1240_v55, %v1740_v58  ;;  %v1243_v0 = vadd.f32 %v1242_v61, %v1241_v57  ;;  %v1294_v1 = vpop.f32.mrb[15].mxu1 }
 0x11c   : > { %v1295_v2 = vadd.f32 %v1294_v1, %v1293_v60 }
 0x11d   : > { %836 = vst.msk [vmem:[%s1745_s12 + $0x14] sm:$0xf] %vm830_vm0, %v1196_v62  ;;  %v748_v3 = vadd.f32 %v1292_v59, %v667_v63  ;;  %v670_v4 = vadd.f32 %v1243_v0, %v1740_v58 }
 0x11f   : > { %v776_v5 = vmax.f32 %v748_v3, 0.0  ;;  %v751_v6 = vadd.f32 %v1295_v2, %v670_v4  ;;  %v1244_v7 = vpop.f32.mrb[16].mxu0 }
 0x120   : > { %v1296_v8 = vpop.f32.mrb[16].mxu1  ;;  %v1245_v9 = vpop.f32.mrb[17].mxu0 }
 0x121   : > { %v1197_v10 = vpack.c.bf16 %v776_v5, %v776_v5  ;;  %v777_v11 = vmax.f32 %v751_v6, 0.0  ;;  %v1246_v12 = vadd.f32 %v1245_v9, %v1244_v7  ;;  %v1297_v13 = vpop.f32.mrb[17].mxu1  ;;  %v1247_v14 = vpop.f32.mrb[18].mxu0 }
 0x122   : > { %v1298_v15 = vadd.f32 %v1297_v13, %v1296_v8  ;;  %v1299_v16 = vpop.f32.mrb[18].mxu1  ;;  %v1248_v17 = vpop.f32.mrb[19].mxu0 }
 0x123   : > { %837 = vst.msk [vmem:[%s1745_s12 + $0x18] sm:$0xf] %vm830_vm0, %v1197_v10  ;;  %v1198_v18 = vpack.c.bf16 %v777_v11, %v777_v11  ;;  %v675_v19 = vadd.f32 %v1246_v12, %v1740_v58  ;;  %v1249_v20 = vadd.f32 %v1248_v17, %v1247_v14  ;;  %v1300_v21 = vpop.f32.mrb[19].mxu1 }
 0x124   : > { %v1301_v22 = vadd.f32 %v1300_v21, %v1299_v16 }
 0x125   : > { %838 = vst.msk [vmem:[%s1745_s12 + $0x1c] sm:$0xf] %vm830_vm0, %v1198_v18  ;;  %v756_v23 = vadd.f32 %v1298_v15, %v675_v19  ;;  %v678_v24 = vadd.f32 %v1249_v20, %v1740_v58 }
 0x127   : > { %v778_v25 = vmax.f32 %v756_v23, 0.0  ;;  %v759_v26 = vadd.f32 %v1301_v22, %v678_v24  ;;  %v1250_v27 = vpop.f32.mrb[20].mxu0 }
 0x128   : > { %v1302_v28 = vpop.f32.mrb[20].mxu1  ;;  %v1251_v29 = vpop.f32.mrb[21].mxu0 }
 0x129   : > { %v1199_v30 = vpack.c.bf16 %v778_v25, %v778_v25  ;;  %v779_v31 = vmax.f32 %v759_v26, 0.0  ;;  %v1252_v32 = vadd.f32 %v1251_v29, %v1250_v27  ;;  %v1303_v33 = vpop.f32.mrb[21].mxu1  ;;  %v1253_v34 = vpop.f32.mrb[22].mxu0 }
 0x12a   : > { %v1304_v35 = vadd.f32 %v1303_v33, %v1302_v28  ;;  %v1305_v36 = vpop.f32.mrb[22].mxu1  ;;  %v1254_v37 = vpop.f32.mrb[23].mxu0 }
 0x12b   : > { %839 = vst.msk [vmem:[%s1745_s12 + $0x20] sm:$0xf] %vm830_vm0, %v1199_v30  ;;  %v1200_v38 = vpack.c.bf16 %v779_v31, %v779_v31  ;;  %v683_v39 = vadd.f32 %v1252_v32, %v1740_v58  ;;  %v1255_v40 = vadd.f32 %v1254_v37, %v1253_v34  ;;  %v1306_v41 = vpop.f32.mrb[23].mxu1 }
 0x12c   : > { %v1307_v42 = vadd.f32 %v1306_v41, %v1305_v36 }
 0x12d   : > { %840 = vst.msk [vmem:[%s1745_s12 + $0x24] sm:$0xf] %vm830_vm0, %v1200_v38  ;;  %v764_v43 = vadd.f32 %v1304_v35, %v683_v39  ;;  %v686_v44 = vadd.f32 %v1255_v40, %v1740_v58 }
 0x12f   : > { %v780_v45 = vmax.f32 %v764_v43, 0.0  ;;  %v767_v46 = vadd.f32 %v1307_v42, %v686_v44  ;;  %849 = sbr.rel (!%p1603_p4) target bundleno = 379 (0x17b), region = 36 }
 0x131   : > { %v1201_v47 = vpack.c.bf16 %v780_v45, %v780_v45  ;;  %v781_v48 = vmax.f32 %v767_v46, 0.0 }
 0x133   : > { %841 = vst.msk [vmem:[%s1745_s12 + $0x28] sm:$0xf] %vm830_vm0, %v1201_v47  ;;  %v1202_v49 = vpack.c.bf16 %v781_v48, %v781_v48 }
 0x135   : > { %842 = vst.msk [vmem:[%s1745_s12 + $0x2c] sm:$0xf] %vm830_vm0, %v1202_v49 }
 0x136   : > { %s1852_s7 = smov (!%p852_p8, %s851_s7), 12 }
 0x137   : > { %s1178_s14 = sshll.u32 %s1852_s7, 6 }
 0x138   : > { %p1181_p9 = scmp.eq.s32.totalorder %s1178_s14, 0 }
 0x139   : > { %1466 = sdivrem.u32 (!%p1181_p9), %s1852_s7, 12 }
 0x13a   : > { %860 = sbr.rel (%p1181_p9) target bundleno = 379 (0x17b), region = 40 }
 0x142   : > { %s1794_s20 = spop.drf %1466 }
 0x143   : > { %p1182_p10 = scmp.le.s32.totalorder %s1794_s20, 0 }
 0x144   : > { %s1845_s15 = smov (!%p1182_p10), %s1788_s11  ;;  %s1846_s30 = smov (!%p1182_p10), %s1745_s12 }
 0x145   : > { %1059 = sbr.rel (%p1182_p10) target bundleno = 350 (0x15e), region = 112  ;;  %s1803_s17 = smov (!%p1182_p10), 0  }
 0x146   : > { %s1805_s18 = smov (!%p1182_p10), 0  }
 0x14c LB: >> { %v877_v58 = vld [vmem:[%s1532_s30] sm:$0xf]  ;;  %v879_v50 = vld [vmem:[%s1532_s30 + $0x4] sm:$0xf]  ;;  %v881_v51 = vld [vmem:[%s1532_s30 + $0x8] sm:$0xf]  ;;  %s1540_s18 = sphi %s1805_s18, %s871_s18   ;;  %s1536_s17 = sphi %s1803_s17, %s1847_s17   ;;  %s1532_s30 = sphi %s1846_s30, %s906_s30   ;;  %s1528_s15 = sphi %s1845_s15, %s907_s15  }
 0x14d   : >> { %878 = vst [vmem:[%s1528_s15] sm:$0xf] %v877_v58  ;;  %880 = vst [vmem:[%s1528_s15 + $0x4] sm:$0xf] %v879_v50  ;;  %v883_v52 = vld [vmem:[%s1532_s30 + $0xc] sm:$0xf]  ;;  %s901_s21 = sadd.s32 1, %s1536_s17 }
 0x14e   : >> { %882 = vst [vmem:[%s1528_s15 + $0x8] sm:$0xf] %v881_v51  ;;  %v885_v53 = vld [vmem:[%s1532_s30 + $0x10] sm:$0xf]  ;;  %v887_v54 = vld [vmem:[%s1532_s30 + $0x14] sm:$0xf]  ;;  %p902_p11 = scmp.ge.s32.totalorder %s901_s21, %s1794_s20 }
 0x14f   : >> { %884 = vst [vmem:[%s1528_s15 + $0xc] sm:$0xf] %v883_v52  ;;  %886 = vst [vmem:[%s1528_s15 + $0x10] sm:$0xf] %v885_v53  ;;  %v889_v55 = vld [vmem:[%s1532_s30 + $0x18] sm:$0xf] }
 0x150   : >> { %888 = vst [vmem:[%s1528_s15 + $0x14] sm:$0xf] %v887_v54  ;;  %v891_v56 = vld [vmem:[%s1532_s30 + $0x1c] sm:$0xf]  ;;  %v893_v57 = vld [vmem:[%s1532_s30 + $0x20] sm:$0xf] }
 0x151   : >> { %890 = vst [vmem:[%s1528_s15 + $0x18] sm:$0xf] %v889_v55  ;;  %892 = vst [vmem:[%s1528_s15 + $0x1c] sm:$0xf] %v891_v56  ;;  %v895_v59 = vld [vmem:[%s1532_s30 + $0x24] sm:$0xf] }
 0x152   : >> { %894 = vst [vmem:[%s1528_s15 + $0x20] sm:$0xf] %v893_v57  ;;  %v897_v60 = vld [vmem:[%s1532_s30 + $0x28] sm:$0xf]  ;;  %v899_v61 = vld [vmem:[%s1532_s30 + $0x2c] sm:$0xf] }
 0x153   : >> { %896 = vst [vmem:[%s1528_s15 + $0x24] sm:$0xf] %v895_v59  ;;  %898 = vst [vmem:[%s1528_s15 + $0x28] sm:$0xf] %v897_v60  ;;  %s1854_s21 = smov (%p902_p11, %s901_s21), 0  ;;  %s871_s18 = sadd.s32 1, %s1540_s18  }
 0x154   : >> { %900 = vst [vmem:[%s1528_s15 + $0x2c] sm:$0xf] %v899_v61  ;;  %s904_s22 = smul.u32 48, %s1854_s21  ;;  %p870_p12 = scmp.ge.s32.totalorder %s871_s18, %s1794_s20 }
 0x155   : >> { %s1847_s17 = smov %s1854_s21 }
 0x156   : >> { %s906_s30 = scalar_lea.vmem %s1745_s12, %s904_s22 [#allocation2]   ;;  %s907_s15 = scalar_lea.vmem %s1788_s11, %s904_s22  }
 0x157   : > { %873 = sbr.rel (!%p870_p12) target bundleno = 332 (0x14c), region = 118 }
 0x15e PF: > { %1468 = sdivrem.u32 %s1852_s7, 12 }
 0x15f   : > { %s1183_s23 = smul.u32 48, %s1794_s20 }
 0x161   : > { %s912_s24 = scalar_lea.vmem %s1745_s12, %s1183_s23 [#allocation2]   ;;  %s914_s25 = scalar_lea.vmem %s1788_s11, %s1183_s23  }
 0x167   : > { %s1469_s26 = spop.drf %1468 }
 0x168   : > { %p1185_p13 = scmp.le.s32.totalorder %s1469_s26, 0 }
 0x169   : > { %s1542_s27 = smov (!%p1185_p13), %s914_s25   ;;  %s1546_s28 = smov (!%p1185_p13), %s912_s24  }
 0x16a   : > { %1073 = sbr.rel (%p1185_p13) target bundleno = 379 (0x17b), region = 123  ;;  %s1550_s29 = smov (!%p1185_p13), 0  }
 0x16b   : > { %s1554_s4 = smov (!%p1185_p13), 0  }
 0x171 LB: >> { %v924_v62 = vld [vmem:[%s1548_s28] sm:$0xf]  ;;  %s926_s5 = sadd.s32 1, %s1552_s29  ;;  %s918_s4 = sadd.s32 1, %s1556_s4   ;;  %s1556_s4 = sphi %s1554_s4, %s918_s4   ;;  %s1552_s29 = sphi %s1550_s29, %s1551_s29   ;;  %s1548_s28 = sphi %s1546_s28, %s931_s28   ;;  %s1544_s27 = sphi %s1542_s27, %s932_s27  }
 0x172   : >> { %925 = vst [vmem:[%s1544_s27] sm:$0xf] %v924_v62  ;;  %p927_p0 = scmp.ge.s32.totalorder %s926_s5, %s1469_s26  ;;  %p917_p1 = scmp.ge.s32.totalorder %s918_s4, %s1469_s26 }
 0x174   : >> { %s1856_s5 = smov (%p927_p0, %s926_s5), 0  ;;  %920 = sbr.rel (!%p917_p1) target bundleno = 369 (0x171), region = 129 }
 0x175   : >> { %s1186_s6 = sshll.u32 %s1856_s5, 2  ;;  %s1551_s29 = smov %s1856_s5  }
 0x176   : >> { %s931_s28 = scalar_lea.vmem %s912_s24, %s1186_s6 [#allocation2]   ;;  %s932_s27 = scalar_lea.vmem %s914_s25, %s1186_s6  }
 0x17b PF: > { %p10_p2 = scmp.ge.s32.totalorder %s1593_s16, 4   ;;  %s1848_s12 = smov %s1520_s13 }
 0x17c   : > { %s1849_s13 = smov %s1601_s19  ;;  %s1850_s14 = smov %s1593_s16 }
 0x17d   :  { %12 = sbr.rel (!%p10_p2) target bundleno = 2 (0x2), region = 140 }

// kernel: conv_q_network_forward.6
= control target key start
LH: loop header
LB: loop body
LE: loop exit
PB: predicated region body
PF: predicated region fallthrough
CT: control target
= control target key end

     0   :  { %s1596_s12 = smov 0   ;;  %s1598_s13 = smov 0   ;;  %s1849_s0 = inlined_call_operand.vmem [shape: bf16[98,576], index: 0, kind: input, shape index: {}]   ;;  %s1850_s1 = inlined_call_operand.vmem [shape: bf16[576,64], index: 1, kind: input, shape index: {}]   ;;  %s1851_s2 = inlined_call_operand.vmem [shape: f32[1,64], index: 2, kind: input, shape index: {}]   ;;  %s1852_s3 = inlined_call_operand.vmem [shape: bf16[98,64], index: 3, kind: output, shape index: {}]  }
   0x1   :  { %s1600_s14 = smov 0  }
   0x2 LB: > { %s1609_s15 = sadd.s32 4294967295, %s1542_s14   ;;  %s1611_s16 = sadd.s32 1, %s1542_s14   ;;  %s1542_s14 = sphi %s1600_s14, %s1859_s14   ;;  %s1538_s13 = sphi %s1598_s13, %s1858_s13   ;;  %s1534_s12 = sphi %s1596_s12, %s1857_s12  }
   0x3   : > { %s85_s17 = ssub.s32 %s1542_s14, %s1611_s16  ;;  %s88_s18 = sadd.s32 1, %s1538_s13 }
   0x4   : > { %p86_p0 = scmp.eq.s32.totalorder %s85_s17, 0  ;;  %p98_p1 = scmp.ne.s32.totalorder %s1538_s13, %s1534_s12 }
   0x5   : > { %p99_p2 = scmp.eq.s32.totalorder %s1609_s15, 1  ;;  %p1122_p3 = scmp.ge.s32.totalorder %s1542_s14, 1 }
   0x6   : > { %s1619_s19 = scalar_select %p86_p0, %s1538_s13, %s88_s18  }
   0x7   : > { %p1621_p4 = por %p99_p2, %p98_p1  ;;  %p149_p5 = scmp.lt.s32.totalorder %s1542_s14, 3 }
   0x9   : > { %p150_p6 = pnand %p1122_p3, %p149_p5 }
   0xa   : > { %v1424_v0 = vld [vmem:[%s1850_s1 + $0x40] sm:$0xff] (!%p150_p6)   ;;  %v1428_v4 = vld [vmem:[%s1850_s1 + $0x48] sm:$0xff] (!%p150_p6)   ;;  %v1432_v8 = vld [vmem:[%s1850_s1 + $0x50] sm:$0xff] (!%p150_p6)   ;;  %s1671_s30 = sshll.u32 (!%p150_p6), %s1609_s15, 3  ;;  %vm620_vm0 = vcmask (!%p150_p6), 523264   ;;  %s175_s17 = sand.u32 (!%p150_p6), 1, %s1534_s12  }
   0xb   : > { %153 = sbr.rel (%p150_p6) target bundleno = 353 (0x161), region = 32  ;;  %v1425_v1 = vld [vmem:[%s1850_s1 + $0xc0] sm:$0xff] (!%p150_p6)   ;;  %1223 = vmatprep.subr.bf16.mxu0 (!%p150_p6), %v1424_v0  ;;  %v1429_v5 = vld [vmem:[%s1850_s1 + $0xc8] sm:$0xff] (!%p150_p6)   ;;  %v1433_v9 = vld [vmem:[%s1850_s1 + $0xd0] sm:$0xff] (!%p150_p6)   ;;  %p184_p7 = scmp.lt.s32.totalorder (!%p150_p6), %s1671_s30, 12  ;;  %vm868_vm1 = vcmask (!%p150_p6), 519168  }
   0xc   : > { %v1426_v2 = vld [vmem:[%s1850_s1] sm:$0xff] (!%p150_p6)   ;;  %1263 = vmatprep.subr.bf16.mxu1 (!%p150_p6), %v1425_v1  ;;  %v1430_v6 = vld [vmem:[%s1850_s1 + $0x8] sm:$0xff] (!%p150_p6)   ;;  %v1434_v10 = vld [vmem:[%s1850_s1 + $0x10] sm:$0xff] (!%p150_p6)   ;;  %s1123_s18 = sshll.u32 (!%p150_p6), %s175_s17, 5 }
   0xd   : > { %v1427_v3 = vld [vmem:[%s1850_s1 + $0x80] sm:$0xff] (!%p150_p6)   ;;  %1224 = vmatpush3.bf16.msra.mxu0 (!%p150_p6), %v1426_v2  ;;  %v1431_v7 = vld [vmem:[%s1850_s1 + $0x88] sm:$0xff] (!%p150_p6)   ;;  %v1435_v11 = vld [vmem:[%s1850_s1 + $0x90] sm:$0xff] (!%p150_p6)   ;;  %s1770_s12 = scalar_lea.vmem (!%p150_p6), [#allocation2], %s1123_s18  }
   0xe   : > { %1264 = vmatpush3.bf16.msra.mxu1 (!%p150_p6), %v1427_v3  ;;  %1225 = vmatprep.subr.bf16.mxu0 (!%p150_p6), %v1428_v4  ;;  %v1436_v12 = vld [vmem:[%s1850_s1 + $0x58] sm:$0xff] (!%p150_p6)   ;;  %v1440_v16 = vld [vmem:[%s1850_s1 + $0x60] sm:$0xff] (!%p150_p6)   ;;  %v1444_v20 = vld [vmem:[%s1850_s1 + $0x68] sm:$0xff] (!%p150_p6)  }
   0xf   : > { %1265 = vmatprep.subr.bf16.mxu1 (!%p150_p6), %v1429_v5  ;;  %v1437_v13 = vld [vmem:[%s1850_s1 + $0xd8] sm:$0xff] (!%p150_p6)   ;;  %v1441_v17 = vld [vmem:[%s1850_s1 + $0xe0] sm:$0xff] (!%p150_p6)   ;;  %v1445_v21 = vld [vmem:[%s1850_s1 + $0xe8] sm:$0xff] (!%p150_p6)  }
  0x10   : > { %v1438_v14 = vld [vmem:[%s1850_s1 + $0x18] sm:$0xff] (!%p150_p6)   ;;  %v1442_v18 = vld [vmem:[%s1850_s1 + $0x20] sm:$0xff] (!%p150_p6)   ;;  %v1446_v22 = vld [vmem:[%s1850_s1 + $0x28] sm:$0xff] (!%p150_p6)  }
  0x11   : > { %1226 = vmatpush3.bf16.msra.mxu0 (!%p150_p6), %v1430_v6  ;;  %v1439_v15 = vld [vmem:[%s1850_s1 + $0x98] sm:$0xff] (!%p150_p6)   ;;  %v1443_v19 = vld [vmem:[%s1850_s1 + $0xa0] sm:$0xff] (!%p150_p6)   ;;  %v1447_v23 = vld [vmem:[%s1850_s1 + $0xa8] sm:$0xff] (!%p150_p6)  }
  0x12   : > { %1266 = vmatpush3.bf16.msra.mxu1 %v1431_v7  ;;  %1227 = vmatprep.subr.bf16.mxu0 %v1432_v8  ;;  %s185_s24 = scalar_select %p184_p7, %s1671_s30, 12  ;;  %v1448_v24 = vld [vmem:[%s1850_s1 + $0x70] sm:$0xff]   ;;  %v1452_v28 = vld [vmem:[%s1850_s1 + $0x78] sm:$0xff]   ;;  %v1462_v36 = vld [vmem:[%s1850_s1 + $0x100] sm:$0xff]  }
  0x13   : > { %1267 = vmatprep.subr.bf16.mxu1 %v1433_v9  ;;  %v1449_v25 = vld [vmem:[%s1850_s1 + $0xf0] sm:$0xff]   ;;  %v1453_v29 = vld [vmem:[%s1850_s1 + $0xf8] sm:$0xff]   ;;  %v1469_v39 = vld [vmem:[%s1850_s1 + $0x108] sm:$0xff]   ;;  %s885_s21 = ssub.s32 (%p1621_p4), 13, %s1671_s30  ;;  %s1220_s22 = sshll.u32 (%p1621_p4), %s1609_s15, 5 }
  0x14   : > { %s1335_s7 = smul.u32 20, %s185_s24  ;;  %v1450_v26 = vld [vmem:[%s1850_s1 + $0x30] sm:$0xff]   ;;  %v1454_v30 = vld [vmem:[%s1850_s1 + $0x38] sm:$0xff]   ;;  %v1126_v58 = vld [vmem:[%s1851_s2] ss:$0 sm:$0xff]  ;;  %p886_p8 = scmp.lt.s32.totalorder (%p1621_p4), %s885_s21, 8 }
  0x15   : > { %1228 = vmatpush3.bf16.msra.mxu0 %v1434_v10  ;;  %v1451_v27 = vld [vmem:[%s1850_s1 + $0xb0] sm:$0xff]   ;;  %v1455_v31 = vld [vmem:[%s1850_s1 + $0xb8] sm:$0xff]   ;;  %s1795_s25 = scalar_lea.vmem (%p1621_p4), %s1852_s3, %s1220_s22  }
  0x16   : > { %1268 = vmatpush3.bf16.msra.mxu1 %v1435_v11  ;;  %1229 = vmatprep.subr.bf16.mxu0 %v1436_v12  ;;  %s1723_s24 = scalar_lea.vmem %s1849_s0, %s1335_s7  ;;  %v1476_v44 = vld [vmem:[%s1850_s1 + $0x110] sm:$0xff]   ;;  %v1483_v45 = vld [vmem:[%s1850_s1 + $0x118] sm:$0xff]  }
  0x17   : > { %1269 = vmatprep.subr.bf16.mxu1 %v1437_v13  ;;  %v1456_v32 = vld [vmem:[%s1723_s24] ss:$20 sps:$4 sm:$0xff]   ;;  %v1458_v33 = vld [vmem:[%s1723_s24 + $0x4] ss:$20 sps:$4 sm:$0xff]   ;;  %v1459_v34 = vld [vmem:[%s1723_s24 + $0x8] ss:$20 sps:$4 sm:$0xff]  }
  0x18   : > { %v1461_v35 = vld [vmem:[%s1723_s24 + $0xc] ss:$20 sps:$4 sm:$0xff]   ;;  %665 = vmatprep.mubr.bf16.mxu0 %v1458_v33  ;;  %v1465_v38 = vld [vmem:[%s1723_s24 + $0x34] ss:$20 sps:$4 sm:$0xff]   ;;  %v1468_v41 = vld [vmem:[%s1723_s24 + $0x30] ss:$20 sps:$4 sm:$0xff]  }
  0x19   : > { %1230 = vmatpush3.bf16.msra.mxu0 %v1438_v14  ;;  %730 = vmatprep.mubr.bf16.mxu1 %v1461_v35  ;;  %v1463_v37 = vld [vmem:[%s1723_s24 + $0x2c] ss:$20 sps:$4 sm:$0xff]   ;;  %v1467_v40 = vld [vmem:[%s1723_s24 + $0x28] ss:$20 sps:$4 sm:$0xff]   ;;  %v1474_v46 = vld [vmem:[%s1723_s24 + $0x50] ss:$20 sps:$4 sm:$0xff]  }
  0x1a   : > { %1270 = vmatpush3.bf16.msra.mxu1 %v1439_v15  ;;  %1231 = vmatprep.subr.bf16.mxu0 %v1440_v16  ;;  %v1470_v42 = vld [vmem:[%s1723_s24 + $0x54] ss:$20 sps:$4 sm:$0xff]   ;;  %v1472_v43 = vld [vmem:[%s1723_s24 + $0x5c] ss:$20 sps:$4 sm:$0xff]   ;;  %v1475_v47 = vld [vmem:[%s1723_s24 + $0x58] ss:$20 sps:$4 sm:$0xff]  }
  0x1b   : > { %1271 = vmatprep.subr.bf16.mxu1 %v1441_v17  ;;  %v1477_v48 = vld [vmem:[%s1723_s24 + $0x7c] ss:$20 sps:$4 sm:$0xff]   ;;  %v1479_v49 = vld [vmem:[%s1723_s24 + $0x84] ss:$20 sps:$4 sm:$0xff]   ;;  %v1482_v51 = vld [vmem:[%s1723_s24 + $0x80] ss:$20 sps:$4 sm:$0xff]  }
  0x1c   : > { %v1481_v50 = vld [vmem:[%s1723_s24 + $0x78] ss:$20 sps:$4 sm:$0xff]   ;;  %v1484_v52 = vld [vmem:[%s1723_s24 + $0x10] ss:$20 sps:$4 sm:$0xff]   ;;  %v1485_v53 = vld [vmem:[%s1723_s24 + $0x60] ss:$20 sps:$4 sm:$0xff]  }
  0x1d   : > { %1232 = vmatpush3.bf16.msra.mxu0 %v1442_v18  ;;  %v1486_v54 = vld [vmem:[%s1723_s24 + $0x38] ss:$20 sps:$4 sm:$0xff]   ;;  %v1487_v55 = vld [vmem:[%s1723_s24 + $0x88] ss:$20 sps:$4 sm:$0xff]  }
  0x1e   : > { %1272 = vmatpush3.bf16.msra.mxu1 %v1443_v19  ;;  %1233 = vmatprep.subr.bf16.mxu0 %v1444_v20 }
  0x1f   : > { %1273 = vmatprep.subr.bf16.mxu1 %v1445_v21 }
  0x21   : > { %1234 = vmatpush3.bf16.msra.mxu0 %v1446_v22 }
  0x22   : > { %1274 = vmatpush3.bf16.msra.mxu1 %v1447_v23  ;;  %1235 = vmatprep.subr.bf16.mxu0 %v1448_v24 }
  0x23   : > { %1275 = vmatprep.subr.bf16.mxu1 %v1449_v25 }
  0x25   : > { %1236 = vmatpush3.bf16.msra.mxu0 %v1450_v26 }
  0x26   : > { %1276 = vmatpush3.bf16.msra.mxu1 %v1451_v27  ;;  %1237 = vmatprep.subr.bf16.mxu0 %v1452_v28 }
  0x27   : > { %1277 = vmatprep.subr.bf16.mxu1 %v1453_v29 }
  0x29   : > { %1238 = vmatpush3.bf16.msra.mxu0 %v1454_v30 }
  0x2a   : > { %1278 = vmatpush3.bf16.msra.mxu1 %v1455_v31  ;;  %1311 = vmatprep.subr.bf16.mxu0 %v1462_v36 }
  0x2b   : > { %1327 = vmatprep.subr.bf16.mxu1 %v1462_v36 }
  0x2c   : > { %666 = vmatmul.mubr.bf16.vlgmr.msra.gmra.mrb[0].mxu0 %v1456_v32 }
  0x2d   : > { %731 = vmatmul.mubr.bf16.vlgmr.msra.gmra.mrb[0].mxu1 %v1459_v34  ;;  %1312 = vmatpush3.bf16.msra.mxu0 %v1462_v36 }
  0x2e   : > { %1331 = vmatpush3.bf16.msra.mxu1 %v1462_v36  ;;  %673 = vmatprep.mubr.bf16.mxu0 %v1463_v37 }
  0x2f   : > { %738 = vmatprep.mubr.bf16.mxu1 %v1465_v38  ;;  %1313 = vmatprep.subr.bf16.mxu0 %v1469_v39 }
  0x30   : > { %1328 = vmatprep.subr.bf16.mxu1 %v1469_v39 }
  0x31   : > { %1314 = vmatpush3.bf16.msra.mxu0 %v1469_v39 }
  0x32   : > { %1332 = vmatpush3.bf16.msra.mxu1 %v1469_v39  ;;  %1315 = vmatprep.subr.bf16.mxu0 %v1476_v44 }
  0x33   : > { %1329 = vmatprep.subr.bf16.mxu1 %v1476_v44 }
  0x34   : > { %674 = vmatmul.mubr.bf16.gmra.mrb[4].mxu0 %v1467_v40 }
  0x35   : > { %739 = vmatmul.mubr.bf16.gmra.mrb[4].mxu1 %v1468_v41  ;;  %681 = vmatprep.mubr.bf16.mxu0 %v1470_v42 }
  0x36   : > { %746 = vmatprep.mubr.bf16.mxu1 %v1472_v43  ;;  %1316 = vmatpush3.bf16.msra.mxu0 %v1476_v44 }
  0x37   : > { %1333 = vmatpush3.bf16.msra.mxu1 %v1476_v44  ;;  %1317 = vmatprep.subr.bf16.mxu0 %v1483_v45 }
  0x38   : > { %1330 = vmatprep.subr.bf16.mxu1 %v1483_v45 }
  0x3a   : > { %1318 = vmatpush3.bf16.msra.mxu0 %v1483_v45 }
  0x3b   : > { %1334 = vmatpush3.bf16.msra.mxu1 %v1483_v45 }
  0x3c   : > { %682 = vmatmul.mubr.bf16.gmra.mrb[8].mxu0 %v1474_v46 }
  0x3d   : > { %747 = vmatmul.mubr.bf16.gmra.mrb[8].mxu1 %v1475_v47  ;;  %689 = vmatprep.mubr.bf16.mxu0 %v1477_v48 }
  0x3e   : > { %754 = vmatprep.mubr.bf16.mxu1 %v1479_v49 }
  0x44   : > { %690 = vmatmul.mubr.bf16.gmra.mrb[12].mxu0 %v1481_v50 }
  0x45   : > { %755 = vmatmul.mubr.bf16.gmra.mrb[12].mxu1 %v1482_v51  ;;  %1319 = vmatprep.mubr.msk.bf16.mxu0 %vm620_vm0, %v1484_v52 }
  0x46   : > { %1323 = vmatprep.mubr.msk.bf16.mxu1 %vm620_vm0, %v1485_v53 }
  0x4c   : > { %1320 = vmatmul.mubr.msk.bf16.vlgmr.msra.gmra.mrb[16].mxu0 %vm620_vm0, %v1486_v54 }
  0x4d   : > { %1324 = vmatmul.mubr.msk.bf16.vlgmr.msra.gmra.mrb[16].mxu1 %vm620_vm0, %v1487_v55 }
  0xff   : > { %v1239_v56 = vpop.f32.mrb[0].mxu0 }
 0x100   : > { %v1279_v57 = vpop.f32.mrb[0].mxu1  ;;  %v1240_v59 = vpop.f32.mrb[1].mxu0 }
 0x101   : > { %v1241_v60 = vadd.f32 %v1240_v59, %v1239_v56  ;;  %v1280_v61 = vpop.f32.mrb[1].mxu1  ;;  %v1242_v62 = vpop.f32.mrb[2].mxu0 }
 0x102   : > { %v1281_v63 = vadd.f32 %v1280_v61, %v1279_v57  ;;  %v1282_v0 = vpop.f32.mrb[2].mxu1  ;;  %v1243_v1 = vpop.f32.mrb[3].mxu0 }
 0x103   : > { %v668_v2 = vadd.f32 %v1241_v60, %v1126_v58  ;;  %v1244_v3 = vadd.f32 %v1243_v1, %v1242_v62  ;;  %v1283_v4 = vpop.f32.mrb[3].mxu1 }
 0x104   : > { %v1284_v5 = vadd.f32 %v1283_v4, %v1282_v0 }
 0x105   : > { %v671_v6 = vadd.f32 %v1244_v3, %v1126_v58  ;;  %v733_v7 = vadd.f32 %v1281_v63, %v668_v2 }
 0x107   : > { %v1245_v8 = vpop.f32.mrb[4].mxu0  ;;  %v1766_v9 = vadd.f32 %v1284_v5, %v671_v6 }
 0x108   : > { %v1285_v10 = vpop.f32.mrb[4].mxu1  ;;  %v1246_v11 = vpop.f32.mrb[5].mxu0 }
 0x109   : > { %v1247_v12 = vadd.f32 %v1246_v11, %v1245_v8  ;;  %v1286_v13 = vpop.f32.mrb[5].mxu1  ;;  %v1248_v14 = vpop.f32.mrb[6].mxu0 }
 0x10a   : > { %v1287_v15 = vadd.f32 %v1286_v13, %v1285_v10  ;;  %v1288_v16 = vpop.f32.mrb[6].mxu1  ;;  %v1249_v17 = vpop.f32.mrb[7].mxu0 }
 0x10b   : > { %v676_v18 = vadd.f32 %v1247_v12, %v1126_v58  ;;  %v1250_v19 = vadd.f32 %v1249_v17, %v1248_v14  ;;  %v1289_v20 = vpop.f32.mrb[7].mxu1 }
 0x10c   : > { %v1290_v21 = vadd.f32 %v1289_v20, %v1288_v16 }
 0x10d   : > { %v679_v22 = vadd.f32 %v1250_v19, %v1126_v58  ;;  %v741_v23 = vadd.f32 %v1287_v15, %v676_v18 }
 0x10f   : > { %v1251_v24 = vpop.f32.mrb[8].mxu0  ;;  %v744_v25 = vadd.f32 %v1290_v21, %v679_v22 }
 0x110   : > { %v1291_v26 = vpop.f32.mrb[8].mxu1  ;;  %v1252_v27 = vpop.f32.mrb[9].mxu0 }
 0x111   : > { %v1253_v28 = vadd.f32 %v1252_v27, %v1251_v24  ;;  %v1292_v29 = vpop.f32.mrb[9].mxu1  ;;  %v1254_v30 = vpop.f32.mrb[10].mxu0 }
 0x112   : > { %v1293_v31 = vadd.f32 %v1292_v29, %v1291_v26  ;;  %v1294_v32 = vpop.f32.mrb[10].mxu1  ;;  %v1255_v33 = vpop.f32.mrb[11].mxu0 }
 0x113   : > { %v684_v34 = vadd.f32 %v1253_v28, %v1126_v58  ;;  %v1256_v35 = vadd.f32 %v1255_v33, %v1254_v30  ;;  %v1295_v36 = vpop.f32.mrb[11].mxu1 }
 0x114   : > { %v1296_v37 = vadd.f32 %v1295_v36, %v1294_v32 }
 0x115   : > { %v687_v38 = vadd.f32 %v1256_v35, %v1126_v58  ;;  %v749_v39 = vadd.f32 %v1293_v31, %v684_v34 }
 0x117   : > { %v1257_v40 = vpop.f32.mrb[12].mxu0  ;;  %v752_v41 = vadd.f32 %v1296_v37, %v687_v38 }
 0x118   : > { %v1297_v42 = vpop.f32.mrb[12].mxu1  ;;  %v1258_v43 = vpop.f32.mrb[13].mxu0 }
 0x119   : > { %v1259_v44 = vadd.f32 %v1258_v43, %v1257_v40  ;;  %v1298_v45 = vpop.f32.mrb[13].mxu1  ;;  %v1260_v46 = vpop.f32.mrb[14].mxu0 }
 0x11a   : > { %v1299_v47 = vadd.f32 %v1298_v45, %v1297_v42  ;;  %v1300_v48 = vpop.f32.mrb[14].mxu1  ;;  %v1261_v49 = vpop.f32.mrb[15].mxu0 }
 0x11b   : > { %v692_v50 = vadd.f32 %v1259_v44, %v1126_v58  ;;  %v1262_v51 = vadd.f32 %v1261_v49, %v1260_v46  ;;  %v1301_v52 = vpop.f32.mrb[15].mxu1 }
 0x11c   : > { %v1302_v53 = vadd.f32 %v1301_v52, %v1300_v48 }
 0x11d   : > { %v695_v54 = vadd.f32 %v1262_v51, %v1126_v58  ;;  %v757_v55 = vadd.f32 %v1299_v47, %v692_v50 }
 0x11f   : > { %v1321_v56 = vpop.f32.mrb[16].mxu0  ;;  %v760_v57 = vadd.f32 %v1302_v53, %v695_v54 }
 0x120   : > { %v806_v59 = vadd.f32 %v1321_v56, %v741_v23  ;;  %v1325_v60 = vpop.f32.mrb[16].mxu1  ;;  %v797_v61 = vpop.f32.mrb[17].mxu0 }
 0x121   : > { %v822_v62 = vadd.f32 %v1325_v60, %v757_v55  ;;  %v798_v63 = vadd.f32 %v797_v61, %v733_v7  ;;  %v813_v0 = vpop.f32.mrb[17].mxu1  ;;  %v1322_v1 = vpop.f32.mrb[18].mxu0 }
 0x122   : > { %v830_v2 = vmax.f32 %v806_v59, 0.0  ;;  %v814_v3 = vadd.f32 %v813_v0, %v749_v39  ;;  %v809_v4 = vadd.f32 %v1322_v1, %v744_v25  ;;  %v1326_v5 = vpop.f32.mrb[18].mxu1  ;;  %v800_v6 = vpop.f32.mrb[19].mxu0 }
 0x123   : > { %v834_v8 = vmax.f32 %v822_v62, 0.0  ;;  %v828_v58 = vmax.f32 %v798_v63, 0.0  ;;  %v825_v10 = vadd.f32 %v1326_v5, %v760_v57  ;;  %v801_v11 = vadd.f32 %v800_v6, %v1766_v9  ;;  %v816_v12 = vpop.f32.mrb[19].mxu1 }
 0x124   : > { %v1214_v13 = vpack.c.bf16 %v830_v2, %v830_v2  ;;  %v832_v14 = vmax.f32 %v814_v3, 0.0  ;;  %v831_v15 = vmax.f32 %v809_v4, 0.0  ;;  %v817_v16 = vadd.f32 %v816_v12, %v752_v41  ;;  %883 = sbr.rel (!%p1621_p4) target bundleno = 353 (0x161), region = 36 }
 0x125   : > { %v1218_v17 = vpack.c.bf16 %v834_v8, %v834_v8  ;;  %v1212_v7 = vpack.c.bf16 %v828_v58, %v828_v58  ;;  %v835_v18 = vmax.f32 %v825_v10, 0.0  ;;  %v829_v19 = vmax.f32 %v801_v11, 0.0 }
 0x126   : > { %871 = vst.msk [vmem:[%s1770_s12 + $0x8] sm:$0xf] %vm868_vm1, %v1214_v13  ;;  %v1216_v9 = vpack.c.bf16 %v832_v14, %v832_v14  ;;  %v1215_v20 = vpack.c.bf16 %v831_v15, %v831_v15  ;;  %v833_v21 = vmax.f32 %v817_v16, 0.0 }
 0x127   : > { %875 = vst.msk [vmem:[%s1770_s12 + $0x18] sm:$0xf] %vm868_vm1, %v1218_v17  ;;  %869 = vst.msk [vmem:[%s1770_s12] sm:$0xf] %vm868_vm1, %v1212_v7  ;;  %v1219_v22 = vpack.c.bf16 %v835_v18, %v835_v18  ;;  %v1213_v23 = vpack.c.bf16 %v829_v19, %v829_v19 }
 0x128   : > { %873 = vst.msk [vmem:[%s1770_s12 + $0x10] sm:$0xf] %vm868_vm1, %v1216_v9  ;;  %872 = vst.msk [vmem:[%s1770_s12 + $0xc] sm:$0xf] %vm868_vm1, %v1215_v20  ;;  %v1217_v24 = vpack.c.bf16 %v833_v21, %v833_v21 }
 0x129   : > { %876 = vst.msk [vmem:[%s1770_s12 + $0x1c] sm:$0xf] %vm868_vm1, %v1219_v22  ;;  %870 = vst.msk [vmem:[%s1770_s12 + $0x4] sm:$0xf] %vm868_vm1, %v1213_v23 }
 0x12a   : > { %874 = vst.msk [vmem:[%s1770_s12 + $0x14] sm:$0xf] %vm868_vm1, %v1217_v24 }
 0x12b   : > { %s1861_s21 = smov (!%p886_p8, %s885_s21), 8 }
 0x12c   : > { %s1197_s26 = sshll.u32 %s1861_s21, 6 }
 0x12d   : > { %p1200_p9 = scmp.eq.s32.totalorder %s1197_s26, 0 }
 0x12e   : > { %s1801_s27 = sshrl.u32 (!%p1200_p9), %s1861_s21, 3 }
 0x12f   : > { %894 = sbr.rel (%p1200_p9) target bundleno = 353 (0x161), region = 40  ;;  %p1201_p10 = scmp.le.s32.totalorder (!%p1200_p9), %s1801_s27, 0 }
 0x136   : > { %1075 = sbr.rel (%p1201_p10) target bundleno = 332 (0x14c), region = 112  ;;  %s1854_s15 = smov (!%p1201_p10), %s1795_s25 }
 0x137   : > { %s1855_s20 = smov (!%p1201_p10), %s1770_s12  ;;  %s1810_s30 = smov (!%p1201_p10), 0  }
 0x138   : > { %s1812_s28 = smov (!%p1201_p10), 0  }
 0x13d LB: >> { %v910_v25 = vld [vmem:[%s1550_s20] sm:$0xf]  ;;  %v912_v26 = vld [vmem:[%s1550_s20 + $0x4] sm:$0xf]  ;;  %v914_v27 = vld [vmem:[%s1550_s20 + $0x8] sm:$0xf]  ;;  %s1558_s28 = sphi %s1812_s28, %s904_s28   ;;  %s1554_s30 = sphi %s1810_s30, %s1856_s30   ;;  %s1550_s20 = sphi %s1855_s20, %s931_s20   ;;  %s1546_s15 = sphi %s1854_s15, %s932_s15  }
 0x13e   : >> { %911 = vst [vmem:[%s1546_s15] sm:$0xf] %v910_v25  ;;  %913 = vst [vmem:[%s1546_s15 + $0x4] sm:$0xf] %v912_v26  ;;  %v916_v28 = vld [vmem:[%s1550_s20 + $0xc] sm:$0xf]  ;;  %s926_s29 = sadd.s32 1, %s1554_s30 }
 0x13f   : >> { %915 = vst [vmem:[%s1546_s15 + $0x8] sm:$0xf] %v914_v27  ;;  %v918_v29 = vld [vmem:[%s1550_s20 + $0x10] sm:$0xf]  ;;  %v920_v30 = vld [vmem:[%s1550_s20 + $0x14] sm:$0xf]  ;;  %p927_p11 = scmp.ge.s32.totalorder %s926_s29, %s1801_s27 }
 0x140   : >> { %917 = vst [vmem:[%s1546_s15 + $0xc] sm:$0xf] %v916_v28  ;;  %919 = vst [vmem:[%s1546_s15 + $0x10] sm:$0xf] %v918_v29  ;;  %v922_v31 = vld [vmem:[%s1550_s20 + $0x18] sm:$0xf] }
 0x141   : >> { %921 = vst [vmem:[%s1546_s15 + $0x14] sm:$0xf] %v920_v30  ;;  %v924_v32 = vld [vmem:[%s1550_s20 + $0x1c] sm:$0xf]  ;;  %923 = vst [vmem:[%s1546_s15 + $0x18] sm:$0xf] %v922_v31 }
 0x142   : >> { %925 = vst [vmem:[%s1546_s15 + $0x1c] sm:$0xf] %v924_v32  ;;  %s1863_s29 = smov (%p927_p11, %s926_s29), 0  ;;  %s904_s28 = sadd.s32 1, %s1558_s28  }
 0x143   : >> { %s1202_s4 = sshll.u32 %s1863_s29, 5  ;;  %p903_p12 = scmp.ge.s32.totalorder %s904_s28, %s1801_s27 }
 0x144   : >> { %s931_s20 = scalar_lea.vmem %s1770_s12, %s1202_s4 [#allocation2]   ;;  %s932_s15 = scalar_lea.vmem %s1795_s25, %s1202_s4  }
 0x145   : >> { %s1856_s30 = smov %s1863_s29  ;;  %906 = sbr.rel (!%p903_p12) target bundleno = 317 (0x13d), region = 118 }
 0x14c PF: > { %s1831_s5 = sand.u32 7, %s1861_s21   ;;  %s1221_s6 = sshll.u32 %s1801_s27, 5 }
 0x14d   : > { %s937_s7 = scalar_lea.vmem %s1770_s12, %s1221_s6 [#allocation2]   ;;  %s939_s8 = scalar_lea.vmem %s1795_s25, %s1221_s6  }
 0x14e   : > { %p1207_p13 = scmp.le.s32.totalorder %s1831_s5, 0 }
 0x14f   : > { %s1560_s9 = smov (!%p1207_p13), %s939_s8   ;;  %s1564_s10 = smov (!%p1207_p13), %s937_s7  }
 0x150   : > { %1089 = sbr.rel (%p1207_p13) target bundleno = 353 (0x161), region = 123  ;;  %s1568_s11 = smov (!%p1207_p13), 0  }
 0x151   : > { %s1572_s14 = smov (!%p1207_p13), 0  }
 0x157 LB: >> { %v949_v33 = vld [vmem:[%s1566_s10] sm:$0xf]  ;;  %s951_s17 = sadd.s32 1, %s1570_s11  ;;  %s943_s14 = sadd.s32 1, %s1574_s14   ;;  %s1574_s14 = sphi %s1572_s14, %s943_s14   ;;  %s1570_s11 = sphi %s1568_s11, %s1569_s11   ;;  %s1566_s10 = sphi %s1564_s10, %s956_s10   ;;  %s1562_s9 = sphi %s1560_s9, %s957_s9  }
 0x158   : >> { %950 = vst [vmem:[%s1562_s9] sm:$0xf] %v949_v33  ;;  %p952_p0 = scmp.ge.s32.totalorder %s951_s17, %s1831_s5  ;;  %p942_p1 = scmp.ge.s32.totalorder %s943_s14, %s1831_s5 }
 0x15a   : >> { %s1865_s17 = smov (%p952_p0, %s951_s17), 0  ;;  %945 = sbr.rel (!%p942_p1) target bundleno = 343 (0x157), region = 129 }
 0x15b   : >> { %s1208_s18 = sshll.u32 %s1865_s17, 2  ;;  %s1569_s11 = smov %s1865_s17  }
 0x15c   : >> { %s956_s10 = scalar_lea.vmem %s937_s7, %s1208_s18 [#allocation2]   ;;  %s957_s9 = scalar_lea.vmem %s939_s8, %s1208_s18  }
 0x161 PF: > { %p10_p2 = scmp.ge.s32.totalorder %s1611_s16, 4   ;;  %s1857_s12 = smov %s1538_s13 }
 0x162   : > { %s1858_s13 = smov %s1619_s19  ;;  %s1859_s14 = smov %s1611_s16 }
 0x163   :  { %12 = sbr.rel (!%p10_p2) target bundleno = 2 (0x2), region = 140 }

// kernel: conv_q_network_forward.7
= control target key start
LH: loop header
LB: loop body
LE: loop exit
PB: predicated region body
PF: predicated region fallthrough
CT: control target
= control target key end

     0   :  { %12 = vsyncpa [#allocation3], 0  ;;  %v502_v28 = vlaneseq  ;;  %v3675_v32 = vmov 1966171168   ;;  %vm3677_vm0 = vmmov 0   ;;  %vm2148_vm1 = vcmask 523264   ;;  %s4531_s0 = inlined_call_operand.vmem [shape: bf16[2,3136], index: 0, kind: input, shape index: {}]   ;;  %s4532_s1 = inlined_call_operand.vmem [shape: bf16[3136,64], index: 1, kind: input, shape index: {}]   ;;  %s4533_s2 = inlined_call_operand.vmem [shape: f32[1,64], index: 2, kind: input, shape index: {}]   ;;  %s4534_s3 = inlined_call_operand.vmem [shape: bf16[64,64], index: 3, kind: input, shape index: {}]   ;;  %s4535_s4 = inlined_call_operand.vmem [shape: f32[1,64], index: 4, kind: input, shape index: {}]   ;;  %s4536_s5 = inlined_call_operand.vmem [shape: bf16[64,4], index: 5, kind: input, shape index: {}]   ;;  %s4537_s6 = inlined_call_operand.vmem [shape: f32[1,4], index: 6, kind: input, shape index: {}]   ;;  %s4538_s7 = inlined_call_operand.hbm [shape: f32[2,4], index: 7, kind: output, shape index: {}]  }
   0x1   :  { %v3407_v0 = vld [vmem:[%s4532_s1 + $0x40] sm:$0xff]   ;;  %v3411_v4 = vld [vmem:[%s4532_s1 + $0x48] sm:$0xff]   ;;  %v3415_v8 = vld [vmem:[%s4532_s1 + $0x50] sm:$0xff]   ;;  %v500_v33 = vunpack.c.l.s4 %v3675_v32  ;;  %vm2857_vm2 = vcmask 31744  }
   0x2   :  { %v3408_v1 = vld [vmem:[%s4532_s1] sm:$0xff]   ;;  %3086 = vmatprep.subr.bf16.mxu0 %v3407_v0  ;;  %v3412_v5 = vld [vmem:[%s4532_s1 + $0x8] sm:$0xff]   ;;  %v3416_v9 = vld [vmem:[%s4532_s1 + $0x10] sm:$0xff]   ;;  %v503_v34 = vshrl.u32 %v502_v28, 7 }
   0x3   :  { %v3409_v2 = vld [vmem:[%s4532_s1 + $0xc0] sm:$0xff]   ;;  %3087 = vmatpush3.bf16.msra.mxu0 %v3408_v1  ;;  %v3413_v6 = vld [vmem:[%s4532_s1 + $0xc8] sm:$0xff]   ;;  %v3417_v10 = vld [vmem:[%s4532_s1 + $0xd0] sm:$0xff]   ;;  %v501_v38 = vunpack.c.0.s8 %v500_v33 }
   0x4   :  { %v3410_v3 = vld [vmem:[%s4532_s1 + $0x80] sm:$0xff]   ;;  %3108 = vmatprep.subr.bf16.mxu1 %v3409_v2  ;;  %3088 = vmatprep.subr.bf16.mxu0 %v3411_v4  ;;  %v3414_v7 = vld [vmem:[%s4532_s1 + $0x88] sm:$0xff]   ;;  %v3418_v11 = vld [vmem:[%s4532_s1 + $0x90] sm:$0xff]  }
   0x5   :  { %3109 = vmatpush3.bf16.msra.mxu1 %v3410_v3  ;;  %v3419_v12 = vld [vmem:[%s4532_s1 + $0x58] sm:$0xff]   ;;  %v3423_v16 = vld [vmem:[%s4532_s1 + $0x60] sm:$0xff]   ;;  %v3427_v20 = vld [vmem:[%s4532_s1 + $0x68] sm:$0xff]   ;;  %v3838_v44 = vsub.s32 %v501_v38, %v503_v34 }
   0x6   :  { %3110 = vmatprep.subr.bf16.mxu1 %v3413_v6  ;;  %v3420_v13 = vld [vmem:[%s4532_s1 + $0x18] sm:$0xff]   ;;  %v3424_v17 = vld [vmem:[%s4532_s1 + $0x20] sm:$0xff]   ;;  %v3428_v21 = vld [vmem:[%s4532_s1 + $0x28] sm:$0xff]  }
   0x7   :  { %3089 = vmatpush3.bf16.msra.mxu0 %v3412_v5  ;;  %v3421_v14 = vld [vmem:[%s4532_s1 + $0xd8] sm:$0xff]   ;;  %v3425_v18 = vld [vmem:[%s4532_s1 + $0xe0] sm:$0xff]   ;;  %v3429_v22 = vld [vmem:[%s4532_s1 + $0xe8] sm:$0xff]  }
   0x8   :  { %3090 = vmatprep.subr.bf16.mxu0 %v3415_v8  ;;  %v3422_v15 = vld [vmem:[%s4532_s1 + $0x98] sm:$0xff]   ;;  %v3426_v19 = vld [vmem:[%s4532_s1 + $0xa0] sm:$0xff]   ;;  %v3430_v23 = vld [vmem:[%s4532_s1 + $0xa8] sm:$0xff]  }
   0x9   :  { %3111 = vmatpush3.bf16.msra.mxu1 %v3414_v7  ;;  %v3431_v24 = vld [vmem:[%s4532_s1 + $0x70] sm:$0xff]   ;;  %v3435_v29 = vld [vmem:[%s4532_s1 + $0x78] sm:$0xff]   ;;  %v3446_v41 = vld [vmem:[%s4531_s0 + $0x68] ss:$25 sps:$4 sm:$0xff]  }
   0xa   :  { %3112 = vmatprep.subr.bf16.mxu1 %v3417_v10  ;;  %v3432_v25 = vld [vmem:[%s4532_s1 + $0x30] sm:$0xff]   ;;  %v3436_v30 = vld [vmem:[%s4532_s1 + $0x38] sm:$0xff]   ;;  %v3451_v50 = vld [vmem:[%s4532_s1 + $0x140] sm:$0xff]   ;;  %v3857_v53 = vrot.slane %v3446_v41, %v3838_v44 }
   0xb   :  { %3091 = vmatpush3.bf16.msra.mxu0 %v3416_v9  ;;  %v3433_v26 = vld [vmem:[%s4532_s1 + $0xf0] sm:$0xff]   ;;  %v3437_v31 = vld [vmem:[%s4532_s1 + $0xf8] sm:$0xff]   ;;  %v3453_v59 = vld [vmem:[%s4532_s1 + $0x1c0] sm:$0xff]  }
   0xc   :  { %3092 = vmatprep.subr.bf16.mxu0 %v3419_v12  ;;  %v3434_v27 = vld [vmem:[%s4532_s1 + $0xb0] sm:$0xff]   ;;  %v3438_v35 = vld [vmem:[%s4531_s0] ss:$25 sps:$4 sm:$0xff]   ;;  %v3455_v10 = vld [vmem:[%s4532_s1 + $0x148] sm:$0xff]  }
   0xd   :  { %3113 = vmatpush3.bf16.msra.mxu1 %v3418_v11  ;;  %v3440_v36 = vld [vmem:[%s4531_s0 + $0x4] ss:$25 sps:$4 sm:$0xff]   ;;  %v3441_v37 = vld [vmem:[%s4531_s0 + $0x32] ss:$25 sps:$4 sm:$0xff]   ;;  %v505_v46 = vrot.slane %v3438_v35, %v3838_v44 }
   0xe   :  { %3114 = vmatprep.subr.bf16.mxu1 %v3421_v14  ;;  %v3443_v39 = vld [vmem:[%s4531_s0 + $0x36] ss:$25 sps:$4 sm:$0xff]   ;;  %v3444_v40 = vld [vmem:[%s4531_s0 + $0x64] ss:$25 sps:$4 sm:$0xff]   ;;  %v519_v47 = vrot.slane %v3441_v37, %v3838_v44  ;;  %v3851_v51 = vrot.slane %v3440_v36, %v3838_v44 }
   0xf   :  { %3093 = vmatpush3.bf16.msra.mxu0 %v3420_v13  ;;  %v3447_v42 = vld [vmem:[%s4531_s0 + $0x96] ss:$25 sps:$4 sm:$0xff]   ;;  %v533_v48 = vrot.slane %v3444_v40, %v3838_v44  ;;  %v3854_v52 = vrot.slane %v3443_v39, %v3838_v44  ;;  %v3452_v2 = vld [vmem:[%s4532_s1 + $0x100] sm:$0xff]  }
  0x10   :  { %3094 = vmatprep.subr.bf16.mxu0 %v3423_v16  ;;  %v3449_v43 = vld [vmem:[%s4531_s0 + $0x9a] ss:$25 sps:$4 sm:$0xff]   ;;  %v547_v49 = vrot.slane %v3447_v42, %v3838_v44  ;;  %v556_v55 = vcombine.high %v505_v46, %v519_v47  ;;  %v555_v57 = vcombine.low %v505_v46, %v519_v47  ;;  %v3454_v3 = vld [vmem:[%s4532_s1 + $0x180] sm:$0xff]   ;;  %v3457_v11 = vld [vmem:[%s4532_s1 + $0x1c8] sm:$0xff]  }
  0x11   :  { %3115 = vmatpush3.bf16.msra.mxu1 %v3422_v15  ;;  %v3450_v45 = vld [vmem:[%s4532_s1 + $0xb8] sm:$0xff]   ;;  %v3860_v54 = vrot.slane %v3449_v43, %v3838_v44  ;;  %v558_v60 = vcombine.high %v3851_v51, %v3854_v52  ;;  %v3456_v12 = vld [vmem:[%s4532_s1 + $0x108] sm:$0xff]   ;;  %v3459_v16 = vld [vmem:[%s4532_s1 + $0x150] sm:$0xff]   ;;  %v557_v36 = vcombine.low %v3851_v51, %v3854_v52 }
  0x12   :  { %3116 = vmatprep.subr.bf16.mxu1 %v3425_v18  ;;  %v560_v56 = vcombine.high %v533_v48, %v547_v49  ;;  %v559_v58 = vcombine.low %v533_v48, %v547_v49  ;;  %v583_v62 = vrot.slane %v556_v55, %v3838_v44  ;;  %v569_v0 = vrot.slane %v555_v57, %v3838_v44  ;;  %v3458_v15 = vld [vmem:[%s4532_s1 + $0x188] sm:$0xff]   ;;  %v3460_v18 = vld [vmem:[%s4532_s1 + $0x110] sm:$0xff]   ;;  %v3479_v38 = vld [vmem:[%s4532_s1 + $0x178] sm:$0xff]  }
  0x13   :  { %3095 = vmatpush3.bf16.msra.mxu0 %v3424_v17  ;;  %v562_v61 = vcombine.high %v3857_v53, %v3860_v54  ;;  %v590_v4 = vrot.slane %v558_v60, %v3838_v44  ;;  %v3461_v17 = vld [vmem:[%s4532_s1 + $0x1d0] sm:$0xff]   ;;  %v3471_v28 = vld [vmem:[%s4532_s1 + $0x168] sm:$0xff]   ;;  %v561_v37 = vcombine.low %v3857_v53, %v3860_v54  ;;  %v3481_v39 = vld [vmem:[%s4532_s1 + $0x1f8] sm:$0xff]   ;;  %v576_v42 = vrot.slane %v557_v36, %v3838_v44 }
  0x14   :  { %3096 = vmatprep.subr.bf16.mxu0 %v3427_v20  ;;  %v611_v63 = vrot.slane %v560_v56, %v3838_v44  ;;  %v597_v1 = vrot.slane %v559_v58, %v3838_v44  ;;  %v3463_v20 = vld [vmem:[%s4532_s1 + $0x158] sm:$0xff]   ;;  %v3475_v32 = vld [vmem:[%s4532_s1 + $0x170] sm:$0xff]   ;;  %v3485_v46 = vld [vmem:[%s4532_s1 + $0x2c0] sm:$0xff]  }
  0x15   :  { %3117 = vmatpush3.bf16.msra.mxu1 %v3426_v19  ;;  %v618_v5 = vrot.slane %v562_v61, %v3838_v44  ;;  %v3462_v19 = vld [vmem:[%s4532_s1 + $0x190] sm:$0xff]   ;;  %v3480_v40 = vld [vmem:[%s4532_s1 + $0x138] sm:$0xff]   ;;  %v604_v43 = vrot.slane %v561_v37, %v3838_v44  ;;  %v3484_v47 = vld [vmem:[%s4532_s1 + $0x200] sm:$0xff]  }
  0x16   :  { %3118 = vmatprep.subr.bf16.mxu1 %v3429_v22  ;;  %v623_v6 = vcombine.low %v583_v62, %v611_v63  ;;  %v619_v7 = vcombine.low %v569_v0, %v597_v1  ;;  %v624_v8 = vcombine.high %v583_v62, %v611_v63  ;;  %v620_v9 = vcombine.high %v569_v0, %v597_v1  ;;  %v3464_v22 = vld [vmem:[%s4532_s1 + $0x118] sm:$0xff]   ;;  %v3477_v33 = vld [vmem:[%s4532_s1 + $0x1f0] sm:$0xff]   ;;  %v3487_v51 = vld [vmem:[%s4532_s1 + $0x248] sm:$0xff]  }
  0x17   :  { %3097 = vmatpush3.bf16.msra.mxu0 %v3428_v21  ;;  %v625_v13 = vcombine.low %v590_v4, %v618_v5  ;;  %v626_v14 = vcombine.high %v590_v4, %v618_v5  ;;  %v3465_v21 = vld [vmem:[%s4532_s1 + $0x1d8] sm:$0xff]   ;;  %v3476_v34 = vld [vmem:[%s4532_s1 + $0x130] sm:$0xff]   ;;  %v621_v48 = vcombine.low %v576_v42, %v604_v43  ;;  %v622_v49 = vcombine.high %v576_v42, %v604_v43  ;;  %v3489_v52 = vld [vmem:[%s4532_s1 + $0x2c8] sm:$0xff]  }
  0x18   :  { %3098 = vmatprep.subr.bf16.mxu0 %v3431_v24  ;;  %2184 = vmatprep.mubr.bf16.mxu0 %v623_v6  ;;  %v3467_v24 = vld [vmem:[%s4532_s1 + $0x160] sm:$0xff]   ;;  %v3478_v35 = vld [vmem:[%s4532_s1 + $0x1b0] sm:$0xff]   ;;  %v3482_v41 = vld [vmem:[%s4532_s1 + $0x1b8] sm:$0xff]  }
  0x19   :  { %3119 = vmatpush3.bf16.msra.mxu1 %v3430_v23  ;;  %2225 = vmatprep.mubr.bf16.mxu1 %v624_v8  ;;  %v3466_v23 = vld [vmem:[%s4532_s1 + $0x198] sm:$0xff]   ;;  %v3488_v53 = vld [vmem:[%s4532_s1 + $0x208] sm:$0xff]   ;;  %v3491_v55 = vld [vmem:[%s4532_s1 + $0x250] sm:$0xff]  }
  0x1a   :  { %3120 = vmatprep.subr.bf16.mxu1 %v3433_v26  ;;  %v3468_v26 = vld [vmem:[%s4532_s1 + $0x120] sm:$0xff]   ;;  %v3490_v54 = vld [vmem:[%s4532_s1 + $0x288] sm:$0xff]   ;;  %v3493_v56 = vld [vmem:[%s4532_s1 + $0x2d0] sm:$0xff]  }
  0x1b   :  { %3099 = vmatpush3.bf16.msra.mxu0 %v3432_v25  ;;  %v3469_v25 = vld [vmem:[%s4532_s1 + $0x1e0] sm:$0xff]   ;;  %v3492_v57 = vld [vmem:[%s4532_s1 + $0x210] sm:$0xff]   ;;  %v3497_v60 = vld [vmem:[%s4532_s1 + $0x2d8] sm:$0xff]  }
  0x1c   :  { %3100 = vmatprep.subr.bf16.mxu0 %v3435_v29  ;;  %v3473_v29 = vld [vmem:[%s4532_s1 + $0x1e8] sm:$0xff]   ;;  %v3494_v58 = vld [vmem:[%s4532_s1 + $0x290] sm:$0xff]   ;;  %v3496_v61 = vld [vmem:[%s4532_s1 + $0x218] sm:$0xff]  }
  0x1d   :  { %3121 = vmatpush3.bf16.msra.mxu1 %v3434_v27  ;;  %v3470_v27 = vld [vmem:[%s4532_s1 + $0x1a0] sm:$0xff]   ;;  %v3498_v62 = vld [vmem:[%s4532_s1 + $0x298] sm:$0xff]   ;;  %v3505_v4 = vld [vmem:[%s4532_s1 + $0x2e8] sm:$0xff]  }
  0x1e   :  { %3122 = vmatprep.subr.bf16.mxu1 %v3437_v31  ;;  %v3474_v31 = vld [vmem:[%s4532_s1 + $0x1a8] sm:$0xff]   ;;  %v3499_v63 = vld [vmem:[%s4532_s1 + $0x260] sm:$0xff]   ;;  %v3509_v8 = vld [vmem:[%s4532_s1 + $0x2f0] sm:$0xff]  }
  0x1f   :  { %3101 = vmatpush3.bf16.msra.mxu0 %v3436_v30  ;;  %v3472_v30 = vld [vmem:[%s4532_s1 + $0x128] sm:$0xff]   ;;  %v3501_v0 = vld [vmem:[%s4532_s1 + $0x2e0] sm:$0xff]   ;;  %v3531_v43 = vld [vmem:[%s4532_s1 + $0x350] sm:$0xff]  }
  0x20   :  { %3130 = vmatprep.subr.bf16.mxu0 %v3451_v50  ;;  %v3486_v50 = vld [vmem:[%s4532_s1 + $0x280] sm:$0xff]   ;;  %v3504_v5 = vld [vmem:[%s4532_s1 + $0x228] sm:$0xff]  }
  0x21   :  { %3123 = vmatpush3.bf16.msra.mxu1 %v3450_v45  ;;  %v3483_v45 = vld [vmem:[%s4532_s1 + $0x240] sm:$0xff]   ;;  %v3506_v6 = vld [vmem:[%s4532_s1 + $0x2a8] sm:$0xff]  }
  0x22   :  { %3152 = vmatprep.subr.bf16.mxu1 %v3453_v59  ;;  %2185 = vmatmul.mubr.bf16.vlgmr.msra.gmra.mrb[0].mxu0 %v619_v7  ;;  %v3495_v59 = vld [vmem:[%s4532_s1 + $0x258] sm:$0xff]   ;;  %v3500_v1 = vld [vmem:[%s4532_s1 + $0x220] sm:$0xff]   ;;  %v3507_v7 = vld [vmem:[%s4532_s1 + $0x270] sm:$0xff]  }
  0x23   :  { %3131 = vmatpush3.bf16.msra.mxu0 %v3452_v2  ;;  %2266 = vmatprep.mubr.bf16.mxu0 %v625_v13  ;;  %v3502_v2 = vld [vmem:[%s4532_s1 + $0x2a0] sm:$0xff]   ;;  %v3512_v13 = vld [vmem:[%s4532_s1 + $0x238] sm:$0xff]   ;;  %v3530_v42 = vld [vmem:[%s4532_s1 + $0x388] sm:$0xff]  }
  0x24   :  { %2226 = vmatmul.mubr.bf16.vlgmr.msra.gmra.mrb[0].mxu1 %v620_v9  ;;  %3132 = vmatprep.subr.bf16.mxu0 %v3455_v10  ;;  %v3508_v9 = vld [vmem:[%s4532_s1 + $0x230] sm:$0xff]  }
  0x25   :  { %3153 = vmatpush3.bf16.msra.mxu1 %v3454_v3  ;;  %2307 = vmatprep.mubr.bf16.mxu1 %v626_v14  ;;  %v3503_v3 = vld [vmem:[%s4532_s1 + $0x268] sm:$0xff]   ;;  %v3510_v10 = vld [vmem:[%s4532_s1 + $0x2b0] sm:$0xff]  }
  0x26   :  { %3154 = vmatprep.subr.bf16.mxu1 %v3457_v11  ;;  %v3511_v11 = vld [vmem:[%s4532_s1 + $0x278] sm:$0xff]   ;;  %v3514_v14 = vld [vmem:[%s4531_s0 + $0x8] ss:$25 sps:$4 sm:$0xff]  }
  0x27   :  { %3133 = vmatpush3.bf16.msra.mxu0 %v3456_v12  ;;  %v3513_v12 = vld [vmem:[%s4532_s1 + $0x2f8] sm:$0xff]  }
  0x28   :  { %3134 = vmatprep.subr.bf16.mxu0 %v3459_v16  ;;  %v3518_v16 = vld [vmem:[%s4531_s0 + $0x6c] ss:$25 sps:$4 sm:$0xff]  }
  0x29   :  { %3155 = vmatpush3.bf16.msra.mxu1 %v3458_v15  ;;  %v3516_v15 = vld [vmem:[%s4531_s0 + $0x3a] ss:$25 sps:$4 sm:$0xff]  }
  0x2a   :  { %3156 = vmatprep.subr.bf16.mxu1 %v3461_v17  ;;  %v3520_v17 = vld [vmem:[%s4531_s0 + $0x9e] ss:$25 sps:$4 sm:$0xff]  }
  0x2b   :  { %3135 = vmatpush3.bf16.msra.mxu0 %v3460_v18  ;;  %v641_v18 = vrot.slane %v3514_v14, %v3838_v44 }
  0x2c   :  { %3136 = vmatprep.subr.bf16.mxu0 %v3463_v20  ;;  %v3522_v20 = vld [vmem:[%s4532_s1 + $0x2b8] sm:$0xff]  }
  0x2d   :  { %3157 = vmatpush3.bf16.msra.mxu1 %v3462_v19  ;;  %v655_v19 = vrot.slane %v3516_v15, %v3838_v44 }
  0x2e   :  { %3158 = vmatprep.subr.bf16.mxu1 %v3465_v21  ;;  %v669_v21 = vrot.slane %v3518_v16, %v3838_v44  ;;  %v3561_v16 = vld [vmem:[%s4532_s1 + $0x4c0] sm:$0xff]  }
  0x2f   :  { %3137 = vmatpush3.bf16.msra.mxu0 %v3464_v22  ;;  %v683_v22 = vrot.slane %v3520_v17, %v3838_v44 }
  0x30   :  { %3138 = vmatprep.subr.bf16.mxu0 %v3467_v24  ;;  %v692_v24 = vcombine.high %v641_v18, %v655_v19 }
  0x31   :  { %3159 = vmatpush3.bf16.msra.mxu1 %v3466_v23  ;;  %v3523_v23 = vld [vmem:[%s4532_s1 + $0x340] sm:$0xff]  }
  0x32   :  { %3160 = vmatprep.subr.bf16.mxu1 %v3469_v25  ;;  %v691_v25 = vcombine.low %v641_v18, %v655_v19 }
  0x33   :  { %3139 = vmatpush3.bf16.msra.mxu0 %v3468_v26  ;;  %v696_v26 = vcombine.high %v669_v21, %v683_v22 }
  0x34   :  { %3140 = vmatprep.subr.bf16.mxu0 %v3471_v28  ;;  %v3525_v28 = vld [vmem:[%s4532_s1 + $0x3c0] sm:$0xff]  }
  0x35   :  { %3161 = vmatpush3.bf16.msra.mxu1 %v3470_v27  ;;  %v695_v27 = vcombine.low %v669_v21, %v683_v22  ;;  %v3560_v21 = vld [vmem:[%s4532_s1 + $0x400] sm:$0xff]  }
  0x36   :  { %3162 = vmatprep.subr.bf16.mxu1 %v3473_v29  ;;  %v719_v29 = vrot.slane %v692_v24, %v3838_v44 }
  0x37   :  { %3141 = vmatpush3.bf16.msra.mxu0 %v3472_v30  ;;  %v705_v30 = vrot.slane %v691_v25, %v3838_v44 }
  0x38   :  { %3142 = vmatprep.subr.bf16.mxu0 %v3475_v32  ;;  %v733_v32 = vrot.slane %v695_v27, %v3838_v44 }
  0x39   :  { %3163 = vmatpush3.bf16.msra.mxu1 %v3474_v31  ;;  %v747_v31 = vrot.slane %v696_v26, %v3838_v44  ;;  %v3563_v26 = vld [vmem:[%s4532_s1 + $0x448] sm:$0xff]  }
  0x3a   :  { %3164 = vmatprep.subr.bf16.mxu1 %v3477_v33  ;;  %v3524_v33 = vld [vmem:[%s4532_s1 + $0x300] sm:$0xff]   ;;  %v755_v36 = vcombine.low %v705_v30, %v733_v32 }
  0x3b   :  { %3143 = vmatpush3.bf16.msra.mxu0 %v3476_v34  ;;  %v3526_v34 = vld [vmem:[%s4532_s1 + $0x380] sm:$0xff]   ;;  %v760_v37 = vcombine.high %v719_v29, %v747_v31 }
  0x3c   :  { %3144 = vmatprep.subr.bf16.mxu0 %v3479_v38  ;;  %v756_v38 = vcombine.high %v705_v30, %v733_v32  ;;  %v3564_v30 = vld [vmem:[%s4532_s1 + $0x408] sm:$0xff]   ;;  %v3567_v32 = vld [vmem:[%s4532_s1 + $0x450] sm:$0xff]  }
  0x3d   :  { %3165 = vmatpush3.bf16.msra.mxu1 %v3478_v35  ;;  %v759_v35 = vcombine.low %v719_v29, %v747_v31  ;;  %v3565_v29 = vld [vmem:[%s4532_s1 + $0x4c8] sm:$0xff]  }
  0x3e   :  { %3166 = vmatprep.subr.bf16.mxu1 %v3481_v39  ;;  %v3527_v39 = vld [vmem:[%s4532_s1 + $0x348] sm:$0xff]  }
  0x3f   :  { %3145 = vmatpush3.bf16.msra.mxu0 %v3480_v40  ;;  %v3529_v40 = vld [vmem:[%s4532_s1 + $0x3c8] sm:$0xff]  }
  0x40   :  { %3174 = vmatprep.subr.bf16.mxu0 %v3483_v45  ;;  %v3533_v45 = vld [vmem:[%s4532_s1 + $0x3d0] sm:$0xff]   ;;  %v3566_v31 = vld [vmem:[%s4532_s1 + $0x488] sm:$0xff]  }
  0x41   :  { %3167 = vmatpush3.bf16.msra.mxu1 %v3482_v41  ;;  %v3528_v41 = vld [vmem:[%s4532_s1 + $0x308] sm:$0xff]  }
  0x42   :  { %3196 = vmatprep.subr.bf16.mxu1 %v3485_v46  ;;  %2267 = vmatmul.mubr.bf16.vlgmr.msra.gmra.mrb[4].mxu0 %v621_v48  ;;  %v3532_v46 = vld [vmem:[%s4532_s1 + $0x310] sm:$0xff]   ;;  %v3535_v48 = vld [vmem:[%s4532_s1 + $0x358] sm:$0xff]  }
  0x43   :  { %3175 = vmatpush3.bf16.msra.mxu0 %v3484_v47  ;;  %2348 = vmatprep.mubr.bf16.mxu0 %v759_v35  ;;  %v3534_v47 = vld [vmem:[%s4532_s1 + $0x390] sm:$0xff]  }
  0x44   :  { %2308 = vmatmul.mubr.bf16.vlgmr.msra.gmra.mrb[4].mxu1 %v622_v49  ;;  %3176 = vmatprep.subr.bf16.mxu0 %v3487_v51  ;;  %v3537_v49 = vld [vmem:[%s4532_s1 + $0x3d8] sm:$0xff]   ;;  %v3570_v35 = vld [vmem:[%s4532_s1 + $0x490] sm:$0xff]  }
  0x45   :  { %3197 = vmatpush3.bf16.msra.mxu1 %v3486_v50  ;;  %2389 = vmatprep.mubr.bf16.mxu1 %v760_v37  ;;  %v3536_v50 = vld [vmem:[%s4532_s1 + $0x318] sm:$0xff]  }
  0x46   :  { %3198 = vmatprep.subr.bf16.mxu1 %v3489_v52  ;;  %v3538_v51 = vld [vmem:[%s4532_s1 + $0x398] sm:$0xff]   ;;  %v3539_v52 = vld [vmem:[%s4532_s1 + $0x360] sm:$0xff]  }
  0x47   :  { %3177 = vmatpush3.bf16.msra.mxu0 %v3488_v53  ;;  %v3541_v53 = vld [vmem:[%s4532_s1 + $0x3e0] sm:$0xff]   ;;  %v3573_v37 = vld [vmem:[%s4532_s1 + $0x4d8] sm:$0xff]  }
  0x48   :  { %3178 = vmatprep.subr.bf16.mxu0 %v3491_v55  ;;  %v3542_v55 = vld [vmem:[%s4532_s1 + $0x3a0] sm:$0xff]  }
  0x49   :  { %3199 = vmatpush3.bf16.msra.mxu1 %v3490_v54  ;;  %v3540_v54 = vld [vmem:[%s4532_s1 + $0x320] sm:$0xff]  }
  0x4a   :  { %3200 = vmatprep.subr.bf16.mxu1 %v3493_v56  ;;  %v3543_v56 = vld [vmem:[%s4532_s1 + $0x368] sm:$0xff]  }
  0x4b   :  { %3179 = vmatpush3.bf16.msra.mxu0 %v3492_v57  ;;  %v3545_v57 = vld [vmem:[%s4532_s1 + $0x3e8] sm:$0xff]  }
  0x4c   :  { %3180 = vmatprep.subr.bf16.mxu0 %v3495_v59  ;;  %v3546_v59 = vld [vmem:[%s4532_s1 + $0x3a8] sm:$0xff]  }
  0x4d   :  { %3201 = vmatpush3.bf16.msra.mxu1 %v3494_v58  ;;  %v3544_v58 = vld [vmem:[%s4532_s1 + $0x328] sm:$0xff]  }
  0x4e   :  { %3202 = vmatprep.subr.bf16.mxu1 %v3497_v60  ;;  %v3547_v60 = vld [vmem:[%s4532_s1 + $0x370] sm:$0xff]  }
  0x4f   :  { %3181 = vmatpush3.bf16.msra.mxu0 %v3496_v61  ;;  %v3549_v61 = vld [vmem:[%s4532_s1 + $0x3f0] sm:$0xff]  }
  0x50   :  { %3182 = vmatprep.subr.bf16.mxu0 %v3499_v63  ;;  %v3550_v63 = vld [vmem:[%s4532_s1 + $0x3b0] sm:$0xff]  }
  0x51   :  { %3203 = vmatpush3.bf16.msra.mxu1 %v3498_v62  ;;  %v3548_v62 = vld [vmem:[%s4532_s1 + $0x330] sm:$0xff]  }
  0x52   :  { %3204 = vmatprep.subr.bf16.mxu1 %v3501_v0  ;;  %v3551_v0 = vld [vmem:[%s4532_s1 + $0x378] sm:$0xff]  }
  0x53   :  { %3183 = vmatpush3.bf16.msra.mxu0 %v3500_v1  ;;  %v3553_v1 = vld [vmem:[%s4532_s1 + $0x3f8] sm:$0xff]  }
  0x54   :  { %3184 = vmatprep.subr.bf16.mxu0 %v3503_v3  ;;  %v3555_v3 = vld [vmem:[%s4531_s0 + $0x3e] ss:$25 sps:$4 sm:$0xff]  }
  0x55   :  { %3205 = vmatpush3.bf16.msra.mxu1 %v3502_v2  ;;  %v3554_v2 = vld [vmem:[%s4531_s0 + $0xc] ss:$25 sps:$4 sm:$0xff]  }
  0x56   :  { %3206 = vmatprep.subr.bf16.mxu1 %v3505_v4  ;;  %v3556_v4 = vld [vmem:[%s4531_s0 + $0x70] ss:$25 sps:$4 sm:$0xff]  }
  0x57   :  { %3185 = vmatpush3.bf16.msra.mxu0 %v3504_v5  ;;  %v3557_v5 = vld [vmem:[%s4531_s0 + $0xa2] ss:$25 sps:$4 sm:$0xff]  }
  0x58   :  { %3186 = vmatprep.subr.bf16.mxu0 %v3507_v7  ;;  %v648_v7 = vrot.slane %v3554_v2, %v3838_v44 }
  0x59   :  { %3207 = vmatpush3.bf16.msra.mxu1 %v3506_v6  ;;  %v3552_v6 = vld [vmem:[%s4532_s1 + $0x338] sm:$0xff]  }
  0x5a   :  { %3208 = vmatprep.subr.bf16.mxu1 %v3509_v8  ;;  %v662_v8 = vrot.slane %v3555_v3, %v3838_v44 }
  0x5b   :  { %3187 = vmatpush3.bf16.msra.mxu0 %v3508_v9  ;;  %v676_v9 = vrot.slane %v3556_v4, %v3838_v44 }
  0x5c   :  { %3188 = vmatprep.subr.bf16.mxu0 %v3511_v11  ;;  %v3558_v11 = vld [vmem:[%s4532_s1 + $0x3b8] sm:$0xff]   ;;  %v693_v15 = vcombine.low %v648_v7, %v662_v8 }
  0x5d   :  { %3209 = vmatpush3.bf16.msra.mxu1 %v3510_v10  ;;  %v690_v10 = vrot.slane %v3557_v5, %v3838_v44  ;;  %v3601_v5 = vld [vmem:[%s4532_s1 + $0x5c0] sm:$0xff]  }
  0x5e   :  { %3210 = vmatprep.subr.bf16.mxu1 %v3513_v12  ;;  %v3559_v12 = vld [vmem:[%s4532_s1 + $0x440] sm:$0xff]  }
  0x5f   :  { %3189 = vmatpush3.bf16.msra.mxu0 %v3512_v13  ;;  %v694_v13 = vcombine.high %v648_v7, %v662_v8  ;;  %v698_v14 = vcombine.high %v676_v9, %v690_v10  ;;  %v697_v17 = vcombine.low %v676_v9, %v690_v10  ;;  %v3600_v10 = vld [vmem:[%s4532_s1 + $0x500] sm:$0xff]  }
  0x60   :  { %3218 = vmatprep.subr.bf16.mxu0 %v3523_v23  ;;  %v3562_v23 = vld [vmem:[%s4532_s1 + $0x480] sm:$0xff]  }
  0x61   :  { %3211 = vmatpush3.bf16.msra.mxu1 %v3522_v20  ;;  %v726_v18 = vrot.slane %v694_v13, %v3838_v44  ;;  %v754_v19 = vrot.slane %v698_v14, %v3838_v44  ;;  %v712_v20 = vrot.slane %v693_v15, %v3838_v44  ;;  %v740_v22 = vrot.slane %v697_v17, %v3838_v44  ;;  %v3603_v15 = vld [vmem:[%s4532_s1 + $0x548] sm:$0xff]  }
  0x62   :  { %3240 = vmatprep.subr.bf16.mxu1 %v3525_v28  ;;  %2349 = vmatmul.mubr.bf16.vlgmr.msra.gmra.mrb[8].mxu0 %v755_v36  ;;  %v3571_v36 = vld [vmem:[%s4532_s1 + $0x458] sm:$0xff]  }
  0x63   :  { %3219 = vmatpush3.bf16.msra.mxu0 %v3524_v33  ;;  %v761_v24 = vcombine.low %v726_v18, %v754_v19  ;;  %v762_v25 = vcombine.high %v726_v18, %v754_v19  ;;  %v757_v27 = vcombine.low %v712_v20, %v740_v22  ;;  %v758_v28 = vcombine.high %v712_v20, %v740_v22  ;;  %v3569_v33 = vld [vmem:[%s4532_s1 + $0x4d0] sm:$0xff]   ;;  %v3605_v18 = vld [vmem:[%s4532_s1 + $0x5c8] sm:$0xff]  }
  0x64   :  { %2390 = vmatmul.mubr.bf16.vlgmr.msra.gmra.mrb[8].mxu1 %v756_v38  ;;  %3220 = vmatprep.subr.bf16.mxu0 %v3527_v39  ;;  %v3572_v38 = vld [vmem:[%s4532_s1 + $0x418] sm:$0xff]   ;;  %v3604_v19 = vld [vmem:[%s4532_s1 + $0x508] sm:$0xff]   ;;  %v3609_v22 = vld [vmem:[%s4532_s1 + $0x5d0] sm:$0xff]  }
  0x65   :  { %3241 = vmatpush3.bf16.msra.mxu1 %v3526_v34  ;;  %2430 = vmatprep.mubr.bf16.mxu0 %v761_v24  ;;  %v3568_v34 = vld [vmem:[%s4532_s1 + $0x410] sm:$0xff]   ;;  %v3574_v39 = vld [vmem:[%s4532_s1 + $0x498] sm:$0xff]   ;;  %v3606_v20 = vld [vmem:[%s4532_s1 + $0x588] sm:$0xff]  }
  0x66   :  { %3242 = vmatprep.subr.bf16.mxu1 %v3529_v40  ;;  %2471 = vmatprep.mubr.bf16.mxu1 %v762_v25  ;;  %v3575_v40 = vld [vmem:[%s4532_s1 + $0x460] sm:$0xff]   ;;  %v3610_v24 = vld [vmem:[%s4532_s1 + $0x590] sm:$0xff]   ;;  %v3611_v25 = vld [vmem:[%s4532_s1 + $0x558] sm:$0xff]  }
  0x67   :  { %3221 = vmatpush3.bf16.msra.mxu0 %v3528_v41  ;;  %v3577_v41 = vld [vmem:[%s4532_s1 + $0x4e0] sm:$0xff]  }
  0x68   :  { %3222 = vmatprep.subr.bf16.mxu0 %v3531_v43  ;;  %v3578_v43 = vld [vmem:[%s4532_s1 + $0x4a0] sm:$0xff]  }
  0x69   :  { %3243 = vmatpush3.bf16.msra.mxu1 %v3530_v42  ;;  %v3576_v42 = vld [vmem:[%s4532_s1 + $0x420] sm:$0xff]  }
  0x6a   :  { %3244 = vmatprep.subr.bf16.mxu1 %v3533_v45  ;;  %v3579_v45 = vld [vmem:[%s4532_s1 + $0x468] sm:$0xff]  }
  0x6b   :  { %3223 = vmatpush3.bf16.msra.mxu0 %v3532_v46  ;;  %v3581_v46 = vld [vmem:[%s4532_s1 + $0x4e8] sm:$0xff]  }
  0x6c   :  { %3224 = vmatprep.subr.bf16.mxu0 %v3535_v48  ;;  %v3582_v48 = vld [vmem:[%s4532_s1 + $0x4a8] sm:$0xff]  }
  0x6d   :  { %3245 = vmatpush3.bf16.msra.mxu1 %v3534_v47  ;;  %v3580_v47 = vld [vmem:[%s4532_s1 + $0x428] sm:$0xff]  }
  0x6e   :  { %3246 = vmatprep.subr.bf16.mxu1 %v3537_v49  ;;  %v3583_v49 = vld [vmem:[%s4532_s1 + $0x470] sm:$0xff]  }
  0x6f   :  { %3225 = vmatpush3.bf16.msra.mxu0 %v3536_v50  ;;  %v3585_v50 = vld [vmem:[%s4532_s1 + $0x4f0] sm:$0xff]  }
  0x70   :  { %3226 = vmatprep.subr.bf16.mxu0 %v3539_v52  ;;  %v3586_v52 = vld [vmem:[%s4532_s1 + $0x4b0] sm:$0xff]  }
  0x71   :  { %3247 = vmatpush3.bf16.msra.mxu1 %v3538_v51  ;;  %v3584_v51 = vld [vmem:[%s4532_s1 + $0x430] sm:$0xff]  }
  0x72   :  { %3248 = vmatprep.subr.bf16.mxu1 %v3541_v53  ;;  %v3587_v53 = vld [vmem:[%s4532_s1 + $0x478] sm:$0xff]  }
  0x73   :  { %3227 = vmatpush3.bf16.msra.mxu0 %v3540_v54  ;;  %v3589_v54 = vld [vmem:[%s4532_s1 + $0x4f8] sm:$0xff]  }
  0x74   :  { %3228 = vmatprep.subr.bf16.mxu0 %v3543_v56  ;;  %v3590_v56 = vld [vmem:[%s4531_s0 + $0x10] ss:$25 sps:$4 sm:$0xff]  }
  0x75   :  { %3249 = vmatpush3.bf16.msra.mxu1 %v3542_v55  ;;  %v3588_v55 = vld [vmem:[%s4532_s1 + $0x438] sm:$0xff]  }
  0x76   :  { %3250 = vmatprep.subr.bf16.mxu1 %v3545_v57  ;;  %v3592_v57 = vld [vmem:[%s4531_s0 + $0x42] ss:$25 sps:$4 sm:$0xff]  }
  0x77   :  { %3229 = vmatpush3.bf16.msra.mxu0 %v3544_v58  ;;  %v3594_v58 = vld [vmem:[%s4531_s0 + $0x74] ss:$25 sps:$4 sm:$0xff]  }
  0x78   :  { %3230 = vmatprep.subr.bf16.mxu0 %v3547_v60  ;;  %v777_v60 = vrot.slane %v3590_v56, %v3838_v44 }
  0x79   :  { %3251 = vmatpush3.bf16.msra.mxu1 %v3546_v59  ;;  %v3596_v59 = vld [vmem:[%s4531_s0 + $0xa6] ss:$25 sps:$4 sm:$0xff]  }
  0x7a   :  { %3252 = vmatprep.subr.bf16.mxu1 %v3549_v61  ;;  %v3598_v61 = vld [vmem:[%s4532_s1 + $0x4b8] sm:$0xff]  }
  0x7b   :  { %3231 = vmatpush3.bf16.msra.mxu0 %v3548_v62  ;;  %v791_v62 = vrot.slane %v3592_v57, %v3838_v44 }
  0x7c   :  { %3232 = vmatprep.subr.bf16.mxu0 %v3551_v0  ;;  %v819_v0 = vrot.slane %v3596_v59, %v3838_v44 }
  0x7d   :  { %3253 = vmatpush3.bf16.msra.mxu1 %v3550_v63  ;;  %v805_v63 = vrot.slane %v3594_v58, %v3838_v44  ;;  %v828_v2 = vcombine.high %v777_v60, %v791_v62  ;;  %v827_v4 = vcombine.low %v777_v60, %v791_v62  ;;  %v3635_v62 = vld [vmem:[%s4532_s1 + $0x600] sm:$0xff]  }
  0x7e   :  { %3254 = vmatprep.subr.bf16.mxu1 %v3553_v1  ;;  %v3599_v1 = vld [vmem:[%s4532_s1 + $0x540] sm:$0xff]  }
  0x7f   :  { %3233 = vmatpush3.bf16.msra.mxu0 %v3552_v6  ;;  %v832_v3 = vcombine.high %v805_v63, %v819_v0  ;;  %v831_v6 = vcombine.low %v805_v63, %v819_v0  ;;  %v855_v7 = vrot.slane %v828_v2, %v3838_v44  ;;  %v841_v9 = vrot.slane %v827_v4, %v3838_v44  ;;  %v3639_v4 = vld [vmem:[%s4531_s0 + $0x18] ss:$25 sps:$4 sm:$0x11]  }
  0x80   :  { %3262 = vmatprep.subr.bf16.mxu0 %v3559_v12  ;;  %v3602_v12 = vld [vmem:[%s4532_s1 + $0x580] sm:$0xff]   ;;  %v3676_v63 = vmov 0.0  }
  0x81   :  { %3255 = vmatpush3.bf16.msra.mxu1 %v3558_v11  ;;  %v883_v8 = vrot.slane %v832_v3, %v3838_v44  ;;  %v869_v11 = vrot.slane %v831_v6, %v3838_v44  ;;  %v3641_v6 = vld [vmem:[%s4531_s0 + $0x7c] ss:$25 sps:$4 sm:$0x11]  }
  0x82   :  { %3284 = vmatprep.subr.bf16.mxu1 %v3561_v16  ;;  %2431 = vmatmul.mubr.bf16.vlgmr.msra.gmra.mrb[12].mxu0 %v757_v27  ;;  %v3612_v27 = vld [vmem:[%s4532_s1 + $0x518] sm:$0xff]  }
  0x83   :  { %3263 = vmatpush3.bf16.msra.mxu0 %v3560_v21  ;;  %v895_v13 = vcombine.low %v855_v7, %v883_v8  ;;  %v896_v14 = vcombine.high %v855_v7, %v883_v8  ;;  %v891_v16 = vcombine.low %v841_v9, %v869_v11  ;;  %v892_v17 = vcombine.high %v841_v9, %v869_v11  ;;  %v3607_v21 = vld [vmem:[%s4532_s1 + $0x550] sm:$0xff]   ;;  %v3642_v7 = vld [vmem:[%s4531_s0 + $0xae] ss:$25 sps:$4 sm:$0x11]  }
  0x84   :  { %2472 = vmatmul.mubr.bf16.vlgmr.msra.gmra.mrb[12].mxu1 %v758_v28  ;;  %3264 = vmatprep.subr.bf16.mxu0 %v3563_v26  ;;  %v3613_v26 = vld [vmem:[%s4532_s1 + $0x5d8] sm:$0xff]   ;;  %v3636_v8 = vld [vmem:[%s4532_s1 + $0x608] sm:$0xff]   ;;  %v909_v9 = vrot.slane %v3639_v4, %v3838_v44  ;;  %v923_v11 = vrot.slane %v3641_v6, %v3838_v44 }
  0x85   :  { %3285 = vmatpush3.bf16.msra.mxu1 %v3562_v23  ;;  %2512 = vmatprep.mubr.bf16.mxu0 %v895_v13  ;;  %v3608_v23 = vld [vmem:[%s4532_s1 + $0x510] sm:$0xff]   ;;  %v3614_v28 = vld [vmem:[%s4532_s1 + $0x598] sm:$0xff]  }
  0x86   :  { %3286 = vmatprep.subr.bf16.mxu1 %v3565_v29  ;;  %2553 = vmatprep.mubr.bf16.mxu1 %v896_v14  ;;  %v3615_v29 = vld [vmem:[%s4532_s1 + $0x560] sm:$0xff]  }
  0x87   :  { %3265 = vmatpush3.bf16.msra.mxu0 %v3564_v30  ;;  %v3617_v30 = vld [vmem:[%s4532_s1 + $0x5e0] sm:$0xff]  }
  0x88   :  { %3266 = vmatprep.subr.bf16.mxu0 %v3567_v32  ;;  %v3618_v32 = vld [vmem:[%s4532_s1 + $0x5a0] sm:$0xff]  }
  0x89   :  { %3287 = vmatpush3.bf16.msra.mxu1 %v3566_v31  ;;  %v3616_v31 = vld [vmem:[%s4532_s1 + $0x520] sm:$0xff]  }
  0x8a   :  { %3288 = vmatprep.subr.bf16.mxu1 %v3569_v33  ;;  %v3619_v33 = vld [vmem:[%s4532_s1 + $0x568] sm:$0xff]  }
  0x8b   :  { %3267 = vmatpush3.bf16.msra.mxu0 %v3568_v34  ;;  %v3621_v34 = vld [vmem:[%s4532_s1 + $0x5e8] sm:$0xff]  }
  0x8c   :  { %3268 = vmatprep.subr.bf16.mxu0 %v3571_v36  ;;  %v3622_v36 = vld [vmem:[%s4532_s1 + $0x5a8] sm:$0xff]  }
  0x8d   :  { %3289 = vmatpush3.bf16.msra.mxu1 %v3570_v35  ;;  %v3620_v35 = vld [vmem:[%s4532_s1 + $0x528] sm:$0xff]  }
  0x8e   :  { %3290 = vmatprep.subr.bf16.mxu1 %v3573_v37  ;;  %v3623_v37 = vld [vmem:[%s4532_s1 + $0x570] sm:$0xff]  }
  0x8f   :  { %3269 = vmatpush3.bf16.msra.mxu0 %v3572_v38  ;;  %v3625_v38 = vld [vmem:[%s4532_s1 + $0x5f0] sm:$0xff]  }
  0x90   :  { %3270 = vmatprep.subr.bf16.mxu0 %v3575_v40  ;;  %v3626_v40 = vld [vmem:[%s4532_s1 + $0x5b0] sm:$0xff]  }
  0x91   :  { %3291 = vmatpush3.bf16.msra.mxu1 %v3574_v39  ;;  %v3624_v39 = vld [vmem:[%s4532_s1 + $0x530] sm:$0xff]  }
  0x92   :  { %3292 = vmatprep.subr.bf16.mxu1 %v3577_v41  ;;  %v3627_v41 = vld [vmem:[%s4532_s1 + $0x578] sm:$0xff]  }
  0x93   :  { %3271 = vmatpush3.bf16.msra.mxu0 %v3576_v42  ;;  %v3629_v42 = vld [vmem:[%s4532_s1 + $0x5f8] sm:$0xff]  }
  0x94   :  { %3272 = vmatprep.subr.bf16.mxu0 %v3579_v45  ;;  %v3631_v45 = vld [vmem:[%s4531_s0 + $0x46] ss:$25 sps:$4 sm:$0xff]  }
  0x95   :  { %3293 = vmatpush3.bf16.msra.mxu1 %v3578_v43  ;;  %v3630_v43 = vld [vmem:[%s4531_s0 + $0x14] ss:$25 sps:$4 sm:$0xff]  }
  0x96   :  { %3294 = vmatprep.subr.bf16.mxu1 %v3581_v46  ;;  %v3632_v46 = vld [vmem:[%s4531_s0 + $0x78] ss:$25 sps:$4 sm:$0xff]  }
  0x97   :  { %3273 = vmatpush3.bf16.msra.mxu0 %v3580_v47  ;;  %v3633_v47 = vld [vmem:[%s4531_s0 + $0xaa] ss:$25 sps:$4 sm:$0xff]  }
  0x98   :  { %3274 = vmatprep.subr.bf16.mxu0 %v3583_v49  ;;  %v784_v49 = vrot.slane %v3630_v43, %v3838_v44 }
  0x99   :  { %3295 = vmatpush3.bf16.msra.mxu1 %v3582_v48  ;;  %v3628_v48 = vld [vmem:[%s4532_s1 + $0x538] sm:$0xff]  }
  0x9a   :  { %3296 = vmatprep.subr.bf16.mxu1 %v3585_v50  ;;  %v798_v50 = vrot.slane %v3631_v45, %v3838_v44 }
  0x9b   :  { %3275 = vmatpush3.bf16.msra.mxu0 %v3584_v51  ;;  %v812_v51 = vrot.slane %v3632_v46, %v3838_v44 }
  0x9c   :  { %3276 = vmatprep.subr.bf16.mxu0 %v3587_v53  ;;  %v3634_v53 = vld [vmem:[%s4532_s1 + $0x5b8] sm:$0xff]  }
  0x9d   :  { %3297 = vmatpush3.bf16.msra.mxu1 %v3586_v52  ;;  %v826_v52 = vrot.slane %v3633_v47, %v3838_v44 }
  0x9e   :  { %3298 = vmatprep.subr.bf16.mxu1 %v3589_v54  ;;  %v830_v54 = vcombine.high %v784_v49, %v798_v50 }
  0x9f   :  { %3277 = vmatpush3.bf16.msra.mxu0 %v3588_v55  ;;  %v829_v55 = vcombine.low %v784_v49, %v798_v50  ;;  %v834_v56 = vcombine.high %v812_v51, %v826_v52  ;;  %v833_v57 = vcombine.low %v812_v51, %v826_v52 }
  0xa0   :  { %3306 = vmatprep.subr.bf16.mxu0 %v3599_v1  ;;  %v862_v58 = vrot.slane %v830_v54, %v3838_v44  ;;  %v3644_v54 = vld [vmem:[%s4534_s3 + $0x8] sm:$0xff]  }
  0xa1   :  { %3299 = vmatpush3.bf16.msra.mxu1 %v3598_v61  ;;  %v848_v59 = vrot.slane %v829_v55, %v3838_v44  ;;  %v890_v60 = vrot.slane %v834_v56, %v3838_v44  ;;  %v876_v61 = vrot.slane %v833_v57, %v3838_v44  ;;  %v3645_v55 = vld [vmem:[%s4534_s3 + $0x10] sm:$0xff]   ;;  %v3646_v56 = vld [vmem:[%s4534_s3 + $0x18] sm:$0xff]  }
  0xa2   :  { %3328 = vmatprep.subr.bf16.mxu1 %v3601_v5  ;;  %2513 = vmatmul.mubr.bf16.vlgmr.msra.gmra.mrb[16].mxu0 %v891_v16  ;;  %v3640_v5 = vld [vmem:[%s4531_s0 + $0x4a] ss:$25 sps:$4 sm:$0x11]  }
  0xa3   :  { %3307 = vmatpush3.bf16.msra.mxu0 %v3600_v10  ;;  %v897_v0 = vcombine.low %v862_v58, %v890_v60  ;;  %v893_v1 = vcombine.low %v848_v59, %v876_v61  ;;  %v898_v2 = vcombine.high %v862_v58, %v890_v60  ;;  %v894_v3 = vcombine.high %v848_v59, %v876_v61  ;;  %v3647_v59 = vld [vmem:[%s4536_s5] sm:$0xff]  }
  0xa4   :  { %2554 = vmatmul.mubr.bf16.vlgmr.msra.gmra.mrb[16].mxu1 %v892_v17  ;;  %3308 = vmatprep.subr.bf16.mxu0 %v3603_v15  ;;  %v916_v10 = vrot.slane %v3640_v5, %v3838_v44  ;;  %v3637_v15 = vld [vmem:[%s4532_s1 + $0x610] sm:$0xff]  }
  0xa5   :  { %3329 = vmatpush3.bf16.msra.mxu1 %v3602_v12  ;;  %2594 = vmatprep.mubr.bf16.mxu0 %v897_v0  ;;  %v930_v12 = vrot.slane %v3642_v7, %v3838_v44 }
  0xa6   :  { %3330 = vmatprep.subr.bf16.mxu1 %v3605_v18  ;;  %2635 = vmatprep.mubr.bf16.mxu1 %v898_v2  ;;  %v931_v13 = vcombine.low %v909_v9, %v916_v10  ;;  %v3638_v18 = vld [vmem:[%s4532_s1 + $0x618] sm:$0xff]  }
  0xa7   :  { %3309 = vmatpush3.bf16.msra.mxu0 %v3604_v19  ;;  %v932_v14 = vcombine.low %v923_v11, %v930_v12 }
  0xa8   :  { %3310 = vmatprep.subr.bf16.mxu0 %v3607_v21  ;;  %v939_v16 = vrot.slane %v931_v13, %v3838_v44 }
  0xa9   :  { %3331 = vmatpush3.bf16.msra.mxu1 %v3606_v20  ;;  %v946_v17 = vrot.slane %v932_v14, %v3838_v44  ;;  %v2876_v44 = vld [vmem:[%s4533_s2] ss:$0 sm:$0xff] }
  0xaa   :  { %3332 = vmatprep.subr.bf16.mxu1 %v3609_v22 }
  0xab   :  { %3311 = vmatpush3.bf16.msra.mxu0 %v3608_v23  ;;  %v947_v19 = vcombine.low %v939_v16, %v946_v17 }
  0xac   :  { %3312 = vmatprep.subr.bf16.mxu0 %v3611_v25 }
  0xad   :  { %3333 = vmatpush3.bf16.msra.mxu1 %v3610_v24 }
  0xae   :  { %3334 = vmatprep.subr.bf16.mxu1 %v3613_v26 }
  0xaf   :  { %3313 = vmatpush3.bf16.msra.mxu0 %v3612_v27 }
  0xb0   :  { %3314 = vmatprep.subr.bf16.mxu0 %v3615_v29 }
  0xb1   :  { %3335 = vmatpush3.bf16.msra.mxu1 %v3614_v28 }
  0xb2   :  { %3336 = vmatprep.subr.bf16.mxu1 %v3617_v30 }
  0xb3   :  { %3315 = vmatpush3.bf16.msra.mxu0 %v3616_v31 }
  0xb4   :  { %3316 = vmatprep.subr.bf16.mxu0 %v3619_v33 }
  0xb5   :  { %3337 = vmatpush3.bf16.msra.mxu1 %v3618_v32 }
  0xb6   :  { %3338 = vmatprep.subr.bf16.mxu1 %v3621_v34 }
  0xb7   :  { %3317 = vmatpush3.bf16.msra.mxu0 %v3620_v35 }
  0xb8   :  { %3318 = vmatprep.subr.bf16.mxu0 %v3623_v37 }
  0xb9   :  { %3339 = vmatpush3.bf16.msra.mxu1 %v3622_v36 }
  0xba   :  { %3340 = vmatprep.subr.bf16.mxu1 %v3625_v38 }
  0xbb   :  { %3319 = vmatpush3.bf16.msra.mxu0 %v3624_v39 }
  0xbc   :  { %3320 = vmatprep.subr.bf16.mxu0 %v3627_v41 }
  0xbd   :  { %3341 = vmatpush3.bf16.msra.mxu1 %v3626_v40 }
  0xbe   :  { %3342 = vmatprep.subr.bf16.mxu1 %v3629_v42 }
  0xbf   :  { %3321 = vmatpush3.bf16.msra.mxu0 %v3628_v48 }
  0xc0   :  { %3365 = vmatprep.subr.bf16.mxu0 %v3676_v63 }
  0xc1   :  { %3343 = vmatpush3.bf16.msra.mxu1 %v3634_v53  ;;  %v3643_v53 = vld [vmem:[%s4534_s3] sm:$0xff]  }
  0xc2   :  { %3377 = vmatprep.subr.bf16.mxu1 %v3676_v63  ;;  %2595 = vmatmul.mubr.bf16.vlgmr.msra.gmra.mrb[20].mxu0 %v893_v1 }
  0xc3   :  { %3366 = vmatpush3.bf16.msra.mxu0 %v3635_v62  ;;  %3373 = vmatprep.mubr.msk.bf16.mxu0 %vm3677_vm0, %v3676_v63 }
  0xc4   :  { %2636 = vmatmul.mubr.bf16.vlgmr.msra.gmra.mrb[20].mxu1 %v894_v3  ;;  %3367 = vmatprep.subr.bf16.mxu0 %v3676_v63  ;;  %v3648_v3 = vld [vmem:[%s4536_s5 + $0x8] sm:$0xff]  }
  0xc5   :  { %3385 = vmatprep.mubr.msk.bf16.mxu1 %vm3677_vm0, %v3676_v63  ;;  %3378 = vmatpush3.bf16.msra.mxu1 %v3643_v53 }
  0xc6   :  { %3379 = vmatprep.subr.bf16.mxu1 %v3676_v63 }
  0xc7   :  { %3368 = vmatpush3.bf16.msra.mxu0 %v3636_v8 }
  0xc8   :  { %3369 = vmatprep.subr.bf16.mxu0 %v3676_v63 }
  0xc9   :  { %3380 = vmatpush3.bf16.msra.mxu1 %v3644_v54 }
  0xca   :  { %3381 = vmatprep.subr.bf16.mxu1 %v3676_v63 }
  0xcb   :  { %3370 = vmatpush3.bf16.msra.mxu0 %v3637_v15 }
  0xcc   :  { %3371 = vmatprep.subr.bf16.mxu0 %v3676_v63 }
  0xcd   :  { %3382 = vmatpush3.bf16.msra.mxu1 %v3645_v55 }
  0xce   :  { %3383 = vmatprep.subr.bf16.mxu1 %v3676_v63 }
  0xcf   :  { %3372 = vmatpush3.bf16.msra.mxu0 %v3638_v18 }
  0xd0   :  { %3389 = vmatprep.subr.bf16.mxu0 %v3676_v63 }
  0xd1   :  { %3384 = vmatpush3.bf16.msra.mxu1 %v3646_v56 }
  0xd2   :  { %3374 = vmatmul.mubr.msk.bf16.vlgmr.msra.gmra.mrb[24].mxu0 %vm2148_vm1, %v947_v19 }
  0xd3   :  { %3397 = vmatprep.mubr.msk.bf16.mxu0 %vm3677_vm0, %v3676_v63  ;;  %3390 = vmatpush3.bf16.msra.mxu0 %v3647_v59 }
  0xd4   :  { %3391 = vmatprep.subr.bf16.mxu0 %v3676_v63 }
  0xd7   :  { %3392 = vmatpush3.bf16.msra.mxu0 %v3648_v3 }
  0xd8   :  { %3393 = vmatprep.subr.bf16.mxu0 %v3676_v63 }
  0xf5   :  { %v3102_v20 = vpop.f32.mrb[0].mxu0 }
  0xf6   :  { %v3103_v22 = vpop.f32.mrb[1].mxu0 }
  0xf7   :  { %v3124_v21 = vpop.f32.mrb[0].mxu1  ;;  %v3104_v24 = vadd.f32 %v3103_v22, %v3102_v20  ;;  %v3105_v25 = vpop.f32.mrb[2].mxu0 }
  0xf8   :  { %v3125_v23 = vpop.f32.mrb[1].mxu1  ;;  %v3106_v28 = vpop.f32.mrb[3].mxu0 }
  0xf9   :  { %v3126_v26 = vadd.f32 %v3125_v23, %v3124_v21  ;;  %v3127_v27 = vpop.f32.mrb[2].mxu1  ;;  %v2187_v30 = vadd.f32 %v3104_v24, %v2876_v44  ;;  %v3107_v31 = vadd.f32 %v3106_v28, %v3105_v25 }
  0xfa   :  { %v3128_v29 = vpop.f32.mrb[3].mxu1 }
  0xfb   :  { %v3129_v32 = vadd.f32 %v3128_v29, %v3127_v27  ;;  %v2190_v33 = vadd.f32 %v3107_v31, %v2876_v44  ;;  %v2228_v34 = vadd.f32 %v3126_v26, %v2187_v30 }
  0xfd   :  { %v2231_v35 = vadd.f32 %v3129_v32, %v2190_v33 }
 0x115   :  { %v3146_v36 = vpop.f32.mrb[4].mxu0 }
 0x116   :  { %v3147_v38 = vpop.f32.mrb[5].mxu0 }
 0x117   :  { %v3168_v37 = vpop.f32.mrb[4].mxu1  ;;  %v3148_v40 = vadd.f32 %v3147_v38, %v3146_v36  ;;  %v3149_v41 = vpop.f32.mrb[6].mxu0 }
 0x118   :  { %v3169_v39 = vpop.f32.mrb[5].mxu1  ;;  %v3150_v45 = vpop.f32.mrb[7].mxu0 }
 0x119   :  { %v3170_v42 = vadd.f32 %v3169_v39, %v3168_v37  ;;  %v3171_v43 = vpop.f32.mrb[6].mxu1  ;;  %v2269_v47 = vadd.f32 %v3148_v40, %v2228_v34  ;;  %v3151_v48 = vadd.f32 %v3150_v45, %v3149_v41 }
 0x11a   :  { %v3172_v46 = vpop.f32.mrb[7].mxu1 }
 0x11b   :  { %v3173_v49 = vadd.f32 %v3172_v46, %v3171_v43  ;;  %v2272_v50 = vadd.f32 %v3151_v48, %v2231_v35  ;;  %v2310_v51 = vadd.f32 %v3170_v42, %v2269_v47 }
 0x11d   :  { %v2313_v52 = vadd.f32 %v3173_v49, %v2272_v50 }
 0x135   :  { %v3190_v57 = vpop.f32.mrb[8].mxu0 }
 0x136   :  { %v3191_v60 = vpop.f32.mrb[9].mxu0 }
 0x137   :  { %v3212_v58 = vpop.f32.mrb[8].mxu1  ;;  %v3192_v62 = vadd.f32 %v3191_v60, %v3190_v57  ;;  %v3193_v0 = vpop.f32.mrb[10].mxu0 }
 0x138   :  { %v3213_v61 = vpop.f32.mrb[9].mxu1  ;;  %v3194_v4 = vpop.f32.mrb[11].mxu0 }
 0x139   :  { %v3214_v1 = vadd.f32 %v3213_v61, %v3212_v58  ;;  %v3215_v2 = vpop.f32.mrb[10].mxu1  ;;  %v2351_v6 = vadd.f32 %v3192_v62, %v2310_v51  ;;  %v3195_v7 = vadd.f32 %v3194_v4, %v3193_v0 }
 0x13a   :  { %v3216_v5 = vpop.f32.mrb[11].mxu1 }
 0x13b   :  { %v3217_v8 = vadd.f32 %v3216_v5, %v3215_v2  ;;  %v2354_v9 = vadd.f32 %v3195_v7, %v2313_v52  ;;  %v2392_v10 = vadd.f32 %v3214_v1, %v2351_v6  ;;  %v3649_v6 = vld [vmem:[%s4536_s5 + $0x10] sm:$0xff]   ;;  %v3650_v7 = vld [vmem:[%s4536_s5 + $0x18] sm:$0xff]  }
 0x13c   :  { %3394 = vmatpush3.bf16.msra.mxu0 %v3649_v6 }
 0x13d   :  { %v2395_v11 = vadd.f32 %v3217_v8, %v2354_v9  ;;  %3395 = vmatprep.subr.bf16.mxu0 %v3676_v63  ;;  %v3074_v8 = vld [vmem:[%s4535_s4] ss:$0 sm:$0xff] }
 0x13e   :  { %v3080_v63 = vld [vmem:[%s4537_s6] ss:$0 sm:$0xff] }
 0x140   :  { %3396 = vmatpush3.bf16.msra.mxu0 %v3650_v7 }
 0x155   :  { %v3234_v12 = vpop.f32.mrb[12].mxu0 }
 0x156   :  { %v3235_v14 = vpop.f32.mrb[13].mxu0 }
 0x157   :  { %v3256_v13 = vpop.f32.mrb[12].mxu1  ;;  %v3236_v16 = vadd.f32 %v3235_v14, %v3234_v12  ;;  %v3237_v17 = vpop.f32.mrb[14].mxu0 }
 0x158   :  { %v3257_v15 = vpop.f32.mrb[13].mxu1  ;;  %v3238_v20 = vpop.f32.mrb[15].mxu0 }
 0x159   :  { %v3258_v18 = vadd.f32 %v3257_v15, %v3256_v13  ;;  %v3259_v19 = vpop.f32.mrb[14].mxu1  ;;  %v2433_v44 = vadd.f32 %v3236_v16, %v2392_v10  ;;  %v3239_v22 = vadd.f32 %v3238_v20, %v3237_v17 }
 0x15a   :  { %v3260_v21 = vpop.f32.mrb[15].mxu1 }
 0x15b   :  { %v3261_v23 = vadd.f32 %v3260_v21, %v3259_v19  ;;  %v2436_v24 = vadd.f32 %v3239_v22, %v2395_v11  ;;  %v2474_v25 = vadd.f32 %v3258_v18, %v2433_v44 }
 0x15d   :  { %v2477_v26 = vadd.f32 %v3261_v23, %v2436_v24 }
 0x175   :  { %v3278_v27 = vpop.f32.mrb[16].mxu0 }
 0x176   :  { %v3279_v29 = vpop.f32.mrb[17].mxu0 }
 0x177   :  { %v3300_v28 = vpop.f32.mrb[16].mxu1  ;;  %v3280_v31 = vadd.f32 %v3279_v29, %v3278_v27  ;;  %v3281_v32 = vpop.f32.mrb[18].mxu0 }
 0x178   :  { %v3301_v30 = vpop.f32.mrb[17].mxu1  ;;  %v3282_v35 = vpop.f32.mrb[19].mxu0 }
 0x179   :  { %v3302_v33 = vadd.f32 %v3301_v30, %v3300_v28  ;;  %v3303_v34 = vpop.f32.mrb[18].mxu1  ;;  %v2515_v37 = vadd.f32 %v3280_v31, %v2474_v25  ;;  %v3283_v38 = vadd.f32 %v3282_v35, %v3281_v32 }
 0x17a   :  { %v3304_v36 = vpop.f32.mrb[19].mxu1 }
 0x17b   :  { %v3305_v39 = vadd.f32 %v3304_v36, %v3303_v34  ;;  %v2518_v40 = vadd.f32 %v3283_v38, %v2477_v26  ;;  %v2556_v41 = vadd.f32 %v3302_v33, %v2515_v37 }
 0x17d   :  { %v2559_v42 = vadd.f32 %v3305_v39, %v2518_v40 }
 0x195   :  { %v3322_v43 = vpop.f32.mrb[20].mxu0 }
 0x196   :  { %v3323_v46 = vpop.f32.mrb[21].mxu0 }
 0x197   :  { %v3344_v45 = vpop.f32.mrb[20].mxu1  ;;  %v3324_v48 = vadd.f32 %v3323_v46, %v3322_v43  ;;  %v3325_v49 = vpop.f32.mrb[22].mxu0 }
 0x198   :  { %v3345_v47 = vpop.f32.mrb[21].mxu1  ;;  %v3326_v52 = vpop.f32.mrb[23].mxu0 }
 0x199   :  { %v3346_v50 = vadd.f32 %v3345_v47, %v3344_v45  ;;  %v3347_v51 = vpop.f32.mrb[22].mxu1  ;;  %v2597_v54 = vadd.f32 %v3324_v48, %v2556_v41  ;;  %v3327_v55 = vadd.f32 %v3326_v52, %v3325_v49 }
 0x19a   :  { %v3348_v53 = vpop.f32.mrb[23].mxu1 }
 0x19b   :  { %v3349_v56 = vadd.f32 %v3348_v53, %v3347_v51  ;;  %v2600_v57 = vadd.f32 %v3327_v55, %v2559_v42  ;;  %v2638_v58 = vadd.f32 %v3346_v50, %v2597_v54 }
 0x19d   :  { %v2641_v59 = vadd.f32 %v3349_v56, %v2600_v57 }
 0x1a5   :  { %v2678_v60 = vpop.f32.mrb[24].mxu0 }
 0x1a6   :  { %v2679_v61 = vadd.f32 %v2678_v60, %v2638_v58  ;;  %v3375_v62 = vpop.f32.mrb[25].mxu0 }
 0x1a7   :  { %v2681_v0 = vpop.f32.mrb[26].mxu0 }
 0x1a8   :  { %v2682_v1 = vadd.f32 %v2681_v0, %v2641_v59  ;;  %v3376_v2 = vpop.f32.mrb[27].mxu0  ;;  %v2685_v3 = vmax.f32 %v2679_v61, 0.0 }
 0x1aa   :  { %v2686_v4 = vmax.f32 %v2682_v1, 0.0 }
 0x1ac   :  { %v2687_v5 = vpack.c.bf16 %v2686_v4, %v2685_v3 }
 0x1ae   :  { %3386 = vmatmul.mubr.msk.bf16.vlgmr.msra.gmra.mrb[24].mxu1 %vm2148_vm1, %v2687_v5 }
 0x281   :  { %v2764_v9 = vpop.f32.mrb[24].mxu1 }
 0x282   :  { %v2765_v10 = vadd.f32 %v3074_v8, %v2764_v9  ;;  %v3387_v11 = vpop.f32.mrb[25].mxu1 }
 0x283   :  { %v2767_v12 = vpop.f32.mrb[26].mxu1 }
 0x284   :  { %v2768_v13 = vadd.f32 %v3074_v8, %v2767_v12  ;;  %v3388_v14 = vpop.f32.mrb[27].mxu1  ;;  %v2771_v15 = vmax.f32 %v2765_v10, 0.0 }
 0x286   :  { %v2772_v16 = vmax.f32 %v2768_v13, 0.0 }
 0x288   :  { %v2773_v17 = vpack.c.bf16 %v2772_v16, %v2771_v15 }
 0x28a   :  { %3398 = vmatmul.mubr.msk.bf16.vlgmr.msra.gmra.mrb[28].mxu0 %vm2148_vm1, %v2773_v17 }
 0x35d   :  { %v2850_v18 = vpop.f32.mrb[28].mxu0 }
 0x35e   :  { %v2851_v19 = vadd.f32 %v3080_v63, %v2850_v18  ;;  %v3399_v20 = vpop.f32.mrb[29].mxu0 }
 0x35f   :  { %v2853_v21 = vpop.f32.mrb[30].mxu0 }
 0x360   :  { %2858 = vst.msk [vmem:[#allocation2] sm:$0xff] %vm2857_vm2, %v2851_v19  ;;  %v2854_v44 = vadd.f32 %v3080_v63, %v2853_v21  ;;  %v3400_v22 = vpop.f32.mrb[31].mxu0 }
 0x362   :  { %2859 = vst.msk [vmem:[#allocation2 + $0x8] sm:$0xff] %vm2857_vm2, %v2854_v44 }
 0x363   :  { %2864 = vsyncadd [#allocation3], 224  ;;  %s3678_s4 = smov [#allocation2]  }
 0x364   :  { %s2865_s5 = sshll.u32 %s3678_s4, 4  ;;  %s2866_s5 = int_to_ptr.vmem [resolvable:$true] %s2865_s5 }
 0x365   :  { %s3651_s30 = scalar_lea.vmem %s2866_s5, 32  ;;  %s3655_s0 = scalar_lea.vmem %s2866_s5, 256 }
 0x366   :  { %p3652_p0 = scmp.ne.s32.totalorder %s2866_s5, %s3651_s30  ;;  %p3656_p1 = scmp.lt.s32.totalorder %s2866_s5, %s2866_s5 }
 0x367   :  { %p3657_p2 = scmp.lt.s32.totalorder %s3655_s0, %s3651_s30 }
 0x369   :  { %p3658_p3 = por %p3657_p2, %p3656_p1 }
 0x36b   :  { %p3659_p4 = pnand %p3658_p3, %p3652_p0 }
 0x36d   :  { %3662 = shalt.err (!%p3659_p4)
}
 0x36e   :  { %s3663_s9 = scalar_lea.hbm %s4538_s7, 32 }
 0x36f   :  { %p3664_p5 = scmp.ne.s32.totalorder %s4538_s7, %s3663_s9  ;;  %p3667_p6 = scmp.lt.u32.totalorder %s3663_s9, %s4538_s7 }
 0x371   :  { %p3669_p7 = pnand %p3667_p6, %p3664_p5 }
 0x373   :  { %3672 = shalt.err (!%p3669_p7)
}
 0x374   :  { %s3679_s2 = smov 32   ;;  %s3680_s13 = smov 2  }
 0x375   :  { %2871 = dma.vmem_to_hbm [thread:$0]  %s2866_s5, 32, %s4538_s7, [#allocation3], %s3679_s2, %s3679_s2, %s3680_s13  }
 0x376   :  { %3673 = dma.done.wait [#allocation3], 256  }
 0x377   :  { %3674 = vsyncadd [#allocation3], 4294967040 }
 0x378   :  { %2875 = vsyncpa [#allocation3], 1 }

</bundles_post_ra>
